<compile_context>
chip_gen: v7x
topology: tpu7x:2x2x1
jax: 0.10.0
libtpu: 0.0.40
codegen_flags: <defaults>
</compile_context>

<pallas_src>
import functools

import jax
import jax.numpy as jnp
from jax.experimental import pallas as pl
from jax.experimental.pallas import tpu as pltpu


# --------------------------------------------------------------------------
# In-kernel helper: Conv1d(cin->cout, k, padding=(k-1)//2) + ReLU
# --------------------------------------------------------------------------
def _conv_relu(pad_ref, w_ref, b_ref, *, tb, seg, ksize):
    """pad_ref: (tb, seg + ksize - 1, cin) f32, halo rows already zero.
    w_ref: (ksize*cin, cout) bf16 folded weights (row k*cin + c = W[o, c, k]).
    b_ref: (1, cout) f32.  Returns (tb*seg, cout) f32."""
    cin = pad_ref.shape[-1]
    # im2col as a value: k shifted slabs concatenated along lanes.
    slabs = [pad_ref[:, k:k + seg, :] for k in range(ksize)]
    col = jnp.concatenate(slabs, axis=-1)                    # (tb, seg, k*cin)
    col = col.reshape(tb * seg, ksize * cin).astype(w_ref.dtype)
    y = jnp.dot(col, w_ref[...], preferred_element_type=jnp.float32)
    return jnp.maximum(y + b_ref[...], 0.0)                  # f32


# --------------------------------------------------------------------------
# Fused kernel: conv stack + global max pool + classifier, tb samples/step
# --------------------------------------------------------------------------
def _arousal_kernel(x_ref,                       # (tb, L+6, Cin)  pre-padded
                    w1_ref, b1_ref,              # (7*Cin, 32) bf16, (1, 32) f32
                    w2_ref, b2_ref,              # (160, 64)  bf16, (1, 64) f32
                    w3_ref, b3_ref,              # (192, 128) bf16, (1, 128) f32
                    wf1_ref, bf1_ref,            # (128, 64)  bf16, (1, 64) f32
                    wf2_ref, bf2_ref,            # (64, 2)    bf16, (1, 2)  f32
                    out_ref,                     # (tb, 2) f32
                    a1, pad2, a2, pad3,          # VMEM scratch
                    *, tb, L):
    f32 = jnp.float32
    L2, L4 = L // 2, L // 4

    # ---- Conv1d(Cin, 32, k=7, pad=3) + ReLU (input arrives pre-padded) ----
    a1[...] = _conv_relu(x_ref, w1_ref, b1_ref, tb=tb, seg=L, ksize=7)

    # ---- MaxPool1d(2): strided row pairs (never cross a sample, L even) ----
    p1 = jnp.maximum(a1[pl.ds(0, tb * L2, stride=2), :],
                     a1[pl.ds(1, tb * L2, stride=2), :])     # (tb*L2, 32)

    # ---- Conv1d(32, 64, k=5, pad=2) + ReLU ----
    pad2[:, 0:2, :] = jnp.zeros((tb, 2, 32), f32)            # halo rows only
    pad2[:, L2 + 2:L2 + 4, :] = jnp.zeros((tb, 2, 32), f32)
    pad2[:, 2:L2 + 2, :] = p1.reshape(tb, L2, 32)
    a2[...] = _conv_relu(pad2, w2_ref, b2_ref, tb=tb, seg=L2, ksize=5)

    # ---- MaxPool1d(2) ----
    p2 = jnp.maximum(a2[pl.ds(0, tb * L4, stride=2), :],
                     a2[pl.ds(1, tb * L4, stride=2), :])     # (tb*L4, 64)

    # ---- Conv1d(64, 128, k=3, pad=1) + ReLU ----
    pad3[:, 0:1, :] = jnp.zeros((tb, 1, 64), f32)
    pad3[:, L4 + 1:L4 + 2, :] = jnp.zeros((tb, 1, 64), f32)
    pad3[:, 1:L4 + 1, :] = p2.reshape(tb, L4, 64)
    y3 = _conv_relu(pad3, w3_ref, b3_ref, tb=tb, seg=L4, ksize=3)  # (tb*L4,128)

    # ---- AdaptiveMaxPool1d(1): per-sample max on the live value ----
    feat = jnp.max(y3.reshape(tb, L4, 128), axis=1)          # (tb, 128) f32

    # ---- classifier: Linear(128,64) + ReLU + Linear(64,2) ----
    h = jnp.maximum(
        jnp.dot(feat.astype(wf1_ref.dtype), wf1_ref[...],
                preferred_element_type=jnp.float32) + bf1_ref[...], 0.0)
    out_ref[...] = (jnp.dot(h.astype(wf2_ref.dtype), wf2_ref[...],
                            preferred_element_type=jnp.float32) + bf2_ref[...])
    # PyTorch's .squeeze(1) on a (B, 2) tensor is a no-op.


# --------------------------------------------------------------------------
# Wrapper
# --------------------------------------------------------------------------
def arousal_cnn_forward(x_ncl, kparams, *, block_b=8,
                        vmem_limit_bytes=48 * 1024 * 1024):
    """x_ncl: (B, Cin, L) float32 (PyTorch NCL). Returns (B, 2) float32 logits.

    block_b: samples per grid step (multiple of 8). Raise it for large B to
    amortize per-step overhead (scratch grows ~linearly with it); keep
    B/block_b >= 2 so both v7x TensorCores get work.
    """
    B, Cin, L = x_ncl.shape
    assert L % 32 == 0, "kernel requires L to be a multiple of 32"
    assert block_b % 8 == 0, "block_b must be a multiple of 8"
    w1, b1, w2, b2, w3, b3, wf1, bf1, wf2, bf2 = kparams

    tb = block_b
    n_blocks = pl.cdiv(B, tb)
    B_pad = n_blocks * tb
    L2, L4 = L // 2, L // 4

    # NCL -> NLC, zero-pad batch to a multiple of tb, zero-pad L by 3 each side
    # (conv1 halo) so the kernel never touches uninitialized rows.
    x = jnp.transpose(x_ncl, (0, 2, 1)).astype(jnp.float32)          # (B, L, Cin)
    if B_pad != B:
        x = jnp.concatenate(
            [x, jnp.zeros((B_pad - B, L, Cin), jnp.float32)], axis=0)
    x = jnp.pad(x, ((0, 0), (3, 3), (0, 0)))                         # (B_pad, L+6, Cin)

    kernel = functools.partial(_arousal_kernel, tb=tb, L=L)

    logits = pl.pallas_call(
        kernel,
        out_shape=jax.ShapeDtypeStruct((B_pad, 2), jnp.float32),
        grid_spec=pltpu.PrefetchScalarGridSpec(
            num_scalar_prefetch=0,
            grid=(n_blocks,),
            in_specs=[
                pl.BlockSpec((tb, L + 6, Cin), lambda i: (i, 0, 0)),
                pl.BlockSpec((7 * Cin, 32), lambda i: (0, 0)),
                pl.BlockSpec((1, 32), lambda i: (0, 0)),
                pl.BlockSpec((5 * 32, 64), lambda i: (0, 0)),
                pl.BlockSpec((1, 64), lambda i: (0, 0)),
                pl.BlockSpec((3 * 64, 128), lambda i: (0, 0)),
                pl.BlockSpec((1, 128), lambda i: (0, 0)),
                pl.BlockSpec((128, 64), lambda i: (0, 0)),
                pl.BlockSpec((1, 64), lambda i: (0, 0)),
                pl.BlockSpec((64, 2), lambda i: (0, 0)),
                pl.BlockSpec((1, 2), lambda i: (0, 0)),
            ],
            out_specs=pl.BlockSpec((tb, 2), lambda i: (i, 0)),
            scratch_shapes=[
                pltpu.VMEM((tb * L, 32), jnp.float32),        # a1 (conv1 out)
                pltpu.VMEM((tb, L2 + 4, 32), jnp.float32),    # pad2
                pltpu.VMEM((tb * L2, 64), jnp.float32),       # a2 (conv2 out)
                pltpu.VMEM((tb, L4 + 2, 64), jnp.float32),    # pad3
            ]),
        compiler_params=pltpu.CompilerParams(
            dimension_semantics=("parallel",),
            vmem_limit_bytes=vmem_limit_bytes),
    )(x, w1, b1, w2, b2, w3, b3, wf1, bf1, wf2, bf2)

    return logits[:B]                                                # (B, 2)


# ---------------- deterministic parameter init (PyTorch layouts) -----------
def init_torch_params(key, cin):
    ks = jax.random.split(key, 10)

    def u(k, shape, fan_in):
        bound = 1.0 / jnp.sqrt(jnp.float32(fan_in))
        return jax.random.uniform(k, shape, jnp.float32, -bound, bound)

    W1 = u(ks[0], (32, cin, 7), cin * 7); B1 = u(ks[1], (32,), cin * 7)
    W2 = u(ks[2], (64, 32, 5), 32 * 5);   B2 = u(ks[3], (64,), 32 * 5)
    W3 = u(ks[4], (128, 64, 3), 64 * 3);  B3 = u(ks[5], (128,), 64 * 3)
    Wf1 = u(ks[6], (64, 128), 128);       Bf1 = u(ks[7], (64,), 128)
    Wf2 = u(ks[8], (2, 64), 64);          Bf2 = u(ks[9], (2,), 64)
    return (W1, B1, W2, B2, W3, B3, Wf1, Bf1, Wf2, Bf2)


def to_kernel_params(tp, compute_dtype=jnp.bfloat16):
    """PyTorch layouts -> kernel layouts: folded im2col conv weights,
    transposed FC weights, all matmul operands cast to bf16; biases f32."""
    W1, B1, W2, B2, W3, B3, Wf1, Bf1, Wf2, Bf2 = tp

    def fold(W):  # (Cout, Cin, K) -> (K*Cin, Cout), row k*Cin + c = W[:, c, k]
        Cout, Cin_, K = W.shape
        return jnp.transpose(W, (2, 1, 0)).reshape(K * Cin_, Cout).astype(compute_dtype)

    f32 = jnp.float32
    return (fold(W1), B1[None, :].astype(f32),
            fold(W2), B2[None, :].astype(f32),
            fold(W3), B3[None, :].astype(f32),
            Wf1.T.astype(compute_dtype), Bf1[None, :].astype(f32),
            Wf2.T.astype(compute_dtype), Bf2[None, :].astype(f32))


# ---------------- pure-JAX reference (mirrors the PyTorch module) ----------
def ref_forward(x_ncl, tp):
    W1, B1, W2, B2, W3, B3, Wf1, Bf1, Wf2, Bf2 = tp
    hi = jax.lax.Precision.HIGHEST

    def conv1d(x, w, b, pad):
        y = jax.lax.conv_general_dilated(
            x, w, window_strides=(1,), padding=[(pad, pad)],
            dimension_numbers=("NCH", "OIH", "NCH"), precision=hi)
        return y + b[None, :, None]

    def maxpool2(x):
        b_, c_, l_ = x.shape
        return jnp.max(x.reshape(b_, c_, l_ // 2, 2), axis=-1)

    y = maxpool2(jax.nn.relu(conv1d(x_ncl, W1, B1, 3)))
    y = maxpool2(jax.nn.relu(conv1d(y, W2, B2, 2)))
    y = jax.nn.relu(conv1d(y, W3, B3, 1))
    feat = jnp.max(y, axis=-1)                       # AdaptiveMaxPool1d(1)+Flatten
    h = jax.nn.relu(feat @ Wf1.T + Bf1)
    return h @ Wf2.T + Bf2                           # (B, 2); squeeze(1) no-op


if __name__ == "__main__":
    B, Cin, L = 16, 4, 32
    key = jax.random.PRNGKey(0)
    kx, kp = jax.random.split(key)
    x = jax.random.normal(kx, (B, Cin, L), dtype=jnp.float32)

    torch_params = init_torch_params(kp, Cin)
    kernel_params = to_kernel_params(torch_params)

    out = arousal_cnn_forward(x, kernel_params, block_b=8)   # 2 grid steps
    out = jax.block_until_ready(out)

    ref = jax.block_until_ready(ref_forward(x, torch_params))
    assert out.shape == (B, 2)
    # bf16 MXU operands vs pure-f32 reference: loose tolerance.
    assert jnp.allclose(out, ref, atol=5e-2, rtol=5e-2), (out, ref)

    print("KERNEL_OK")
</pallas_src>

<mosaic_0001>
module attributes {stable_mosaic.version = 11 : i64} {
  func.func @_arousal_kernel(%arg0: i32, %arg1: memref<8x38x4xf32, #tpu.memory_space<vmem>>, %arg2: memref<28x32xbf16, #tpu.memory_space<vmem>>, %arg3: memref<1x32xf32, #tpu.memory_space<vmem>>, %arg4: memref<160x64xbf16, #tpu.memory_space<vmem>>, %arg5: memref<1x64xf32, #tpu.memory_space<vmem>>, %arg6: memref<192x128xbf16, #tpu.memory_space<vmem>>, %arg7: memref<1x128xf32, #tpu.memory_space<vmem>>, %arg8: memref<128x64xbf16, #tpu.memory_space<vmem>>, %arg9: memref<1x64xf32, #tpu.memory_space<vmem>>, %arg10: memref<64x2xbf16, #tpu.memory_space<vmem>>, %arg11: memref<1x2xf32, #tpu.memory_space<vmem>>, %arg12: memref<8x2xf32, #tpu.memory_space<vmem>>, %arg13: memref<256x32xf32, #tpu.memory_space<vmem>>, %arg14: memref<8x20x32xf32, #tpu.memory_space<vmem>>, %arg15: memref<128x64xf32, #tpu.memory_space<vmem>>, %arg16: memref<8x10x64xf32, #tpu.memory_space<vmem>>) attributes {dimension_semantics = [#tpu.dimension_semantics<parallel>], iteration_bounds = array<i64: 2>, scalar_prefetch = 0 : i64, scratch_operands = 4 : i64, tpu.core_type = #tpu.core_type<tc>, window_params = [{transform_indices = @transform_0, window_bounds = array<i64: 8, 38, 4>}, {pipeline_mode = #tpu.pipeline_mode<synchronous>, transform_indices = @transform_1, window_bounds = array<i64: 28, 32>}, {pipeline_mode = #tpu.pipeline_mode<synchronous>, transform_indices = @transform_2, window_bounds = array<i64: 1, 32>}, {pipeline_mode = #tpu.pipeline_mode<synchronous>, transform_indices = @transform_3, window_bounds = array<i64: 160, 64>}, {pipeline_mode = #tpu.pipeline_mode<synchronous>, transform_indices = @transform_4, window_bounds = array<i64: 1, 64>}, {pipeline_mode = #tpu.pipeline_mode<synchronous>, transform_indices = @transform_5, window_bounds = array<i64: 192, 128>}, {pipeline_mode = #tpu.pipeline_mode<synchronous>, transform_indices = @transform_6, window_bounds = array<i64: 1, 128>}, {pipeline_mode = #tpu.pipeline_mode<synchronous>, transform_indices = @transform_7, window_bounds = array<i64: 128, 64>}, {pipeline_mode = #tpu.pipeline_mode<synchronous>, transform_indices = @transform_8, window_bounds = array<i64: 1, 64>}, {pipeline_mode = #tpu.pipeline_mode<synchronous>, transform_indices = @transform_9, window_bounds = array<i64: 64, 2>}, {pipeline_mode = #tpu.pipeline_mode<synchronous>, transform_indices = @transform_10, window_bounds = array<i64: 1, 2>}, {transform_indices = @transform_11, window_bounds = array<i64: 8, 2>}]} {
    %c0 = arith.constant 0 : index
    %c0_0 = arith.constant 0 : index
    %c0_1 = arith.constant 0 : index
    %0 = vector.load %arg1[%c0, %c0_0, %c0_1] : memref<8x38x4xf32, #tpu.memory_space<vmem>>, vector<8x32x4xf32>
    %c0_2 = arith.constant 0 : index
    %c1 = arith.constant 1 : index
    %c0_3 = arith.constant 0 : index
    %1 = vector.load %arg1[%c0_2, %c1, %c0_3] : memref<8x38x4xf32, #tpu.memory_space<vmem>>, vector<8x32x4xf32>
    %c0_4 = arith.constant 0 : index
    %c2 = arith.constant 2 : index
    %c0_5 = arith.constant 0 : index
    %2 = vector.load %arg1[%c0_4, %c2, %c0_5] : memref<8x38x4xf32, #tpu.memory_space<vmem>>, vector<8x32x4xf32>
    %c0_6 = arith.constant 0 : index
    %c3 = arith.constant 3 : index
    %c0_7 = arith.constant 0 : index
    %3 = vector.load %arg1[%c0_6, %c3, %c0_7] : memref<8x38x4xf32, #tpu.memory_space<vmem>>, vector<8x32x4xf32>
    %c0_8 = arith.constant 0 : index
    %c4 = arith.constant 4 : index
    %c0_9 = arith.constant 0 : index
    %4 = vector.load %arg1[%c0_8, %c4, %c0_9] : memref<8x38x4xf32, #tpu.memory_space<vmem>>, vector<8x32x4xf32>
    %c0_10 = arith.constant 0 : index
    %c5 = arith.constant 5 : index
    %c0_11 = arith.constant 0 : index
    %5 = vector.load %arg1[%c0_10, %c5, %c0_11] : memref<8x38x4xf32, #tpu.memory_space<vmem>>, vector<8x32x4xf32>
    %c0_12 = arith.constant 0 : index
    %c6 = arith.constant 6 : index
    %c0_13 = arith.constant 0 : index
    %6 = vector.load %arg1[%c0_12, %c6, %c0_13] : memref<8x38x4xf32, #tpu.memory_space<vmem>>, vector<8x32x4xf32>
    %7 = tpu.concatenate %0, %1, %2, %3, %4, %5, %6 in 2 : vector<8x32x4xf32>, vector<8x32x4xf32>, vector<8x32x4xf32>, vector<8x32x4xf32>, vector<8x32x4xf32>, vector<8x32x4xf32>, vector<8x32x4xf32> -> vector<8x32x28xf32>
    %8 = vector.shape_cast %7 : vector<8x32x28xf32> to vector<256x28xf32>
    %9 = arith.truncf %8 : vector<256x28xf32> to vector<256x28xbf16>
    %c0_14 = arith.constant 0 : index
    %c0_15 = arith.constant 0 : index
    %10 = vector.load %arg2[%c0_14, %c0_15] : memref<28x32xbf16, #tpu.memory_space<vmem>>, vector<28x32xbf16>
    %cst = arith.constant dense<0.000000e+00> : vector<256x32xf32>
    %11 = tpu.matmul %9, %10, %cst {dimension_numbers = #tpu.dot_dimension_numbers<[1], [0], [0], [1], [0, 0, 1, 1], [], []>} : vector<256x28xbf16>, vector<28x32xbf16>, vector<256x32xf32> -> vector<256x32xf32>
    %c0_16 = arith.constant 0 : index
    %c0_17 = arith.constant 0 : index
    %12 = vector.load %arg3[%c0_16, %c0_17] : memref<1x32xf32, #tpu.memory_space<vmem>>, vector<1x32xf32>
    %13 = vector.broadcast %12 : vector<1x32xf32> to vector<256x32xf32>
    %14 = arith.addf %11, %13 : vector<256x32xf32>
    %cst_18 = arith.constant 0.000000e+00 : f32
    %15 = vector.broadcast %cst_18 : f32 to vector<256x32xf32>
    %16 = arith.maximumf %14, %15 : vector<256x32xf32>
    %c0_19 = arith.constant 0 : index
    %c0_20 = arith.constant 0 : index
    %17 = vector.load %arg13[%c0_19, %c0_20] : memref<256x32xf32, #tpu.memory_space<vmem>>, vector<256x32xf32>
    tpu.vector_store %arg13[%c0_19, %c0_20], %16 {strides = array<i32>} : memref<256x32xf32, #tpu.memory_space<vmem>>, vector<256x32xf32>,
    %c0_21 = arith.constant 0 : index
    %c0_22 = arith.constant 0 : index
    %18 = tpu.strided_load %arg13[%c0_21, %c0_22] {strides = array<i32: 2, 1>} : memref<256x32xf32, #tpu.memory_space<vmem>>, vector<128x32xf32>
    %c1_23 = arith.constant 1 : index
    %c0_24 = arith.constant 0 : index
    %19 = tpu.strided_load %arg13[%c1_23, %c0_24] {strides = array<i32: 2, 1>} : memref<256x32xf32, #tpu.memory_space<vmem>>, vector<128x32xf32>
    %20 = arith.maximumf %18, %19 : vector<128x32xf32>
    %cst_25 = arith.constant 0.000000e+00 : f32
    %21 = vector.broadcast %cst_25 : f32 to vector<8x2x32xf32>
    %c0_26 = arith.constant 0 : index
    %c0_27 = arith.constant 0 : index
    %c0_28 = arith.constant 0 : index
    %22 = vector.load %arg14[%c0_26, %c0_27, %c0_28] : memref<8x20x32xf32, #tpu.memory_space<vmem>>, vector<8x2x32xf32>
    tpu.vector_store %arg14[%c0_26, %c0_27, %c0_28], %21 {strides = array<i32>} : memref<8x20x32xf32, #tpu.memory_space<vmem>>, vector<8x2x32xf32>,
    %cst_29 = arith.constant 0.000000e+00 : f32
    %23 = vector.broadcast %cst_29 : f32 to vector<8x2x32xf32>
    %c0_30 = arith.constant 0 : index
    %c18 = arith.constant 18 : index
    %c0_31 = arith.constant 0 : index
    %24 = vector.load %arg14[%c0_30, %c18, %c0_31] : memref<8x20x32xf32, #tpu.memory_space<vmem>>, vector<8x2x32xf32>
    tpu.vector_store %arg14[%c0_30, %c18, %c0_31], %23 {strides = array<i32>} : memref<8x20x32xf32, #tpu.memory_space<vmem>>, vector<8x2x32xf32>,
    %25 = vector.shape_cast %20 : vector<128x32xf32> to vector<8x16x32xf32>
    %c0_32 = arith.constant 0 : index
    %c2_33 = arith.constant 2 : index
    %c0_34 = arith.constant 0 : index
    %26 = vector.load %arg14[%c0_32, %c2_33, %c0_34] : memref<8x20x32xf32, #tpu.memory_space<vmem>>, vector<8x16x32xf32>
    tpu.vector_store %arg14[%c0_32, %c2_33, %c0_34], %25 {strides = array<i32>} : memref<8x20x32xf32, #tpu.memory_space<vmem>>, vector<8x16x32xf32>,
    %c0_35 = arith.constant 0 : index
    %c0_36 = arith.constant 0 : index
    %c0_37 = arith.constant 0 : index
    %27 = vector.load %arg14[%c0_35, %c0_36, %c0_37] : memref<8x20x32xf32, #tpu.memory_space<vmem>>, vector<8x16x32xf32>
    %c0_38 = arith.constant 0 : index
    %c1_39 = arith.constant 1 : index
    %c0_40 = arith.constant 0 : index
    %28 = vector.load %arg14[%c0_38, %c1_39, %c0_40] : memref<8x20x32xf32, #tpu.memory_space<vmem>>, vector<8x16x32xf32>
    %c0_41 = arith.constant 0 : index
    %c2_42 = arith.constant 2 : index
    %c0_43 = arith.constant 0 : index
    %29 = vector.load %arg14[%c0_41, %c2_42, %c0_43] : memref<8x20x32xf32, #tpu.memory_space<vmem>>, vector<8x16x32xf32>
    %c0_44 = arith.constant 0 : index
    %c3_45 = arith.constant 3 : index
    %c0_46 = arith.constant 0 : index
    %30 = vector.load %arg14[%c0_44, %c3_45, %c0_46] : memref<8x20x32xf32, #tpu.memory_space<vmem>>, vector<8x16x32xf32>
    %c0_47 = arith.constant 0 : index
    %c4_48 = arith.constant 4 : index
    %c0_49 = arith.constant 0 : index
    %31 = vector.load %arg14[%c0_47, %c4_48, %c0_49] : memref<8x20x32xf32, #tpu.memory_space<vmem>>, vector<8x16x32xf32>
    %32 = tpu.concatenate %27, %28, %29, %30, %31 in 2 : vector<8x16x32xf32>, vector<8x16x32xf32>, vector<8x16x32xf32>, vector<8x16x32xf32>, vector<8x16x32xf32> -> vector<8x16x160xf32>
    %33 = vector.shape_cast %32 : vector<8x16x160xf32> to vector<128x160xf32>
    %34 = arith.truncf %33 : vector<128x160xf32> to vector<128x160xbf16>
    %c0_50 = arith.constant 0 : index
    %c0_51 = arith.constant 0 : index
    %35 = vector.load %arg4[%c0_50, %c0_51] : memref<160x64xbf16, #tpu.memory_space<vmem>>, vector<160x64xbf16>
    %cst_52 = arith.constant dense<0.000000e+00> : vector<128x64xf32>
    %36 = tpu.matmul %34, %35, %cst_52 {dimension_numbers = #tpu.dot_dimension_numbers<[1], [0], [0], [1], [0, 0, 1, 1], [], []>} : vector<128x160xbf16>, vector<160x64xbf16>, vector<128x64xf32> -> vector<128x64xf32>
    %c0_53 = arith.constant 0 : index
    %c0_54 = arith.constant 0 : index
    %37 = vector.load %arg5[%c0_53, %c0_54] : memref<1x64xf32, #tpu.memory_space<vmem>>, vector<1x64xf32>
    %38 = vector.broadcast %37 : vector<1x64xf32> to vector<128x64xf32>
    %39 = arith.addf %36, %38 : vector<128x64xf32>
    %cst_55 = arith.constant 0.000000e+00 : f32
    %40 = vector.broadcast %cst_55 : f32 to vector<128x64xf32>
    %41 = arith.maximumf %39, %40 : vector<128x64xf32>
    %c0_56 = arith.constant 0 : index
    %c0_57 = arith.constant 0 : index
    %42 = vector.load %arg15[%c0_56, %c0_57] : memref<128x64xf32, #tpu.memory_space<vmem>>, vector<128x64xf32>
    tpu.vector_store %arg15[%c0_56, %c0_57], %41 {strides = array<i32>} : memref<128x64xf32, #tpu.memory_space<vmem>>, vector<128x64xf32>,
    %c0_58 = arith.constant 0 : index
    %c0_59 = arith.constant 0 : index
    %43 = tpu.strided_load %arg15[%c0_58, %c0_59] {strides = array<i32: 2, 1>} : memref<128x64xf32, #tpu.memory_space<vmem>>, vector<64x64xf32>
    %c1_60 = arith.constant 1 : index
    %c0_61 = arith.constant 0 : index
    %44 = tpu.strided_load %arg15[%c1_60, %c0_61] {strides = array<i32: 2, 1>} : memref<128x64xf32, #tpu.memory_space<vmem>>, vector<64x64xf32>
    %45 = arith.maximumf %43, %44 : vector<64x64xf32>
    %cst_62 = arith.constant 0.000000e+00 : f32
    %46 = vector.broadcast %cst_62 : f32 to vector<8x1x64xf32>
    %c0_63 = arith.constant 0 : index
    %c0_64 = arith.constant 0 : index
    %c0_65 = arith.constant 0 : index
    %47 = vector.load %arg16[%c0_63, %c0_64, %c0_65] : memref<8x10x64xf32, #tpu.memory_space<vmem>>, vector<8x1x64xf32>
    tpu.vector_store %arg16[%c0_63, %c0_64, %c0_65], %46 {strides = array<i32>} : memref<8x10x64xf32, #tpu.memory_space<vmem>>, vector<8x1x64xf32>,
    %cst_66 = arith.constant 0.000000e+00 : f32
    %48 = vector.broadcast %cst_66 : f32 to vector<8x1x64xf32>
    %c0_67 = arith.constant 0 : index
    %c9 = arith.constant 9 : index
    %c0_68 = arith.constant 0 : index
    %49 = vector.load %arg16[%c0_67, %c9, %c0_68] : memref<8x10x64xf32, #tpu.memory_space<vmem>>, vector<8x1x64xf32>
    tpu.vector_store %arg16[%c0_67, %c9, %c0_68], %48 {strides = array<i32>} : memref<8x10x64xf32, #tpu.memory_space<vmem>>, vector<8x1x64xf32>,
    %50 = vector.shape_cast %45 : vector<64x64xf32> to vector<8x8x64xf32>
    %c0_69 = arith.constant 0 : index
    %c1_70 = arith.constant 1 : index
    %c0_71 = arith.constant 0 : index
    %51 = vector.load %arg16[%c0_69, %c1_70, %c0_71] : memref<8x10x64xf32, #tpu.memory_space<vmem>>, vector<8x8x64xf32>
    tpu.vector_store %arg16[%c0_69, %c1_70, %c0_71], %50 {strides = array<i32>} : memref<8x10x64xf32, #tpu.memory_space<vmem>>, vector<8x8x64xf32>,
    %c0_72 = arith.constant 0 : index
    %c0_73 = arith.constant 0 : index
    %c0_74 = arith.constant 0 : index
    %52 = vector.load %arg16[%c0_72, %c0_73, %c0_74] : memref<8x10x64xf32, #tpu.memory_space<vmem>>, vector<8x8x64xf32>
    %c0_75 = arith.constant 0 : index
    %c1_76 = arith.constant 1 : index
    %c0_77 = arith.constant 0 : index
    %53 = vector.load %arg16[%c0_75, %c1_76, %c0_77] : memref<8x10x64xf32, #tpu.memory_space<vmem>>, vector<8x8x64xf32>
    %c0_78 = arith.constant 0 : index
    %c2_79 = arith.constant 2 : index
    %c0_80 = arith.constant 0 : index
    %54 = vector.load %arg16[%c0_78, %c2_79, %c0_80] : memref<8x10x64xf32, #tpu.memory_space<vmem>>, vector<8x8x64xf32>
    %55 = tpu.concatenate %52, %53, %54 in 2 : vector<8x8x64xf32>, vector<8x8x64xf32>, vector<8x8x64xf32> -> vector<8x8x192xf32>
    %56 = vector.shape_cast %55 : vector<8x8x192xf32> to vector<64x192xf32>
    %57 = arith.truncf %56 : vector<64x192xf32> to vector<64x192xbf16>
    %c0_81 = arith.constant 0 : index
    %c0_82 = arith.constant 0 : index
    %58 = vector.load %arg6[%c0_81, %c0_82] : memref<192x128xbf16, #tpu.memory_space<vmem>>, vector<192x128xbf16>
    %cst_83 = arith.constant dense<0.000000e+00> : vector<64x128xf32>
    %59 = tpu.matmul %57, %58, %cst_83 {dimension_numbers = #tpu.dot_dimension_numbers<[1], [0], [0], [1], [0, 0, 1, 1], [], []>} : vector<64x192xbf16>, vector<192x128xbf16>, vector<64x128xf32> -> vector<64x128xf32>
    %c0_84 = arith.constant 0 : index
    %c0_85 = arith.constant 0 : index
    %60 = vector.load %arg7[%c0_84, %c0_85] : memref<1x128xf32, #tpu.memory_space<vmem>>, vector<1x128xf32>
    %61 = vector.broadcast %60 : vector<1x128xf32> to vector<64x128xf32>
    %62 = arith.addf %59, %61 : vector<64x128xf32>
    %cst_86 = arith.constant 0.000000e+00 : f32
    %63 = vector.broadcast %cst_86 : f32 to vector<64x128xf32>
    %64 = arith.maximumf %62, %63 : vector<64x128xf32>
    %65 = vector.shape_cast %64 : vector<64x128xf32> to vector<8x8x128xf32>
    %cst_87 = arith.constant dense<0xFF800000> : vector<8x128xf32>
    %66 = vector.multi_reduction <maximumf>, %65, %cst_87 [1] : vector<8x8x128xf32> to vector<8x128xf32>
    %67 = arith.truncf %66 : vector<8x128xf32> to vector<8x128xbf16>
    %c0_88 = arith.constant 0 : index
    %c0_89 = arith.constant 0 : index
    %68 = vector.load %arg8[%c0_88, %c0_89] : memref<128x64xbf16, #tpu.memory_space<vmem>>, vector<128x64xbf16>
    %cst_90 = arith.constant dense<0.000000e+00> : vector<8x64xf32>
    %69 = tpu.matmul %67, %68, %cst_90 {dimension_numbers = #tpu.dot_dimension_numbers<[1], [0], [0], [1], [0, 0, 1, 1], [], []>} : vector<8x128xbf16>, vector<128x64xbf16>, vector<8x64xf32> -> vector<8x64xf32>
    %c0_91 = arith.constant 0 : index
    %c0_92 = arith.constant 0 : index
    %70 = vector.load %arg9[%c0_91, %c0_92] : memref<1x64xf32, #tpu.memory_space<vmem>>, vector<1x64xf32>
    %71 = vector.broadcast %70 : vector<1x64xf32> to vector<8x64xf32>
    %72 = arith.addf %69, %71 : vector<8x64xf32>
    %cst_93 = arith.constant 0.000000e+00 : f32
    %73 = vector.broadcast %cst_93 : f32 to vector<8x64xf32>
    %74 = arith.maximumf %72, %73 : vector<8x64xf32>
    %75 = arith.truncf %74 : vector<8x64xf32> to vector<8x64xbf16>
    %c0_94 = arith.constant 0 : index
    %c0_95 = arith.constant 0 : index
    %76 = vector.load %arg10[%c0_94, %c0_95] : memref<64x2xbf16, #tpu.memory_space<vmem>>, vector<64x2xbf16>
    %cst_96 = arith.constant dense<0.000000e+00> : vector<8x2xf32>
    %77 = tpu.matmul %75, %76, %cst_96 {dimension_numbers = #tpu.dot_dimension_numbers<[1], [0], [0], [1], [0, 0, 1, 1], [], []>} : vector<8x64xbf16>, vector<64x2xbf16>, vector<8x2xf32> -> vector<8x2xf32>
    %c0_97 = arith.constant 0 : index
    %c0_98 = arith.constant 0 : index
    %78 = vector.load %arg11[%c0_97, %c0_98] : memref<1x2xf32, #tpu.memory_space<vmem>>, vector<1x2xf32>
    %79 = vector.broadcast %78 : vector<1x2xf32> to vector<8x2xf32>
    %80 = arith.addf %77, %79 : vector<8x2xf32>
    %c0_99 = arith.constant 0 : index
    %c0_100 = arith.constant 0 : index
    %81 = vector.load %arg12[%c0_99, %c0_100] : memref<8x2xf32, #tpu.memory_space<vmem>>, vector<8x2xf32>
    tpu.vector_store %arg12[%c0_99, %c0_100], %80 {strides = array<i32>} : memref<8x2xf32, #tpu.memory_space<vmem>>, vector<8x2xf32>,
    return
  }
  func.func @transform_0(%arg0: i32) -> (i32, i32, i32) {
    %c0_i32 = arith.constant 0 : i32
    %c0_i32_0 = arith.constant 0 : i32
    %c0_i32_1 = arith.constant 0 : i32
    return %arg0, %c0_i32, %c0_i32_0 : i32, i32, i32
  }
  func.func @transform_1(%arg0: i32) -> (i32, i32) {
    %c0_i32 = arith.constant 0 : i32
    %c0_i32_0 = arith.constant 0 : i32
    %c0_i32_1 = arith.constant 0 : i32
    return %c0_i32, %c0_i32_0 : i32, i32
  }
  func.func @transform_2(%arg0: i32) -> (i32, i32) {
    %c0_i32 = arith.constant 0 : i32
    %c0_i32_0 = arith.constant 0 : i32
    %c0_i32_1 = arith.constant 0 : i32
    return %c0_i32, %c0_i32_0 : i32, i32
  }
  func.func @transform_3(%arg0: i32) -> (i32, i32) {
    %c0_i32 = arith.constant 0 : i32
    %c0_i32_0 = arith.constant 0 : i32
    %c0_i32_1 = arith.constant 0 : i32
    return %c0_i32, %c0_i32_0 : i32, i32
  }
  func.func @transform_4(%arg0: i32) -> (i32, i32) {
    %c0_i32 = arith.constant 0 : i32
    %c0_i32_0 = arith.constant 0 : i32
    %c0_i32_1 = arith.constant 0 : i32
    return %c0_i32, %c0_i32_0 : i32, i32
  }
  func.func @transform_5(%arg0: i32) -> (i32, i32) {
    %c0_i32 = arith.constant 0 : i32
    %c0_i32_0 = arith.constant 0 : i32
    %c0_i32_1 = arith.constant 0 : i32
    return %c0_i32, %c0_i32_0 : i32, i32
  }
  func.func @transform_6(%arg0: i32) -> (i32, i32) {
    %c0_i32 = arith.constant 0 : i32
    %c0_i32_0 = arith.constant 0 : i32
    %c0_i32_1 = arith.constant 0 : i32
    return %c0_i32, %c0_i32_0 : i32, i32
  }
  func.func @transform_7(%arg0: i32) -> (i32, i32) {
    %c0_i32 = arith.constant 0 : i32
    %c0_i32_0 = arith.constant 0 : i32
    %c0_i32_1 = arith.constant 0 : i32
    return %c0_i32, %c0_i32_0 : i32, i32
  }
  func.func @transform_8(%arg0: i32) -> (i32, i32) {
    %c0_i32 = arith.constant 0 : i32
    %c0_i32_0 = arith.constant 0 : i32
    %c0_i32_1 = arith.constant 0 : i32
    return %c0_i32, %c0_i32_0 : i32, i32
  }
  func.func @transform_9(%arg0: i32) -> (i32, i32) {
    %c0_i32 = arith.constant 0 : i32
    %c0_i32_0 = arith.constant 0 : i32
    %c0_i32_1 = arith.constant 0 : i32
    return %c0_i32, %c0_i32_0 : i32, i32
  }
  func.func @transform_10(%arg0: i32) -> (i32, i32) {
    %c0_i32 = arith.constant 0 : i32
    %c0_i32_0 = arith.constant 0 : i32
    %c0_i32_1 = arith.constant 0 : i32
    return %c0_i32, %c0_i32_0 : i32, i32
  }
  func.func @transform_11(%arg0: i32) -> (i32, i32) {
    %c0_i32 = arith.constant 0 : i32
    %c0_i32_0 = arith.constant 0 : i32
    return %arg0, %c0_i32 : i32, i32
  }
}

</mosaic_0001>

<bundles_post_ra>
// kernel: tpu_custom_call.1
= control target key start
LH: loop header
LB: loop body
LE: loop exit
PB: predicated region body
PF: predicated region fallthrough
CT: control target
= control target key end

     0   :  { %s4188_s17 = smov 0   ;;  %s5345_s0 = inlined_call_operand.vmem [shape: f32[16,38,4], index: 0, kind: input, shape index: {}]   ;;  %s5346_s1 = inlined_call_operand.vmem [shape: bf16[28,32], index: 1, kind: input, shape index: {}]   ;;  %s5347_s2 = inlined_call_operand.vmem [shape: f32[1,32], index: 2, kind: input, shape index: {}]   ;;  %s5348_s3 = inlined_call_operand.vmem [shape: bf16[160,64], index: 3, kind: input, shape index: {}]   ;;  %s5349_s4 = inlined_call_operand.vmem [shape: f32[1,64], index: 4, kind: input, shape index: {}]   ;;  %s5350_s5 = inlined_call_operand.vmem [shape: bf16[192,128], index: 5, kind: input, shape index: {}]   ;;  %s5351_s6 = inlined_call_operand.vmem [shape: f32[1,128], index: 6, kind: input, shape index: {}]   ;;  %s5352_s7 = inlined_call_operand.vmem [shape: bf16[128,64], index: 7, kind: input, shape index: {}]   ;;  %s5353_s8 = inlined_call_operand.vmem [shape: f32[1,64], index: 8, kind: input, shape index: {}]   ;;  %s5354_s9 = inlined_call_operand.vmem [shape: bf16[64,2], index: 9, kind: input, shape index: {}]   ;;  %s5355_s10 = inlined_call_operand.vmem [shape: f32[1,2], index: 10, kind: input, shape index: {}]   ;;  %s5356_s11 = inlined_call_operand.vmem [shape: f32[16,2], index: 11, kind: output, shape index: {}]  }
   0x1 LB: > { %s4194_s18 = sadd.s32 4294967295, %s4114_s17   ;;  %p3254_p0 = scmp.ge.s32.totalorder %s4114_s17, 1  ;;  %s4114_s17 = sphi %s4188_s17, %s21_s17  }
   0x2   : > { %p339_p1 = scmp.lt.s32.totalorder %s4114_s17, 3 }
   0x4   : > { %p340_p2 = pnand %p3254_p0, %p339_p1 }
   0x5   : > { %s3255_s19 = sshll.u32 (!%p340_p2), %s4194_s18, 3  ;;  %s4116_s24 = smov (!%p340_p2), 8   ;;  %vm1668_vm0 = vcmask (!%p340_p2), 1045504   ;;  %vm1383_vm1 = vcmask (!%p340_p2), 31744   ;;  %vm1416_vm2 = vcmask (!%p340_p2), 64512   ;;  %vm1449_vm3 = vcmask (!%p340_p2), 97280  }
   0x6   : > { %343 = sbr.rel (%p340_p2) target bundleno = 1721 (0x6b9), region = 64  ;;  %p380_p3 = scmp.lt.s32.totalorder (!%p340_p2), %s3255_s19, 15  ;;  %vm1482_vm4 = vcmask (!%p340_p2), 130048   ;;  %vm1515_vm5 = vcmask (!%p340_p2), 162816   ;;  %vm1548_vm6 = vcmask (!%p340_p2), 195584   ;;  %vm1619_vm7 = vcmask (!%p340_p2), 228352  }
   0x7   : > { %s4117_s25 = smov (!%p340_p2), 4   ;;  %s4118_s26 = smov (!%p340_p2), 12   ;;  %vm1977_vm8 = vcmask (!%p340_p2), 254976   ;;  %vm1865_vm9 = vcmask (!%p340_p2), 261120   ;;  %vm2298_vm10 = vcmask (!%p340_p2), 523264   ;;  %vm2315_vm11 = vcmask (!%p340_p2), 785408  }
   0x8   : > { %s4119_s27 = smov (!%p340_p2), 16   ;;  %s4120_s28 = smov (!%p340_p2), 20   ;;  %vm2627_vm12 = vcmask (!%p340_p2), 516096   ;;  %vm3007_vm13 = vcmask (!%p340_p2), 1041409   ;;  %vm4127_vm14 = vmmov (!%p340_p2), 0   ;;  %vm3009_vm15 = vcmask (!%p340_p2), 1042434  }
   0x9   : > { %s4121_s29 = smov (!%p340_p2), 24   ;;  %s4124_s22 = smov (!%p340_p2), 64  }
   0xa   : > { %p386_p4 = scmp.lt.s32.totalorder (!%p340_p2), %s4194_s18, 1 }
   0xd   : > { %s5358_s19 = smov (!%p380_p3, %s3255_s19), 15  ;;  %s5360_s18 = smov (!%p386_p4, %s4194_s18), 1 }
   0xe   : > { %s3431_s20 = smul.u32 40, %s5358_s19 }
  0x10   : > { %s4202_s23 = scalar_lea.vmem %s5345_s0, %s3431_s20 }
  0x11   : > { %v455_v0 = vld [vmem:[%s4202_s23 + $0x2] sm:$0xff]  ;;  %v456_v1 = vld [vmem:[%s4202_s23 + $0xa] sm:$0xff]  ;;  %v457_v5 = vld [vmem:[%s4202_s23 + $0x12] sm:$0xff] }
  0x12   : > { %v423_v2 = vld [vmem:[%s4202_s23 + $0x1] sm:$0xff]  ;;  %v3462_v3 = vpack.i.bf16 %v456_v1, %v455_v0  ;;  %v424_v4 = vld [vmem:[%s4202_s23 + $0x9] sm:$0xff]  ;;  %v425_v8 = vld [vmem:[%s4202_s23 + $0x11] sm:$0xff] }
  0x13   : > { %v458_v6 = vld [vmem:[%s4202_s23 + $0x1a] sm:$0xff]  ;;  %v3452_v7 = vpack.i.bf16 %v424_v4, %v423_v2  ;;  %v487_v14 = vld [vmem:[%s4202_s23 + $0x3] sm:$0xff]  ;;  %v488_v15 = vld [vmem:[%s4202_s23 + $0xb] sm:$0xff] }
  0x14   : > { %v426_v9 = vld [vmem:[%s4202_s23 + $0x19] sm:$0xff]  ;;  %3463 = vrot.lane.b32.xlu1 %v3462_v3, %s4116_s24  ;;  %v3467_v10 = vpack.i.bf16 %v458_v6, %v457_v5  ;;  %v3472_v17 = vpack.i.bf16 %v488_v15, %v487_v14  ;;  %v519_v20 = vld [vmem:[%s4202_s23 + $0x4] sm:$0xff]  ;;  %v520_v21 = vld [vmem:[%s4202_s23 + $0xc] sm:$0xff] }
  0x15   : > { %3453 = vrot.lane.b32.xlu0 %v3452_v7, %s4117_s25  ;;  %v3457_v11 = vpack.i.bf16 %v426_v9, %v425_v8  ;;  %v489_v12 = vld [vmem:[%s4202_s23 + $0x13] sm:$0xff]  ;;  %v490_v13 = vld [vmem:[%s4202_s23 + $0x1b] sm:$0xff]  ;;  %v3482_v23 = vpack.i.bf16 %v520_v21, %v519_v20  ;;  %v551_v26 = vld [vmem:[%s4202_s23 + $0x5] sm:$0xff] }
  0x16   : > { %v3477_v16 = vpack.i.bf16 %v490_v13, %v489_v12  ;;  %v521_v18 = vld [vmem:[%s4202_s23 + $0x14] sm:$0xff]  ;;  %v522_v19 = vld [vmem:[%s4202_s23 + $0x1c] sm:$0xff]  ;;  %v583_v32 = vld [vmem:[%s4202_s23 + $0x6] sm:$0xff] }
  0x17   : > { %v3487_v22 = vpack.i.bf16 %v522_v19, %v521_v18  ;;  %v553_v24 = vld [vmem:[%s4202_s23 + $0x15] sm:$0xff]  ;;  %v554_v25 = vld [vmem:[%s4202_s23 + $0x1d] sm:$0xff]  ;;  %v552_v27 = vld [vmem:[%s4202_s23 + $0xd] sm:$0xff] }
  0x18   : > { %3468 = vrot.lane.b32.xlu1 %v3467_v10, %s4116_s24  ;;  %v3497_v28 = vpack.i.bf16 %v554_v25, %v553_v24  ;;  %v3492_v29 = vpack.i.bf16 %v552_v27, %v551_v26  ;;  %v585_v30 = vld [vmem:[%s4202_s23 + $0x16] sm:$0xff]  ;;  %v586_v31 = vld [vmem:[%s4202_s23 + $0x1e] sm:$0xff]  ;;  %v584_v33 = vld [vmem:[%s4202_s23 + $0xe] sm:$0xff] }
  0x19   : > { %3458 = vrot.lane.b32.xlu0 %v3457_v11, %s4117_s25  ;;  %v3507_v34 = vpack.i.bf16 %v586_v31, %v585_v30  ;;  %v3502_v35 = vpack.i.bf16 %v584_v33, %v583_v32  ;;  %v429_v36 = vld [vmem:[%s4202_s23 + $0x39] sm:$0xff]  ;;  %v430_v37 = vld [vmem:[%s4202_s23 + $0x41] sm:$0xff]  ;;  %v427_v38 = vld [vmem:[%s4202_s23 + $0x29] sm:$0xff] }
  0x1a   : > { %v428_v39 = vld [vmem:[%s4202_s23 + $0x31] sm:$0xff]  ;;  %v3517_v40 = vpack.i.bf16 %v430_v37, %v429_v36  ;;  %v461_v42 = vld [vmem:[%s4202_s23 + $0x3a] sm:$0xff]  ;;  %v462_v43 = vld [vmem:[%s4202_s23 + $0x42] sm:$0xff] }
  0x1b   : > { %v3512_v41 = vpack.i.bf16 %v428_v39, %v427_v38  ;;  %v459_v44 = vld [vmem:[%s4202_s23 + $0x2a] sm:$0xff]  ;;  %v460_v45 = vld [vmem:[%s4202_s23 + $0x32] sm:$0xff]  ;;  %v3527_v46 = vpack.i.bf16 %v462_v43, %v461_v42  ;;  %v493_v48 = vld [vmem:[%s4202_s23 + $0x3b] sm:$0xff] }
  0x1c   : > { %3478 = vrot.lane.b32.xlu1 %v3477_v16, %s4118_s26  ;;  %v3522_v47 = vpack.i.bf16 %v460_v45, %v459_v44  ;;  %v494_v49 = vld [vmem:[%s4202_s23 + $0x43] sm:$0xff]  ;;  %v491_v50 = vld [vmem:[%s4202_s23 + $0x2b] sm:$0xff]  ;;  %v492_v51 = vld [vmem:[%s4202_s23 + $0x33] sm:$0xff] }
  0x1d   : > { %3473 = vrot.lane.b32.xlu0 %v3472_v17, %s4118_s26  ;;  %v3537_v52 = vpack.i.bf16 %v494_v49, %v493_v48  ;;  %v3532_v53 = vpack.i.bf16 %v492_v51, %v491_v50  ;;  %v525_v54 = vld [vmem:[%s4202_s23 + $0x3c] sm:$0xff]  ;;  %v526_v55 = vld [vmem:[%s4202_s23 + $0x44] sm:$0xff]  ;;  %v523_v56 = vld [vmem:[%s4202_s23 + $0x2c] sm:$0xff] }
  0x1e   : > { %v524_v57 = vld [vmem:[%s4202_s23 + $0x34] sm:$0xff]  ;;  %v3547_v58 = vpack.i.bf16 %v526_v55, %v525_v54  ;;  %v557_v60 = vld [vmem:[%s4202_s23 + $0x3d] sm:$0xff]  ;;  %v558_v61 = vld [vmem:[%s4202_s23 + $0x45] sm:$0xff] }
  0x1f   : > { %v3542_v59 = vpack.i.bf16 %v524_v57, %v523_v56  ;;  %v555_v62 = vld [vmem:[%s4202_s23 + $0x2d] sm:$0xff]  ;;  %v556_v63 = vld [vmem:[%s4202_s23 + $0x35] sm:$0xff]  ;;  %v3557_v0 = vpack.i.bf16 %v558_v61, %v557_v60  ;;  %v589_v2 = vld [vmem:[%s4202_s23 + $0x3e] sm:$0xff] }
  0x20   : > { %3488 = vrot.lane.b32.xlu1 %v3487_v22, %s4119_s27  ;;  %v3552_v1 = vpack.i.bf16 %v556_v63, %v555_v62  ;;  %v590_v3 = vld [vmem:[%s4202_s23 + $0x46] sm:$0xff]  ;;  %v587_v4 = vld [vmem:[%s4202_s23 + $0x2e] sm:$0xff]  ;;  %v588_v5 = vld [vmem:[%s4202_s23 + $0x36] sm:$0xff] }
  0x21   : > { %3483 = vrot.lane.b32.xlu0 %v3482_v23, %s4119_s27  ;;  %v3567_v6 = vpack.i.bf16 %v590_v3, %v589_v2  ;;  %v3562_v7 = vpack.i.bf16 %v588_v5, %v587_v4  ;;  %v433_v8 = vld [vmem:[%s4202_s23 + $0x61] sm:$0xff]  ;;  %v434_v9 = vld [vmem:[%s4202_s23 + $0x69] sm:$0xff]  ;;  %v431_v10 = vld [vmem:[%s4202_s23 + $0x51] sm:$0xff] }
  0x22   : > { %v432_v11 = vld [vmem:[%s4202_s23 + $0x59] sm:$0xff]  ;;  %v3577_v13 = vpack.i.bf16 %v434_v9, %v433_v8  ;;  %v465_v15 = vld [vmem:[%s4202_s23 + $0x62] sm:$0xff]  ;;  %v466_v16 = vld [vmem:[%s4202_s23 + $0x6a] sm:$0xff] }
  0x23   : > { %v4072_v12 = vld [vmem:[%s5346_s1] sm:$0xff]   ;;  %v3572_v14 = vpack.i.bf16 %v432_v11, %v431_v10  ;;  %v4073_v17 = vld [vmem:[%s5346_s1 + $0x8] sm:$0x3f]   ;;  %v463_v18 = vld [vmem:[%s4202_s23 + $0x52] sm:$0xff]  ;;  %v3587_v21 = vpack.i.bf16 %v466_v16, %v465_v15 }
  0x24   : > { %3498 = vrot.lane.b32.xlu1 %v3497_v28, %s4120_s28  ;;  %3362 = vmatprep.subr.bf16.mxu0 %v4072_v12  ;;  %v464_v19 = vld [vmem:[%s4202_s23 + $0x5a] sm:$0xff]  ;;  %v1670_v20 = vsel %vm1668_vm0, %v4073_v17, 0  ;;  %v497_v23 = vld [vmem:[%s4202_s23 + $0x63] sm:$0xff]  ;;  %v498_v24 = vld [vmem:[%s4202_s23 + $0x6b] sm:$0xff] }
  0x25   : > { %3493 = vrot.lane.b32.xlu0 %v3492_v29, %s4120_s28  ;;  %3363 = vmatpush3.bf16.msra.mxu0 %v4072_v12  ;;  %v3582_v22 = vpack.i.bf16 %v464_v19, %v463_v18  ;;  %v495_v25 = vld [vmem:[%s4202_s23 + $0x53] sm:$0xff]  ;;  %v496_v26 = vld [vmem:[%s4202_s23 + $0x5b] sm:$0xff]  ;;  %v3597_v27 = vpack.i.bf16 %v498_v24, %v497_v23  ;;  %v529_v29 = vld [vmem:[%s4202_s23 + $0x64] sm:$0xff] }
  0x26   : > { %3430 = vmatprep.subr.msk.bf16.mxu0 %vm1668_vm0, %v4073_v17  ;;  %v3592_v28 = vpack.i.bf16 %v496_v26, %v495_v25  ;;  %v530_v30 = vld [vmem:[%s4202_s23 + $0x6c] sm:$0xff]  ;;  %v527_v31 = vld [vmem:[%s4202_s23 + $0x54] sm:$0xff]  ;;  %v528_v32 = vld [vmem:[%s4202_s23 + $0x5c] sm:$0xff]  ;;  %vm3011_vm0 = vcmask 1043459  }
  0x27   : > { %v3607_v33 = vpack.i.bf16 %v530_v30, %v529_v29  ;;  %v562_v36 = vld [vmem:[%s4202_s23 + $0x6d] sm:$0xff]  ;;  %v559_v37 = vld [vmem:[%s4202_s23 + $0x55] sm:$0xff]  ;;  %v560_v38 = vld [vmem:[%s4202_s23 + $0x5d] sm:$0xff] }
  0x28   : > { %3508 = vrot.lane.b32.xlu1 %v3507_v34, %s4121_s29  ;;  %v3602_v34 = vpack.i.bf16 %v528_v32, %v527_v31  ;;  %v594_v42 = vld [vmem:[%s4202_s23 + $0x6e] sm:$0xff]  ;;  %v591_v43 = vld [vmem:[%s4202_s23 + $0x56] sm:$0xff]  ;;  %v592_v44 = vld [vmem:[%s4202_s23 + $0x5e] sm:$0xff] }
  0x29   : > { %3503 = vrot.lane.b32.xlu0 %v3502_v35, %s4121_s29  ;;  %3365 = vmatpush3.bf16.msra.mxu0 %v1670_v20  ;;  %v561_v35 = vld [vmem:[%s4202_s23 + $0x65] sm:$0xff]  ;;  %v438_v48 = vld [vmem:[%s4202_s23 + $0x91] sm:$0xff]  ;;  %v435_v49 = vld [vmem:[%s4202_s23 + $0x79] sm:$0xff] }
  0x2a   : > { %v3617_v39 = vpack.i.bf16 %v562_v36, %v561_v35  ;;  %v436_v50 = vld [vmem:[%s4202_s23 + $0x81] sm:$0xff]  ;;  %v469_v51 = vld [vmem:[%s4202_s23 + $0x8a] sm:$0xff]  ;;  %v598_v12 = vld [vmem:[%s4202_s23 + $0x96] sm:$0xff] }
  0x2b   : > { %v467_v54 = vld [vmem:[%s4202_s23 + $0x7a] sm:$0xff]  ;;  %v468_v55 = vld [vmem:[%s4202_s23 + $0x82] sm:$0xff]  ;;  %v3632_v56 = vpack.i.bf16 %v436_v50, %v435_v49  ;;  %v501_v57 = vld [vmem:[%s4202_s23 + $0x8b] sm:$0xff] }
  0x2c   : > { %3518 = vrot.lane.b32.xlu1 %v3517_v40, %s4117_s25  ;;  %v3612_v40 = vpack.i.bf16 %v560_v38, %v559_v37  ;;  %v499_v60 = vld [vmem:[%s4202_s23 + $0x7b] sm:$0xff]  ;;  %v500_v61 = vld [vmem:[%s4202_s23 + $0x83] sm:$0xff]  ;;  %v3642_v62 = vpack.i.bf16 %v468_v55, %v467_v54  ;;  %v533_v63 = vld [vmem:[%s4202_s23 + $0x8c] sm:$0xff] }
  0x2d   : > { %3513 = vrot.lane.b32.xlu0 %v3512_v41, %s4117_s25  ;;  %v593_v41 = vld [vmem:[%s4202_s23 + $0x66] sm:$0xff]  ;;  %v531_v2 = vld [vmem:[%s4202_s23 + $0x7c] sm:$0xff]  ;;  %v3652_v4 = vpack.i.bf16 %v500_v61, %v499_v60  ;;  %v597_v11 = vld [vmem:[%s4202_s23 + $0x8e] sm:$0xff] }
  0x2e   : > { %v3627_v45 = vpack.i.bf16 %v594_v42, %v593_v41  ;;  %v532_v3 = vld [vmem:[%s4202_s23 + $0x84] sm:$0xff]  ;;  %v565_v5 = vld [vmem:[%s4202_s23 + $0x8d] sm:$0xff]  ;;  %v3687_v17 = vpack.i.bf16 %v598_v12, %v597_v11  ;;  %v442_v20 = vld [vmem:[%s4202_s23 + $0xb9] sm:$0xff] }
  0x2f   : > { %v563_v8 = vld [vmem:[%s4202_s23 + $0x7d] sm:$0xff]  ;;  %v564_v9 = vld [vmem:[%s4202_s23 + $0x85] sm:$0xff]  ;;  %v3662_v10 = vpack.i.bf16 %v532_v3, %v531_v2  ;;  %v441_v19 = vld [vmem:[%s4202_s23 + $0xb1] sm:$0xff] }
  0x30   : > { %3528 = vrot.lane.b32.xlu1 %v3527_v46, %s4116_s24  ;;  %v3622_v46 = vpack.i.bf16 %v592_v44, %v591_v43  ;;  %v595_v15 = vld [vmem:[%s4202_s23 + $0x7e] sm:$0xff]  ;;  %v596_v16 = vld [vmem:[%s4202_s23 + $0x86] sm:$0xff]  ;;  %v3697_v23 = vpack.i.bf16 %v442_v20, %v441_v19  ;;  %v473_v25 = vld [vmem:[%s4202_s23 + $0xb2] sm:$0xff] }
  0x31   : > { %3523 = vrot.lane.b32.xlu0 %v3522_v47, %s4116_s24  ;;  %v437_v47 = vld [vmem:[%s4202_s23 + $0x89] sm:$0xff]  ;;  %v3682_v18 = vpack.i.bf16 %v596_v16, %v595_v15  ;;  %v474_v26 = vld [vmem:[%s4202_s23 + $0xba] sm:$0xff]  ;;  %v476_v3 = vld [vmem:[%s4202_s23 + $0xd2] sm:$0xff] }
  0x32   : > { %v3707_v29 = vpack.i.bf16 %v474_v26, %v473_v25  ;;  %v505_v31 = vld [vmem:[%s4202_s23 + $0xb3] sm:$0xff]  ;;  %v506_v32 = vld [vmem:[%s4202_s23 + $0xbb] sm:$0xff]  ;;  %v475_v2 = vld [vmem:[%s4202_s23 + $0xca] sm:$0xff] }
  0x33   : > { %v3717_v35 = vpack.i.bf16 %v506_v32, %v505_v31  ;;  %v537_v37 = vld [vmem:[%s4202_s23 + $0xb4] sm:$0xff]  ;;  %v538_v38 = vld [vmem:[%s4202_s23 + $0xbc] sm:$0xff]  ;;  %v4414_v12 = vld [vmem:[%s4202_s23 + $0xe4] sm:$0xff] }
  0x34   : > { %3538 = vrot.lane.b32.xlu1 %v3537_v52, %s4118_s26  ;;  %v470_v52 = vld [vmem:[%s4202_s23 + $0x92] sm:$0xff]  ;;  %v3727_v41 = vpack.i.bf16 %v538_v38, %v537_v37  ;;  %v570_v44 = vld [vmem:[%s4202_s23 + $0xbd] sm:$0xff]  ;;  %v4445_v25 = vld [vmem:[%s4202_s23 + $0xe6] sm:$0xff] }
  0x35   : > { %3533 = vrot.lane.b32.xlu0 %v3532_v53, %s4118_s26  ;;  %v3637_v53 = vpack.i.bf16 %v438_v48, %v437_v47  ;;  %v569_v43 = vld [vmem:[%s4202_s23 + $0xb5] sm:$0xff]  ;;  %v602_v50 = vld [vmem:[%s4202_s23 + $0xbe] sm:$0xff]  ;;  %v4433_v19 = vld [vmem:[%s4202_s23 + $0xcd] sm:$0xff] }
  0x36   : > { %v3737_v47 = vpack.i.bf16 %v570_v44, %v569_v43  ;;  %v601_v49 = vld [vmem:[%s4202_s23 + $0xb6] sm:$0xff]  ;;  %v4448_v26 = vld [vmem:[%s4202_s23 + $0xce] sm:$0xff] }
  0x37   : > { %v445_v55 = vld [vmem:[%s4202_s23 + $0xd9] sm:$0xff] }
  0x38   : > { %3548 = vrot.lane.b32.xlu1 %v3547_v58, %s4119_s27  ;;  %v502_v58 = vld [vmem:[%s4202_s23 + $0x93] sm:$0xff]  ;;  %v4411_v11 = vld [vmem:[%s4202_s23 + $0xdc] sm:$0xff] }
  0x39   : > { %3543 = vrot.lane.b32.xlu0 %v3542_v59, %s4119_s27  ;;  %v3647_v59 = vpack.i.bf16 %v470_v52, %v469_v51  ;;  %v599_v51 = vld [vmem:[%s4202_s23 + $0xa6] sm:$0xff]  ;;  %v600_v52 = vld [vmem:[%s4202_s23 + $0xae] sm:$0xff]  ;;  %v4425_v16 = vld [vmem:[%s4202_s23 + $0xdd] sm:$0xff] }
  0x3a   : > { %v3742_v54 = vpack.i.bf16 %v600_v52, %v599_v51  ;;  %v4422_v15 = vld [vmem:[%s4202_s23 + $0xd4] sm:$0xff] }
  0x3b   : > { %v4436_v20 = vld [vmem:[%s4202_s23 + $0xd5] sm:$0xff] }
  0x3c   : > { %3558 = vrot.lane.b32.xlu1 %v3557_v0, %s4120_s28  ;;  %v534_v0 = vld [vmem:[%s4202_s23 + $0x94] sm:$0xff] }
  0x3d   : > { %3553 = vrot.lane.b32.xlu0 %v3552_v1, %s4120_s28  ;;  %v3657_v1 = vpack.i.bf16 %v502_v58, %v501_v57  ;;  %v443_v58 = vld [vmem:[%s4202_s23 + $0xc9] sm:$0xff] }
  0x40   : > { %3568 = vrot.lane.b32.xlu1 %v3567_v6, %s4121_s29  ;;  %v566_v6 = vld [vmem:[%s4202_s23 + $0x95] sm:$0xff] }
  0x41   : > { %3563 = vrot.lane.b32.xlu0 %v3562_v7, %s4121_s29  ;;  %v3667_v7 = vpack.i.bf16 %v534_v0, %v533_v63  ;;  %v477_v63 = vld [vmem:[%s4202_s23 + $0xda] sm:$0xff]  ;;  %v478_v0 = vld [vmem:[%s4202_s23 + $0xe2] sm:$0xff] }
  0x44   : > { %3578 = vrot.lane.b32.xlu1 %v3577_v13, %s4117_s25  ;;  %v3677_v13 = vpack.i.bf16 %v566_v6, %v565_v5  ;;  %v509_v5 = vld [vmem:[%s4202_s23 + $0xdb] sm:$0xff]  ;;  %v3767_v6 = vpack.i.bf16 %v478_v0, %v477_v63 }
  0x45   : > { %3573 = vrot.lane.b32.xlu0 %v3572_v14, %s4117_s25  ;;  %v3672_v14 = vpack.i.bf16 %v564_v9, %v563_v8  ;;  %v507_v8 = vld [vmem:[%s4202_s23 + $0xcb] sm:$0xff]  ;;  %v508_v9 = vld [vmem:[%s4202_s23 + $0xd3] sm:$0xff] }
  0x46   : > { %v3772_v32 = vpack.i.bf16 %v508_v9, %v507_v8 }
  0x48   : > { %3588 = vrot.lane.b32.xlu1 %v3587_v21, %s4116_s24  ;;  %v439_v21 = vld [vmem:[%s4202_s23 + $0xa1] sm:$0xff] }
  0x49   : > { %3583 = vrot.lane.b32.xlu0 %v3582_v22, %s4116_s24  ;;  %v440_v22 = vld [vmem:[%s4202_s23 + $0xa9] sm:$0xff] }
  0x4a   : > { %v3692_v24 = vpack.i.bf16 %v440_v22, %v439_v21  ;;  %v4439_v21 = vld [vmem:[%s4202_s23 + $0xde] sm:$0xff] }
  0x4b   : > { %v3807_v43 = vpack.i.bf16 %v4445_v25, %v4439_v21  ;;  %v479_v25 = vld [vmem:[%s4202_s23 + $0xf2] sm:$0xff] }
  0x4c   : > { %3598 = vrot.lane.b32.xlu1 %v3597_v27, %s4118_s26  ;;  %v471_v27 = vld [vmem:[%s4202_s23 + $0xa2] sm:$0xff] }
  0x4d   : > { %3593 = vrot.lane.b32.xlu0 %v3592_v28, %s4118_s26  ;;  %v472_v28 = vld [vmem:[%s4202_s23 + $0xaa] sm:$0xff] }
  0x4e   : > { %v3702_v30 = vpack.i.bf16 %v472_v28, %v471_v27  ;;  %v4451_v27 = vld [vmem:[%s4202_s23 + $0xd6] sm:$0xff]  ;;  %v391_v28 = vld [vmem:[%s4202_s23] sm:$0xff] }
  0x4f   : > { %v3802_v44 = vpack.i.bf16 %v4451_v27, %v4448_v26  ;;  %v513_v27 = vld [vmem:[%s4202_s23 + $0x103] sm:$0xff] }
  0x50   : > { %3608 = vrot.lane.b32.xlu1 %v3607_v33, %s4119_s27  ;;  %v503_v33 = vld [vmem:[%s4202_s23 + $0xa3] sm:$0xff] }
  0x51   : > { %3603 = vrot.lane.b32.xlu0 %v3602_v34, %s4119_s27  ;;  %v504_v34 = vld [vmem:[%s4202_s23 + $0xab] sm:$0xff] }
  0x52   : > { %v3712_v36 = vpack.i.bf16 %v504_v34, %v503_v33  ;;  %v393_v33 = vld [vmem:[%s4202_s23 + $0x10] sm:$0xff]  ;;  %v394_v34 = vld [vmem:[%s4202_s23 + $0x18] sm:$0xff] }
  0x54   : > { %3618 = vrot.lane.b32.xlu1 %v3617_v39, %s4120_s28  ;;  %v535_v39 = vld [vmem:[%s4202_s23 + $0xa4] sm:$0xff] }
  0x55   : > { %3613 = vrot.lane.b32.xlu0 %v3612_v40, %s4120_s28  ;;  %v536_v40 = vld [vmem:[%s4202_s23 + $0xac] sm:$0xff] }
  0x56   : > { %v3722_v42 = vpack.i.bf16 %v536_v40, %v535_v39  ;;  %v3792_v39 = vpack.i.bf16 %v4436_v20, %v4433_v19 }
  0x58   : > { %3628 = vrot.lane.b32.xlu1 %v3627_v45, %s4121_s29  ;;  %v567_v45 = vld [vmem:[%s4202_s23 + $0xa5] sm:$0xff] }
  0x59   : > { %3623 = vrot.lane.b32.xlu0 %v3622_v46, %s4121_s29  ;;  %v568_v46 = vld [vmem:[%s4202_s23 + $0xad] sm:$0xff] }
  0x5a   : > { %v3732_v48 = vpack.i.bf16 %v568_v46, %v567_v45 }
  0x5c   : > { %3638 = vrot.lane.b32.xlu1 %v3637_v53, %s4117_s25  ;;  %v3747_v53 = vpack.i.bf16 %v602_v50, %v601_v49 }
  0x5d   : > { %3633 = vrot.lane.b32.xlu0 %v3632_v56, %s4117_s25  ;;  %v446_v56 = vld [vmem:[%s4202_s23 + $0xe1] sm:$0xff] }
  0x5e   : > { %v3757_v61 = vpack.i.bf16 %v446_v56, %v445_v55 }
  0x60   : > { %3648 = vrot.lane.b32.xlu1 %v3647_v59, %s4116_s24  ;;  %v444_v59 = vld [vmem:[%s4202_s23 + $0xd1] sm:$0xff] }
  0x61   : > { %3643 = vrot.lane.b32.xlu0 %v3642_v62, %s4116_s24  ;;  %v3752_v62 = vpack.i.bf16 %v444_v59, %v443_v58 }
  0x64   : > { %3658 = vrot.lane.b32.xlu1 %v3657_v1, %s4118_s26 }
  0x65   : > { %3653 = vrot.lane.b32.xlu0 %v3652_v4, %s4118_s26 }
  0x68   : > { %3668 = vrot.lane.b32.xlu1 %v3667_v7, %s4119_s27  ;;  %v510_v7 = vld [vmem:[%s4202_s23 + $0xe3] sm:$0xff] }
  0x69   : > { %3663 = vrot.lane.b32.xlu0 %v3662_v10, %s4119_s27  ;;  %v3762_v10 = vpack.i.bf16 %v476_v3, %v475_v2 }
  0x6c   : > { %3678 = vrot.lane.b32.xlu1 %v3677_v13, %s4120_s28  ;;  %v4417_v13 = vld [vmem:[%s4202_s23 + $0xcc] sm:$0xff] }
  0x6d   : > { %3673 = vrot.lane.b32.xlu0 %v3672_v14, %s4120_s28  ;;  %v3782_v37 = vpack.i.bf16 %v4422_v15, %v4417_v13 }
  0x70   : > { %3688 = vrot.lane.b32.xlu1 %v3687_v17, %s4121_s29  ;;  %v4428_v17 = vld [vmem:[%s4202_s23 + $0xe5] sm:$0xff] }
  0x71   : > { %3683 = vrot.lane.b32.xlu0 %v3682_v18, %s4121_s29  ;;  %v3797_v38 = vpack.i.bf16 %v4428_v17, %v4425_v16 }
  0x74   : > { %3698 = vrot.lane.b32.xlu1 %v3697_v23, %s4117_s25 }
  0x75   : > { %3693 = vrot.lane.b32.xlu0 %v3692_v24, %s4117_s25  ;;  %v3777_v24 = vpack.i.bf16 %v510_v7, %v509_v5 }
  0x78   : > { %3708 = vrot.lane.b32.xlu1 %v3707_v29, %s4116_s24  ;;  %v392_v29 = vld [vmem:[%s4202_s23 + $0x8] sm:$0xff] }
  0x79   : > { %3703 = vrot.lane.b32.xlu0 %v3702_v30, %s4116_s24 }
  0x7c   : > { %3718 = vrot.lane.b32.xlu1 %v3717_v35, %s4118_s26 }
  0x7d   : > { %3713 = vrot.lane.b32.xlu0 %v3712_v36, %s4118_s26  ;;  %v3787_v36 = vpack.i.bf16 %v4414_v12, %v4411_v11 }
  0x80   : > { %3728 = vrot.lane.b32.xlu1 %v3727_v41, %s4119_s27 }
  0x81   : > { %3723 = vrot.lane.b32.xlu0 %v3722_v42, %s4119_s27 }
  0x84   : > { %3738 = vrot.lane.b32.xlu1 %v3737_v47, %s4120_s28 }
  0x85   : > { %3733 = vrot.lane.b32.xlu0 %v3732_v48, %s4120_s28 }
  0x86   : > { %v4390_v57 = vpop.permute.xlu1 %3463 }
  0x87   : > { %v4394_v60 = vpop.permute.xlu0 %3453  ;;  %v3466_v40 = vunpack.i.h.bf16 %v4390_v57  ;;  %v3465_v41 = vunpack.i.l.bf16 %v4390_v57 }
  0x88   : > { %3748 = vrot.lane.b32.xlu1 %v3747_v53, %s4121_s29  ;;  %v3456_v22 = vunpack.i.h.bf16 %v4394_v60  ;;  %v3455_v23 = vunpack.i.l.bf16 %v4394_v60 }
  0x89   : > { %3743 = vrot.lane.b32.xlu0 %v3742_v54, %s4121_s29 }
  0x8a   : > { %v4400_v1 = vpop.permute.xlu1 %3468  ;;  %v1384_v45 = vsel %vm1383_vm1, %v391_v28, %v3455_v23  ;;  %v1385_v46 = vsel %vm1383_vm1, %v392_v29, %v3456_v22  ;;  %v449_v29 = vld [vmem:[%s4202_s23 + $0x101] sm:$0xff] }
  0x8b   : > { %v3459_v4 = vpop.permute.xlu0 %3458  ;;  %v3471_v47 = vunpack.i.h.bf16 %v4400_v1  ;;  %v3470_v48 = vunpack.i.l.bf16 %v4400_v1  ;;  %v1417_v58 = vsel %vm1416_vm2, %v1384_v45, %v3465_v41  ;;  %v1418_v59 = vsel %vm1416_vm2, %v1385_v46, %v3466_v40  ;;  %v481_v41 = vld [vmem:[%s4202_s23 + $0x102] sm:$0xff]  ;;  %v514_v45 = vld [vmem:[%s4202_s23 + $0x10b] sm:$0xff]  ;;  %v511_v46 = vld [vmem:[%s4202_s23 + $0xf3] sm:$0xff] }
  0x8c   : > { %3758 = vrot.lane.b32.xlu1 %v3757_v61, %s4117_s25  ;;  %v3461_v30 = vunpack.i.h.bf16 %v3459_v4  ;;  %v3460_v31 = vunpack.i.l.bf16 %v3459_v4 }
  0x8d   : > { %3753 = vrot.lane.b32.xlu0 %v3752_v62, %s4117_s25 }
  0x8e   : > { %v4419_v14 = vpop.permute.xlu1 %3478  ;;  %v1386_v49 = vsel %vm1383_vm1, %v393_v33, %v3460_v31  ;;  %v1387_v50 = vsel %vm1383_vm1, %v394_v34, %v3461_v30  ;;  %v450_v30 = vld [vmem:[%s4202_s23 + $0x109] sm:$0xff] }
  0x8f   : > { %v4430_v18 = vpop.permute.xlu0 %3473  ;;  %v3481_v51 = vunpack.i.h.bf16 %v4419_v14  ;;  %v3480_v52 = vunpack.i.l.bf16 %v4419_v14  ;;  %v1419_v63 = vsel %vm1416_vm2, %v1386_v49, %v3470_v48  ;;  %v1420_v0 = vsel %vm1416_vm2, %v1387_v50, %v3471_v47  ;;  %v512_v47 = vld [vmem:[%s4202_s23 + $0xfb] sm:$0xff]  ;;  %v545_v49 = vld [vmem:[%s4202_s23 + $0x104] sm:$0xff]  ;;  %v546_v50 = vld [vmem:[%s4202_s23 + $0x10c] sm:$0xff] }
  0x90   : > { %3768 = vrot.lane.b32.xlu1 %v3767_v6, %s4116_s24  ;;  %v3476_v53 = vunpack.i.h.bf16 %v4430_v18  ;;  %v3475_v54 = vunpack.i.l.bf16 %v4430_v18 }
  0x91   : > { %3763 = vrot.lane.b32.xlu0 %v3762_v10, %s4116_s24  ;;  %v1452_v3 = vsel %vm1449_vm3, %v1419_v63, %v3480_v52  ;;  %v1453_v4 = vsel %vm1449_vm3, %v1420_v0, %v3481_v51  ;;  %v4543_v51 = vld [vmem:[%s4202_s23 + $0xf4] sm:$0xff] }
  0x92   : > { %v3489_v35 = vpop.permute.xlu1 %3488  ;;  %v1450_v7 = vsel %vm1449_vm3, %v1417_v58, %v3475_v54  ;;  %v1451_v8 = vsel %vm1449_vm3, %v1418_v59, %v3476_v53  ;;  %v544_v53 = vld [vmem:[%s4202_s23 + $0xfc] sm:$0xff]  ;;  %v4547_v54 = vld [vmem:[%s4202_s23 + $0x105] sm:$0xff]  ;;  %v4565_v63 = vld [vmem:[%s4202_s23 + $0x10e] sm:$0xff] }
  0x93   : > { %v3484_v42 = vpop.permute.xlu0 %3483  ;;  %v3491_v55 = vunpack.i.h.bf16 %v3489_v35  ;;  %v3490_v56 = vunpack.i.l.bf16 %v3489_v35  ;;  %v447_v35 = vld [vmem:[%s4202_s23 + $0xf1] sm:$0xff]  ;;  %v4556_v58 = vld [vmem:[%s4202_s23 + $0xfd] sm:$0xff]  ;;  %v4559_v59 = vld [vmem:[%s4202_s23 + $0x106] sm:$0xff] }
  0x94   : > { %3778 = vrot.lane.b32.xlu1 %v3777_v24, %s4118_s26  ;;  %v3486_v60 = vunpack.i.h.bf16 %v3484_v42  ;;  %v3485_v61 = vunpack.i.l.bf16 %v3484_v42  ;;  %v482_v42 = vld [vmem:[%s4202_s23 + $0x10a] sm:$0xff]  ;;  %v4568_v0 = vld [vmem:[%s4202_s23 + $0xf6] sm:$0xff] }
  0x95   : > { %3773 = vrot.lane.b32.xlu0 %v3772_v32, %s4118_s26  ;;  %v1485_v9 = vsel %vm1482_vm4, %v1452_v3, %v3490_v56  ;;  %v1486_v10 = vsel %vm1482_vm4, %v1453_v4, %v3491_v55  ;;  %v4550_v55 = vld [vmem:[%s4202_s23 + $0x10d] sm:$0xff]  ;;  %v398_v3 = vld [vmem:[%s4202_s23 + $0x40] sm:$0xff] }
  0x96   : > { %v3499_v57 = vpop.permute.xlu1 %3498  ;;  %v1483_v15 = vsel %vm1482_vm4, %v1450_v7, %v3485_v61  ;;  %v1484_v16 = vsel %vm1482_vm4, %v1451_v8, %v3486_v60  ;;  %v395_v7 = vld [vmem:[%s4202_s23 + $0x28] sm:$0xff]  ;;  %v396_v8 = vld [vmem:[%s4202_s23 + $0x30] sm:$0xff] }
  0x97   : > { %v3494_v62 = vpop.permute.xlu0 %3493  ;;  %v3501_v1 = vunpack.i.h.bf16 %v3499_v57  ;;  %v3500_v2 = vunpack.i.l.bf16 %v3499_v57  ;;  %v4553_v57 = vld [vmem:[%s4202_s23 + $0xf5] sm:$0xff] }
  0x98   : > { %3788 = vrot.lane.b32.xlu1 %v3787_v36, %s4119_s27  ;;  %v3496_v5 = vunpack.i.h.bf16 %v3494_v62  ;;  %v3495_v6 = vunpack.i.l.bf16 %v3494_v62  ;;  %v448_v36 = vld [vmem:[%s4202_s23 + $0xf9] sm:$0xff]  ;;  %v3837_v62 = vpack.i.bf16 %v514_v45, %v513_v27 }
  0x99   : > { %3783 = vrot.lane.b32.xlu0 %v3782_v37, %s4119_s27  ;;  %v1518_v17 = vsel %vm1515_vm5, %v1485_v9, %v3500_v2  ;;  %v1519_v18 = vsel %vm1515_vm5, %v1486_v10, %v3501_v1  ;;  %v3812_v40 = vpack.i.bf16 %v448_v36, %v447_v35  ;;  %v4571_v1 = vld [vmem:[%s4202_s23 + $0xfe] sm:$0xff]  ;;  %v3847_v10 = vpack.i.bf16 %v546_v50, %v545_v49 }
  0x9a   : > { %v3509_v11 = vpop.permute.xlu1 %3508  ;;  %v1516_v24 = vsel %vm1515_vm5, %v1483_v15, %v3495_v6  ;;  %v1517_v28 = vsel %vm1515_vm5, %v1484_v16, %v3496_v5  ;;  %v397_v2 = vld [vmem:[%s4202_s23 + $0x38] sm:$0xff]  ;;  %v3832_v6 = vpack.i.bf16 %v512_v47, %v511_v46 }
  0x9b   : > { %v3511_v12 = vunpack.i.h.bf16 %v3509_v11  ;;  %v3510_v13 = vunpack.i.l.bf16 %v3509_v11  ;;  %v3504_v14 = vpop.permute.xlu0 %3503  ;;  %v3842_v11 = vpack.i.bf16 %v544_v53, %v4543_v51 }
  0x9c   : > { %v3506_v19 = vunpack.i.h.bf16 %v3504_v14  ;;  %v3505_v20 = vunpack.i.l.bf16 %v3504_v14  ;;  %3798 = vrot.lane.b32.xlu1 %v3797_v38, %s4120_s28 }
  0x9d   : > { %v1551_v22 = vsel %vm1548_vm6, %v1518_v17, %v3510_v13  ;;  %v1552_v23 = vsel %vm1548_vm6, %v1519_v18, %v3511_v12  ;;  %3793 = vrot.lane.b32.xlu0 %v3792_v39, %s4120_s28  ;;  %v3817_v39 = vpack.i.bf16 %v450_v30, %v449_v29  ;;  %v3857_v12 = vpack.i.bf16 %v4550_v55, %v4547_v54 }
  0x9e   : > { %v4508_v31 = vpop.permute.xlu1 %3518  ;;  %v1549_v32 = vsel %vm1548_vm6, %v1516_v24, %v3505_v20  ;;  %v1550_v33 = vsel %vm1548_vm6, %v1517_v28, %v3506_v19  ;;  %v1582_v34 = vpack.c.bf16 %v1552_v23, %v1551_v22  ;;  %v3852_v13 = vpack.i.bf16 %v4556_v58, %v4553_v57 }
  0x9f   : > { %v4514_v37 = vpop.permute.xlu0 %3513  ;;  %v1581_v38 = vpack.c.bf16 %v1550_v33, %v1549_v32  ;;  %v3521_v60 = vunpack.i.h.bf16 %v4508_v31  ;;  %v3520_v61 = vunpack.i.l.bf16 %v4508_v31  ;;  %v3867_v17 = vpack.i.bf16 %v4565_v63, %v4559_v59  ;;  %v453_v63 = vld [vmem:[%s4202_s23 + $0x129] sm:$0xff] }
  0xa0   : > { %3808 = vrot.lane.b32.xlu1 %v3807_v43, %s4121_s29  ;;  %v480_v43 = vld [vmem:[%s4202_s23 + $0xfa] sm:$0xff]  ;;  %v3516_v4 = vunpack.i.h.bf16 %v4514_v37  ;;  %v3515_v5 = vunpack.i.l.bf16 %v4514_v37  ;;  %v3862_v18 = vpack.i.bf16 %v4571_v1, %v4568_v0  ;;  %v517_v1 = vld [vmem:[%s4202_s23 + $0x12b] sm:$0xff] }
  0xa1   : > { %3803 = vrot.lane.b32.xlu0 %v3802_v44, %s4121_s29  ;;  %3366 = vmatprep.mubr.msk.bf16.mxu0 %vm1619_vm7, %v1581_v38  ;;  %v3827_v44 = vpack.i.bf16 %v482_v42, %v481_v41  ;;  %v3822_v48 = vpack.i.bf16 %v480_v43, %v479_v25  ;;  %v1390_v19 = vsel %vm1383_vm1, %v397_v2, %v3520_v61  ;;  %v454_v2 = vld [vmem:[%s4202_s23 + $0x131] sm:$0xff] }
  0xa2   : > { %3367 = vmatmul.mubr.msk.bf16.vlgmr.msra.gmra.mrb[0].mxu0 %vm1619_vm7, %v1582_v34  ;;  %v4528_v21 = vpop.permute.xlu1 %3528  ;;  %v1391_v20 = vsel %vm1383_vm1, %v398_v3, %v3521_v60  ;;  %v1388_v24 = vsel %vm1383_vm1, %v395_v7, %v3515_v5  ;;  %v1389_v28 = vsel %vm1383_vm1, %v396_v8, %v3516_v4  ;;  %v451_v7 = vld [vmem:[%s4202_s23 + $0x119] sm:$0xff]  ;;  %v452_v8 = vld [vmem:[%s4202_s23 + $0x121] sm:$0xff] }
  0xa3   : > { %v4532_v26 = vpop.permute.xlu0 %3523  ;;  %v3531_v14 = vunpack.i.h.bf16 %v4528_v21  ;;  %v3530_v15 = vunpack.i.l.bf16 %v4528_v21 }
  0xa4   : > { %3818 = vrot.lane.b32.xlu1 %v3817_v39, %s4117_s25  ;;  %v3526_v22 = vunpack.i.h.bf16 %v4532_v26  ;;  %v3525_v23 = vunpack.i.l.bf16 %v4532_v26 }
  0xa5   : > { %3813 = vrot.lane.b32.xlu0 %v3812_v40, %s4117_s25  ;;  %v1423_v36 = vsel %vm1416_vm2, %v1390_v19, %v3530_v15  ;;  %v1424_v37 = vsel %vm1416_vm2, %v1391_v20, %v3531_v14  ;;  %v486_v14 = vld [vmem:[%s4202_s23 + $0x132] sm:$0xff]  ;;  %v515_v20 = vld [vmem:[%s4202_s23 + $0x11b] sm:$0xff] }
  0xa6   : > { %v3539_v52 = vpop.permute.xlu1 %3538  ;;  %v1421_v41 = vsel %vm1416_vm2, %v1388_v24, %v3525_v23  ;;  %v1422_v42 = vsel %vm1416_vm2, %v1389_v28, %v3526_v22  ;;  %v518_v19 = vld [vmem:[%s4202_s23 + $0x133] sm:$0xff]  ;;  %v516_v22 = vld [vmem:[%s4202_s23 + $0x123] sm:$0xff] }
  0xa7   : > { %v3534_v56 = vpop.permute.xlu0 %3533  ;;  %v3541_v29 = vunpack.i.h.bf16 %v3539_v52  ;;  %v3540_v30 = vunpack.i.l.bf16 %v3539_v52  ;;  %v549_v24 = vld [vmem:[%s4202_s23 + $0x12c] sm:$0xff]  ;;  %v550_v28 = vld [vmem:[%s4202_s23 + $0x134] sm:$0xff] }
  0xa8   : > { %3828 = vrot.lane.b32.xlu1 %v3827_v44, %s4116_s24  ;;  %v3536_v31 = vunpack.i.h.bf16 %v3534_v56  ;;  %v3535_v32 = vunpack.i.l.bf16 %v3534_v56 }
  0xa9   : > { %3823 = vrot.lane.b32.xlu0 %v3822_v48, %s4116_s24  ;;  %v1456_v43 = vsel %vm1449_vm3, %v1423_v36, %v3540_v30  ;;  %v1457_v26 = vsel %vm1449_vm3, %v1424_v37, %v3541_v29  ;;  %v4655_v29 = vld [vmem:[%s4202_s23 + $0x11c] sm:$0xff]  ;;  %v4668_v36 = vld [vmem:[%s4202_s23 + $0x125] sm:$0xff]  ;;  %v4671_v37 = vld [vmem:[%s4202_s23 + $0x12e] sm:$0xff] }
  0xaa   : > { %v3549_v9 = vpop.permute.xlu1 %3548  ;;  %v1454_v45 = vsel %vm1449_vm3, %v1421_v41, %v3535_v32  ;;  %v1455_v46 = vsel %vm1449_vm3, %v1422_v42, %v3536_v31  ;;  %v548_v31 = vld [vmem:[%s4202_s23 + $0x124] sm:$0xff]  ;;  %v4659_v32 = vld [vmem:[%s4202_s23 + $0x12d] sm:$0xff]  ;;  %v4677_v41 = vld [vmem:[%s4202_s23 + $0x136] sm:$0xff] }
  0xab   : > { %v3544_v16 = vpop.permute.xlu0 %3543  ;;  %v3551_v33 = vunpack.i.h.bf16 %v3549_v9  ;;  %v3550_v34 = vunpack.i.l.bf16 %v3549_v9  ;;  %v4680_v42 = vld [vmem:[%s4202_s23 + $0x11e] sm:$0xff] }
  0xac   : > { %3838 = vrot.lane.b32.xlu1 %v3837_v62, %s4118_s26  ;;  %v3546_v38 = vunpack.i.h.bf16 %v3544_v16  ;;  %v3545_v39 = vunpack.i.l.bf16 %v3544_v16  ;;  %v483_v16 = vld [vmem:[%s4202_s23 + $0x11a] sm:$0xff] }
  0xad   : > { %3833 = vrot.lane.b32.xlu0 %v3832_v6, %s4118_s26  ;;  %v1489_v47 = vsel %vm1482_vm4, %v1456_v43, %v3550_v34  ;;  %v1490_v48 = vsel %vm1482_vm4, %v1457_v26, %v3551_v33  ;;  %v4662_v33 = vld [vmem:[%s4202_s23 + $0x135] sm:$0xff]  ;;  %v402_v43 = vld [vmem:[%s4202_s23 + $0x68] sm:$0xff] }
  0xae   : > { %v3559_v35 = vpop.permute.xlu1 %3558  ;;  %v1487_v50 = vsel %vm1482_vm4, %v1454_v45, %v3545_v39  ;;  %v1488_v51 = vsel %vm1482_vm4, %v1455_v46, %v3546_v38  ;;  %v399_v45 = vld [vmem:[%s4202_s23 + $0x50] sm:$0xff]  ;;  %v400_v46 = vld [vmem:[%s4202_s23 + $0x58] sm:$0xff] }
  0xaf   : > { %v3554_v40 = vpop.permute.xlu0 %3553  ;;  %v3561_v21 = vunpack.i.h.bf16 %v3559_v35  ;;  %v3560_v25 = vunpack.i.l.bf16 %v3559_v35  ;;  %v4665_v35 = vld [vmem:[%s4202_s23 + $0x11d] sm:$0xff] }
  0xb0   : > { %3848 = vrot.lane.b32.xlu1 %v3847_v10, %s4119_s27  ;;  %v3556_v27 = vunpack.i.h.bf16 %v3554_v40  ;;  %v3555_v44 = vunpack.i.l.bf16 %v3554_v40  ;;  %v3897_v40 = vpack.i.bf16 %v518_v19, %v517_v1 }
  0xb1   : > { %3843 = vrot.lane.b32.xlu0 %v3842_v11, %s4119_s27  ;;  %v1522_v55 = vsel %vm1515_vm5, %v1489_v47, %v3560_v25  ;;  %v1523_v56 = vsel %vm1515_vm5, %v1490_v48, %v3561_v21  ;;  %v3877_v11 = vpack.i.bf16 %v454_v2, %v453_v63  ;;  %v4683_v21 = vld [vmem:[%s4202_s23 + $0x126] sm:$0xff]  ;;  %v3907_v48 = vpack.i.bf16 %v550_v28, %v549_v24 }
  0xb2   : > { %v3569_v49 = vpop.permute.xlu1 %3568  ;;  %v1520_v59 = vsel %vm1515_vm5, %v1487_v50, %v3555_v44  ;;  %v1521_v60 = vsel %vm1515_vm5, %v1488_v51, %v3556_v27  ;;  %v401_v25 = vld [vmem:[%s4202_s23 + $0x60] sm:$0xff]  ;;  %v3892_v44 = vpack.i.bf16 %v516_v22, %v515_v20  ;;  %v3917_v50 = vpack.i.bf16 %v4662_v33, %v4659_v32 }
  0xb3   : > { %v3571_v52 = vunpack.i.h.bf16 %v3569_v49  ;;  %v3570_v53 = vunpack.i.l.bf16 %v3569_v49  ;;  %v3564_v54 = vpop.permute.xlu0 %3563  ;;  %v3902_v49 = vpack.i.bf16 %v548_v31, %v4655_v29  ;;  %v3912_v51 = vpack.i.bf16 %v4668_v36, %v4665_v35 }
  0xb4   : > { %v3566_v57 = vunpack.i.h.bf16 %v3564_v54  ;;  %v3565_v58 = vunpack.i.l.bf16 %v3564_v54  ;;  %3858 = vrot.lane.b32.xlu1 %v3857_v12, %s4120_s28  ;;  %v3872_v12 = vpack.i.bf16 %v452_v8, %v451_v7 }
  0xb5   : > { %v1555_v61 = vsel %vm1548_vm6, %v1522_v55, %v3570_v53  ;;  %v1556_v62 = vsel %vm1548_vm6, %v1523_v56, %v3571_v52  ;;  %3853 = vrot.lane.b32.xlu0 %v3852_v13, %s4120_s28  ;;  %v485_v13 = vld [vmem:[%s4202_s23 + $0x12a] sm:$0xff]  ;;  %v3927_v55 = vpack.i.bf16 %v4677_v41, %v4671_v37  ;;  %v3922_v56 = vpack.i.bf16 %v4683_v21, %v4680_v42 }
  0xb6   : > { %v1553_v3 = vsel %vm1548_vm6, %v1520_v59, %v3565_v58  ;;  %v1554_v4 = vsel %vm1548_vm6, %v1521_v60, %v3566_v57  ;;  %v4625_v5 = vpop.permute.xlu1 %3578  ;;  %v1584_v6 = vpack.c.bf16 %v1556_v62, %v1555_v61 }
  0xb7   : > { %v4629_v9 = vpop.permute.xlu0 %3573  ;;  %v1583_v10 = vpack.c.bf16 %v1554_v4, %v1553_v3  ;;  %v3581_v38 = vunpack.i.h.bf16 %v4625_v5  ;;  %v3580_v39 = vunpack.i.l.bf16 %v4625_v5 }
  0xb8   : > { %3868 = vrot.lane.b32.xlu1 %v3867_v17, %s4121_s29  ;;  %v484_v17 = vld [vmem:[%s4202_s23 + $0x122] sm:$0xff]  ;;  %v3576_v26 = vunpack.i.h.bf16 %v4629_v9  ;;  %v3575_v27 = vunpack.i.l.bf16 %v4629_v9 }
  0xb9   : > { %3863 = vrot.lane.b32.xlu0 %v3862_v18, %s4121_s29  ;;  %3370 = vmatprep.mubr.msk.bf16.mxu0 %vm1619_vm7, %v1583_v10  ;;  %v3887_v18 = vpack.i.bf16 %v486_v14, %v485_v13  ;;  %v3882_v23 = vpack.i.bf16 %v484_v17, %v483_v16  ;;  %v1394_v57 = vsel %vm1383_vm1, %v401_v25, %v3580_v39 }
  0xba   : > { %3371 = vmatmul.mubr.msk.bf16.gmra.mrb[4].mxu0 %vm1619_vm7, %v1584_v6  ;;  %v4640_v15 = vpop.permute.xlu1 %3588  ;;  %v1395_v58 = vsel %vm1383_vm1, %v402_v43, %v3581_v38  ;;  %v1392_v61 = vsel %vm1383_vm1, %v399_v45, %v3575_v27  ;;  %v1393_v62 = vsel %vm1383_vm1, %v400_v46, %v3576_v26 }
  0xbb   : > { %v4644_v0 = vpop.permute.xlu0 %3583  ;;  %v3591_v52 = vunpack.i.h.bf16 %v4640_v15  ;;  %v3590_v53 = vunpack.i.l.bf16 %v4640_v15 }
  0xbc   : > { %3878 = vrot.lane.b32.xlu1 %v3877_v11, %s4117_s25  ;;  %v3586_v59 = vunpack.i.h.bf16 %v4644_v0  ;;  %v3585_v60 = vunpack.i.l.bf16 %v4644_v0 }
  0xbd   : > { %3873 = vrot.lane.b32.xlu0 %v3872_v12, %s4117_s25  ;;  %v1427_v8 = vsel %vm1416_vm2, %v1394_v57, %v3590_v53  ;;  %v1428_v9 = vsel %vm1416_vm2, %v1395_v58, %v3591_v52  ;;  %v403_v53 = vld [vmem:[%s4202_s23 + $0x78] sm:$0xff] }
  0xbe   : > { %v3599_v30 = vpop.permute.xlu1 %3598  ;;  %v1425_v13 = vsel %vm1416_vm2, %v1392_v61, %v3585_v60  ;;  %v1426_v14 = vsel %vm1416_vm2, %v1393_v62, %v3586_v59 }
  0xbf   : > { %v3594_v34 = vpop.permute.xlu0 %3593  ;;  %v3601_v63 = vunpack.i.h.bf16 %v3599_v30  ;;  %v3600_v2 = vunpack.i.l.bf16 %v3599_v30 }
  0xc0   : > { %3888 = vrot.lane.b32.xlu1 %v3887_v18, %s4116_s24  ;;  %v3596_v3 = vunpack.i.h.bf16 %v3594_v34  ;;  %v3595_v4 = vunpack.i.l.bf16 %v3594_v34 }
  0xc1   : > { %3883 = vrot.lane.b32.xlu0 %v3882_v23, %s4116_s24  ;;  %v1460_v17 = vsel %vm1449_vm3, %v1427_v8, %v3600_v2  ;;  %v1461_v0 = vsel %vm1449_vm3, %v1428_v9, %v3601_v63  ;;  %s4126_s24 = smov 96  }
  0xc2   : > { %v3609_v47 = vpop.permute.xlu1 %3608  ;;  %v1458_v19 = vsel %vm1449_vm3, %v1425_v13, %v3595_v4  ;;  %v1459_v20 = vsel %vm1449_vm3, %v1426_v14, %v3596_v3 }
  0xc3   : > { %v3604_v54 = vpop.permute.xlu0 %3603  ;;  %v3611_v5 = vunpack.i.h.bf16 %v3609_v47  ;;  %v3610_v6 = vunpack.i.l.bf16 %v3609_v47 }
  0xc4   : > { %3898 = vrot.lane.b32.xlu1 %v3897_v40, %s4118_s26  ;;  %v3606_v10 = vunpack.i.h.bf16 %v3604_v54  ;;  %v3605_v11 = vunpack.i.l.bf16 %v3604_v54  ;;  %v404_v54 = vld [vmem:[%s4202_s23 + $0x80] sm:$0xff] }
  0xc5   : > { %3893 = vrot.lane.b32.xlu0 %v3892_v44, %s4118_s26  ;;  %v1493_v22 = vsel %vm1482_vm4, %v1460_v17, %v3610_v6  ;;  %v1494_v23 = vsel %vm1482_vm4, %v1461_v0, %v3611_v5 }
  0xc6   : > { %v3619_v7 = vpop.permute.xlu1 %3618  ;;  %v1491_v28 = vsel %vm1482_vm4, %v1458_v19, %v3605_v11  ;;  %v1492_v29 = vsel %vm1482_vm4, %v1459_v20, %v3606_v10 }
  0xc7   : > { %v3614_v12 = vpop.permute.xlu0 %3613  ;;  %v3621_v15 = vunpack.i.h.bf16 %v3619_v7  ;;  %v3620_v16 = vunpack.i.l.bf16 %v3619_v7 }
  0xc8   : > { %3908 = vrot.lane.b32.xlu1 %v3907_v48, %s4119_s27  ;;  %v3616_v1 = vunpack.i.h.bf16 %v3614_v12  ;;  %v3615_v18 = vunpack.i.l.bf16 %v3614_v12 }
  0xc9   : > { %3903 = vrot.lane.b32.xlu0 %v3902_v49, %s4119_s27  ;;  %v1526_v33 = vsel %vm1515_vm5, %v1493_v22, %v3620_v16  ;;  %v1527_v34 = vsel %vm1515_vm5, %v1494_v23, %v3621_v15  ;;  %v405_v49 = vld [vmem:[%s4202_s23 + $0x88] sm:$0xff] }
  0xca   : > { %v3629_v24 = vpop.permute.xlu1 %3628  ;;  %v1524_v37 = vsel %vm1515_vm5, %v1491_v28, %v3615_v18  ;;  %v1525_v38 = vsel %vm1515_vm5, %v1492_v29, %v3616_v1 }
  0xcb   : > { %v3631_v30 = vunpack.i.h.bf16 %v3629_v24  ;;  %v3630_v31 = vunpack.i.l.bf16 %v3629_v24  ;;  %v3624_v32 = vpop.permute.xlu0 %3623 }
  0xcc   : > { %v3626_v35 = vunpack.i.h.bf16 %v3624_v32  ;;  %v3625_v36 = vunpack.i.l.bf16 %v3624_v32  ;;  %3918 = vrot.lane.b32.xlu1 %v3917_v50, %s4120_s28  ;;  %v406_v50 = vld [vmem:[%s4202_s23 + $0x90] sm:$0xff] }
  0xcd   : > { %v1559_v39 = vsel %vm1548_vm6, %v1526_v33, %v3630_v31  ;;  %v1560_v40 = vsel %vm1548_vm6, %v1527_v34, %v3631_v30  ;;  %3913 = vrot.lane.b32.xlu0 %v3912_v51, %s4120_s28 }
  0xce   : > { %v1586_v41 = vpack.c.bf16 %v1560_v40, %v1559_v39  ;;  %v1557_v42 = vsel %vm1548_vm6, %v1524_v37, %v3625_v36  ;;  %v1558_v21 = vsel %vm1548_vm6, %v1525_v38, %v3626_v35  ;;  %v3639_v25 = vpop.permute.xlu1 %3638 }
  0xcf   : > { %v1585_v43 = vpack.c.bf16 %v1558_v21, %v1557_v42  ;;  %v3634_v26 = vpop.permute.xlu0 %3633  ;;  %v3641_v47 = vunpack.i.h.bf16 %v3639_v25  ;;  %v3640_v48 = vunpack.i.l.bf16 %v3639_v25 }
  0xd0   : > { %3928 = vrot.lane.b32.xlu1 %v3927_v55, %s4121_s29  ;;  %v3636_v51 = vunpack.i.h.bf16 %v3634_v26  ;;  %v3635_v52 = vunpack.i.l.bf16 %v3634_v26 }
  0xd1   : > { %3923 = vrot.lane.b32.xlu0 %v3922_v56, %s4121_s29  ;;  %3374 = vmatprep.mubr.msk.bf16.mxu0 %vm1619_vm7, %v1585_v43  ;;  %v1398_v59 = vsel %vm1383_vm1, %v405_v49, %v3640_v48  ;;  %v1399_v60 = vsel %vm1383_vm1, %v406_v50, %v3641_v47  ;;  %s3257_s29 = sshll.u32 %s5360_s18, 3 }
  0xd2   : > { %3375 = vmatmul.mubr.msk.bf16.gmra.mrb[8].mxu0 %vm1619_vm7, %v1586_v41  ;;  %v3649_v27 = vpop.permute.xlu1 %3648  ;;  %v1396_v63 = vsel %vm1383_vm1, %v403_v53, %v3635_v52  ;;  %v1397_v2 = vsel %vm1383_vm1, %v404_v54, %v3636_v51  ;;  %v409_v51 = vld [vmem:[%s4202_s23 + $0xb0] sm:$0xff]  ;;  %v410_v52 = vld [vmem:[%s4202_s23 + $0xb8] sm:$0xff]  ;;  %s389_s15 = scalar_lea.vmem %s5356_s11, %s3257_s29 }
  0xd3   : > { %v3644_v44 = vpop.permute.xlu0 %3643  ;;  %v3651_v55 = vunpack.i.h.bf16 %v3649_v27  ;;  %v3650_v58 = vunpack.i.l.bf16 %v3649_v27 }
  0xd4   : > { %v3646_v61 = vunpack.i.h.bf16 %v3644_v44  ;;  %v3645_v62 = vunpack.i.l.bf16 %v3644_v44 }
  0xd5   : > { %v1431_v10 = vsel %vm1416_vm2, %v1398_v59, %v3650_v58  ;;  %v1432_v11 = vsel %vm1416_vm2, %v1399_v60, %v3651_v55  ;;  %v408_v55 = vld [vmem:[%s4202_s23 + $0xa8] sm:$0xff] }
  0xd6   : > { %v3659_v45 = vpop.permute.xlu1 %3658  ;;  %v1429_v15 = vsel %vm1416_vm2, %v1396_v63, %v3645_v62  ;;  %v1430_v16 = vsel %vm1416_vm2, %v1397_v2, %v3646_v61 }
  0xd7   : > { %v3654_v46 = vpop.permute.xlu0 %3653  ;;  %v3661_v3 = vunpack.i.h.bf16 %v3659_v45  ;;  %v3660_v4 = vunpack.i.l.bf16 %v3659_v45 }
  0xd8   : > { %v3656_v5 = vunpack.i.h.bf16 %v3654_v46  ;;  %v3655_v6 = vunpack.i.l.bf16 %v3654_v46 }
  0xd9   : > { %v1464_v1 = vsel %vm1449_vm3, %v1431_v10, %v3660_v4  ;;  %v1465_v18 = vsel %vm1449_vm3, %v1432_v11, %v3661_v3 }
  0xda   : > { %v3669_v57 = vpop.permute.xlu1 %3668  ;;  %v1462_v22 = vsel %vm1449_vm3, %v1429_v15, %v3655_v6  ;;  %v1463_v23 = vsel %vm1449_vm3, %v1430_v16, %v3656_v5 }
  0xdb   : > { %v3664_v56 = vpop.permute.xlu0 %3663  ;;  %v3671_v7 = vunpack.i.h.bf16 %v3669_v57  ;;  %v3670_v8 = vunpack.i.l.bf16 %v3669_v57  ;;  %v407_v57 = vld [vmem:[%s4202_s23 + $0xa0] sm:$0xff] }
  0xdc   : > { %v3666_v12 = vunpack.i.h.bf16 %v3664_v56  ;;  %v3665_v13 = vunpack.i.l.bf16 %v3664_v56 }
  0xdd   : > { %v1497_v24 = vsel %vm1482_vm4, %v1464_v1, %v3670_v8  ;;  %v1498_v28 = vsel %vm1482_vm4, %v1465_v18, %v3671_v7 }
  0xde   : > { %v3679_v9 = vpop.permute.xlu1 %3678  ;;  %v1495_v30 = vsel %vm1482_vm4, %v1462_v22, %v3665_v13  ;;  %v1496_v31 = vsel %vm1482_vm4, %v1463_v23, %v3666_v12 }
  0xdf   : > { %v3674_v14 = vpop.permute.xlu0 %3673  ;;  %v3681_v17 = vunpack.i.h.bf16 %v3679_v9  ;;  %v3680_v0 = vunpack.i.l.bf16 %v3679_v9 }
  0xe0   : > { %v3676_v19 = vunpack.i.h.bf16 %v3674_v14  ;;  %v3675_v20 = vunpack.i.l.bf16 %v3674_v14 }
  0xe1   : > { %v1530_v35 = vsel %vm1515_vm5, %v1497_v24, %v3680_v0  ;;  %v1531_v36 = vsel %vm1515_vm5, %v1498_v28, %v3681_v17 }
  0xe2   : > { %v3689_v29 = vpop.permute.xlu1 %3688  ;;  %v1528_v39 = vsel %vm1515_vm5, %v1495_v30, %v3675_v20  ;;  %v1529_v40 = vsel %vm1515_vm5, %v1496_v31, %v3676_v19 }
  0xe3   : > { %v3691_v32 = vunpack.i.h.bf16 %v3689_v29  ;;  %v3690_v33 = vunpack.i.l.bf16 %v3689_v29  ;;  %v3684_v34 = vpop.permute.xlu0 %3683 }
  0xe4   : > { %v3686_v37 = vunpack.i.h.bf16 %v3684_v34  ;;  %v3685_v38 = vunpack.i.l.bf16 %v3684_v34 }
  0xe5   : > { %v1563_v41 = vsel %vm1548_vm6, %v1530_v35, %v3690_v33  ;;  %v1564_v42 = vsel %vm1548_vm6, %v1531_v36, %v3691_v32 }
  0xe6   : > { %v1588_v21 = vpack.c.bf16 %v1564_v42, %v1563_v41  ;;  %v1561_v25 = vsel %vm1548_vm6, %v1528_v39, %v3685_v38  ;;  %v1562_v43 = vsel %vm1548_vm6, %v1529_v40, %v3686_v37  ;;  %v3699_v26 = vpop.permute.xlu1 %3698 }
  0xe7   : > { %v1587_v27 = vpack.c.bf16 %v1562_v43, %v1561_v25  ;;  %v3694_v44 = vpop.permute.xlu0 %3693  ;;  %v3701_v49 = vunpack.i.h.bf16 %v3699_v26  ;;  %v3700_v50 = vunpack.i.l.bf16 %v3699_v26 }
  0xe8   : > { %v3696_v53 = vunpack.i.h.bf16 %v3694_v44  ;;  %v3695_v54 = vunpack.i.l.bf16 %v3694_v44 }
  0xe9   : > { %3378 = vmatprep.mubr.msk.bf16.mxu0 %vm1619_vm7, %v1587_v27  ;;  %v1402_v61 = vsel %vm1383_vm1, %v409_v51, %v3700_v50  ;;  %v1403_v62 = vsel %vm1383_vm1, %v410_v52, %v3701_v49  ;;  %v4122_v50 = vmov 0.0  }
  0xea   : > { %3379 = vmatmul.mubr.msk.bf16.gmra.mrb[12].mxu0 %vm1619_vm7, %v1588_v21  ;;  %v3709_v45 = vpop.permute.xlu1 %3708  ;;  %v1400_v3 = vsel %vm1383_vm1, %v407_v57, %v3695_v54  ;;  %v1401_v4 = vsel %vm1383_vm1, %v408_v55, %v3696_v53  ;;  %1986 = vst.msk [vmem:[#allocation3 + $0x12] sm:$0x3] %vm1977_vm8, %v4122_v50  ;;  %1978 = vst.msk [vmem:[#allocation3] sm:$0x3] %vm1977_vm8, %v4122_v50  ;;  %v413_v54 = vld [vmem:[%s4202_s23 + $0xd8] sm:$0xff]  ;;  %v414_v57 = vld [vmem:[%s4202_s23 + $0xe0] sm:$0xff] }
  0xeb   : > { %v3704_v46 = vpop.permute.xlu0 %3703  ;;  %v3711_v56 = vunpack.i.h.bf16 %v3709_v45  ;;  %v3710_v59 = vunpack.i.l.bf16 %v3709_v45  ;;  %1979 = vst.msk [vmem:[#allocation3 + $0x18] sm:$0x3] %vm1977_vm8, %v4122_v50  ;;  %1980 = vst.msk [vmem:[#allocation3 + $0x30] sm:$0x3] %vm1977_vm8, %v4122_v50 }
  0xec   : > { %v3706_v63 = vunpack.i.h.bf16 %v3704_v46  ;;  %v3705_v2 = vunpack.i.l.bf16 %v3704_v46  ;;  %1981 = vst.msk [vmem:[#allocation3 + $0x48] sm:$0x3] %vm1977_vm8, %v4122_v50  ;;  %1982 = vst.msk [vmem:[#allocation3 + $0x60] sm:$0x3] %vm1977_vm8, %v4122_v50 }
  0xed   : > { %v1435_v12 = vsel %vm1416_vm2, %v1402_v61, %v3710_v59  ;;  %v1436_v13 = vsel %vm1416_vm2, %v1403_v62, %v3711_v56  ;;  %1983 = vst.msk [vmem:[#allocation3 + $0x78] sm:$0x3] %vm1977_vm8, %v4122_v50  ;;  %1984 = vst.msk [vmem:[#allocation3 + $0x90] sm:$0x3] %vm1977_vm8, %v4122_v50  ;;  %v411_v56 = vld [vmem:[%s4202_s23 + $0xc8] sm:$0xff]  ;;  %v412_v59 = vld [vmem:[%s4202_s23 + $0xd0] sm:$0xff] }
  0xee   : > { %v3719_v47 = vpop.permute.xlu1 %3718  ;;  %v1433_v17 = vsel %vm1416_vm2, %v1400_v3, %v3705_v2  ;;  %v1434_v0 = vsel %vm1416_vm2, %v1401_v4, %v3706_v63  ;;  %1985 = vst.msk [vmem:[#allocation3 + $0xa8] sm:$0x3] %vm1977_vm8, %v4122_v50  ;;  %1987 = vst.msk [vmem:[#allocation3 + $0x2a] sm:$0x3] %vm1977_vm8, %v4122_v50 }
  0xef   : > { %v3714_v48 = vpop.permute.xlu0 %3713  ;;  %v3721_v5 = vunpack.i.h.bf16 %v3719_v47  ;;  %v3720_v6 = vunpack.i.l.bf16 %v3719_v47  ;;  %1988 = vst.msk [vmem:[#allocation3 + $0x42] sm:$0x3] %vm1977_vm8, %v4122_v50  ;;  %1989 = vst.msk [vmem:[#allocation3 + $0x5a] sm:$0x3] %vm1977_vm8, %v4122_v50 }
  0xf0   : > { %v3716_v7 = vunpack.i.h.bf16 %v3714_v48  ;;  %v3715_v8 = vunpack.i.l.bf16 %v3714_v48  ;;  %1990 = vst.msk [vmem:[#allocation3 + $0x72] sm:$0x3] %vm1977_vm8, %v4122_v50  ;;  %1991 = vst.msk [vmem:[#allocation3 + $0x8a] sm:$0x3] %vm1977_vm8, %v4122_v50 }
  0xf1   : > { %v1468_v19 = vsel %vm1449_vm3, %v1435_v12, %v3720_v6  ;;  %v1469_v20 = vsel %vm1449_vm3, %v1436_v13, %v3721_v5  ;;  %1992 = vst.msk [vmem:[#allocation3 + $0xa2] sm:$0x3] %vm1977_vm8, %v4122_v50  ;;  %1993 = vst.msk [vmem:[#allocation3 + $0xba] sm:$0x3] %vm1977_vm8, %v4122_v50 }
  0xf2   : > { %v3729_v58 = vpop.permute.xlu1 %3728  ;;  %v1466_v24 = vsel %vm1449_vm3, %v1433_v17, %v3715_v8  ;;  %v1467_v28 = vsel %vm1449_vm3, %v1434_v0, %v3716_v7  ;;  %2636 = vst.msk [vmem:[#allocation5 + $0x9] sm:$0x1] %vm2627_vm12, %v4122_v50  ;;  %2637 = vst.msk [vmem:[#allocation5 + $0x19] sm:$0x1] %vm2627_vm12, %v4122_v50 }
  0xf3   : > { %v3724_v60 = vpop.permute.xlu0 %3723  ;;  %v3731_v9 = vunpack.i.h.bf16 %v3729_v58  ;;  %v3730_v10 = vunpack.i.l.bf16 %v3729_v58  ;;  %2628 = vst.msk [vmem:[#allocation5] sm:$0x1] %vm2627_vm12, %v4122_v50  ;;  %2629 = vst.msk [vmem:[#allocation5 + $0x10] sm:$0x1] %vm2627_vm12, %v4122_v50 }
  0xf4   : > { %v3726_v14 = vunpack.i.h.bf16 %v3724_v60  ;;  %v3725_v15 = vunpack.i.l.bf16 %v3724_v60  ;;  %2630 = vst.msk [vmem:[#allocation5 + $0x20] sm:$0x1] %vm2627_vm12, %v4122_v50  ;;  %2631 = vst.msk [vmem:[#allocation5 + $0x30] sm:$0x1] %vm2627_vm12, %v4122_v50 }
  0xf5   : > { %v1501_v29 = vsel %vm1482_vm4, %v1468_v19, %v3730_v10  ;;  %v1502_v30 = vsel %vm1482_vm4, %v1469_v20, %v3731_v9  ;;  %2632 = vst.msk [vmem:[#allocation5 + $0x40] sm:$0x1] %vm2627_vm12, %v4122_v50  ;;  %2633 = vst.msk [vmem:[#allocation5 + $0x50] sm:$0x1] %vm2627_vm12, %v4122_v50 }
  0xf6   : > { %v3739_v11 = vpop.permute.xlu1 %3738  ;;  %v1499_v32 = vsel %vm1482_vm4, %v1466_v24, %v3725_v15  ;;  %v1500_v33 = vsel %vm1482_vm4, %v1467_v28, %v3726_v14  ;;  %2634 = vst.msk [vmem:[#allocation5 + $0x60] sm:$0x1] %vm2627_vm12, %v4122_v50  ;;  %2635 = vst.msk [vmem:[#allocation5 + $0x70] sm:$0x1] %vm2627_vm12, %v4122_v50 }
  0xf7   : > { %v3734_v16 = vpop.permute.xlu0 %3733  ;;  %v3741_v1 = vunpack.i.h.bf16 %v3739_v11  ;;  %v3740_v18 = vunpack.i.l.bf16 %v3739_v11  ;;  %2638 = vst.msk [vmem:[#allocation5 + $0x29] sm:$0x1] %vm2627_vm12, %v4122_v50  ;;  %2639 = vst.msk [vmem:[#allocation5 + $0x39] sm:$0x1] %vm2627_vm12, %v4122_v50 }
  0xf8   : > { %v3736_v22 = vunpack.i.h.bf16 %v3734_v16  ;;  %v3735_v23 = vunpack.i.l.bf16 %v3734_v16  ;;  %2640 = vst.msk [vmem:[#allocation5 + $0x49] sm:$0x1] %vm2627_vm12, %v4122_v50  ;;  %2641 = vst.msk [vmem:[#allocation5 + $0x59] sm:$0x1] %vm2627_vm12, %v4122_v50 }
  0xf9   : > { %v1534_v37 = vsel %vm1515_vm5, %v1501_v29, %v3740_v18  ;;  %v1535_v38 = vsel %vm1515_vm5, %v1502_v30, %v3741_v1  ;;  %2642 = vst.msk [vmem:[#allocation5 + $0x69] sm:$0x1] %vm2627_vm12, %v4122_v50  ;;  %2643 = vst.msk [vmem:[#allocation5 + $0x79] sm:$0x1] %vm2627_vm12, %v4122_v50 }
  0xfa   : > { %v3749_v31 = vpop.permute.xlu1 %3748  ;;  %v1532_v41 = vsel %vm1515_vm5, %v1499_v32, %v3735_v23  ;;  %v1533_v42 = vsel %vm1515_vm5, %v1500_v33, %v3736_v22 }
  0xfb   : > { %v3751_v34 = vunpack.i.h.bf16 %v3749_v31  ;;  %v3750_v35 = vunpack.i.l.bf16 %v3749_v31  ;;  %v3744_v36 = vpop.permute.xlu0 %3743 }
  0xfc   : > { %v3746_v39 = vunpack.i.h.bf16 %v3744_v36  ;;  %v3745_v40 = vunpack.i.l.bf16 %v3744_v36 }
  0xfd   : > { %v1567_v21 = vsel %vm1548_vm6, %v1534_v37, %v3750_v35  ;;  %v1568_v25 = vsel %vm1548_vm6, %v1535_v38, %v3751_v34 }
  0xfe   : > { %v1590_v43 = vpack.c.bf16 %v1568_v25, %v1567_v21  ;;  %v1565_v26 = vsel %vm1548_vm6, %v1532_v41, %v3745_v40  ;;  %v1566_v27 = vsel %vm1548_vm6, %v1533_v42, %v3746_v39  ;;  %v3759_v44 = vpop.permute.xlu1 %3758 }
  0xff   : > { %v1589_v45 = vpack.c.bf16 %v1566_v27, %v1565_v26  ;;  %v3754_v46 = vpop.permute.xlu0 %3753  ;;  %v3761_v52 = vunpack.i.h.bf16 %v3759_v44  ;;  %v3760_v53 = vunpack.i.l.bf16 %v3759_v44 }
 0x100   : > { %v3756_v55 = vunpack.i.h.bf16 %v3754_v46  ;;  %v3755_v58 = vunpack.i.l.bf16 %v3754_v46 }
 0x101   : > { %3382 = vmatprep.mubr.msk.bf16.mxu0 %vm1619_vm7, %v1589_v45  ;;  %v1406_v2 = vsel %vm1383_vm1, %v413_v54, %v3760_v53  ;;  %v1407_v3 = vsel %vm1383_vm1, %v414_v57, %v3761_v52 }
 0x102   : > { %3383 = vmatmul.mubr.msk.bf16.gmra.mrb[16].mxu0 %vm1619_vm7, %v1590_v43  ;;  %v3769_v47 = vpop.permute.xlu1 %3768  ;;  %v1404_v6 = vsel %vm1383_vm1, %v411_v56, %v3755_v58  ;;  %v1405_v7 = vsel %vm1383_vm1, %v412_v59, %v3756_v55  ;;  %v417_v58 = vld [vmem:[%s4202_s23 + $0x100] sm:$0xff]  ;;  %v418_v56 = vld [vmem:[%s4202_s23 + $0x108] sm:$0xff] }
 0x103   : > { %v3764_v48 = vpop.permute.xlu0 %3763  ;;  %v3771_v61 = vunpack.i.h.bf16 %v3769_v47  ;;  %v3770_v62 = vunpack.i.l.bf16 %v3769_v47 }
 0x104   : > { %v3766_v4 = vunpack.i.h.bf16 %v3764_v48  ;;  %v3765_v5 = vunpack.i.l.bf16 %v3764_v48 }
 0x105   : > { %v1439_v15 = vsel %vm1416_vm2, %v1406_v2, %v3770_v62  ;;  %v1440_v16 = vsel %vm1416_vm2, %v1407_v3, %v3771_v61  ;;  %v415_v61 = vld [vmem:[%s4202_s23 + $0xf0] sm:$0xff]  ;;  %v416_v62 = vld [vmem:[%s4202_s23 + $0xf8] sm:$0xff] }
 0x106   : > { %v3779_v49 = vpop.permute.xlu1 %3778  ;;  %v1437_v18 = vsel %vm1416_vm2, %v1404_v6, %v3765_v5  ;;  %v1438_v19 = vsel %vm1416_vm2, %v1405_v7, %v3766_v4 }
 0x107   : > { %v3774_v51 = vpop.permute.xlu0 %3773  ;;  %v3781_v8 = vunpack.i.h.bf16 %v3779_v49  ;;  %v3780_v9 = vunpack.i.l.bf16 %v3779_v49 }
 0x108   : > { %v3776_v10 = vunpack.i.h.bf16 %v3774_v51  ;;  %v3775_v11 = vunpack.i.l.bf16 %v3774_v51 }
 0x109   : > { %v1472_v23 = vsel %vm1449_vm3, %v1439_v15, %v3780_v9  ;;  %v1473_v24 = vsel %vm1449_vm3, %v1440_v16, %v3781_v8 }
 0x10a   : > { %v3789_v60 = vpop.permute.xlu1 %3788  ;;  %v1470_v30 = vsel %vm1449_vm3, %v1437_v18, %v3775_v11  ;;  %v1471_v31 = vsel %vm1449_vm3, %v1438_v19, %v3776_v10 }
 0x10b   : > { %v3784_v63 = vpop.permute.xlu0 %3783  ;;  %v3791_v12 = vunpack.i.h.bf16 %v3789_v60  ;;  %v3790_v13 = vunpack.i.l.bf16 %v3789_v60 }
 0x10c   : > { %v3786_v17 = vunpack.i.h.bf16 %v3784_v63  ;;  %v3785_v0 = vunpack.i.l.bf16 %v3784_v63 }
 0x10d   : > { %v1505_v32 = vsel %vm1482_vm4, %v1472_v23, %v3790_v13  ;;  %v1506_v33 = vsel %vm1482_vm4, %v1473_v24, %v3791_v12 }
 0x10e   : > { %v3799_v14 = vpop.permute.xlu1 %3798  ;;  %v1503_v35 = vsel %vm1482_vm4, %v1470_v30, %v3785_v0  ;;  %v1504_v36 = vsel %vm1482_vm4, %v1471_v31, %v3786_v17 }
 0x10f   : > { %v3794_v1 = vpop.permute.xlu0 %3793  ;;  %v3801_v20 = vunpack.i.h.bf16 %v3799_v14  ;;  %v3800_v22 = vunpack.i.l.bf16 %v3799_v14 }
 0x110   : > { %v3796_v28 = vunpack.i.h.bf16 %v3794_v1  ;;  %v3795_v29 = vunpack.i.l.bf16 %v3794_v1 }
 0x111   : > { %v1538_v40 = vsel %vm1515_vm5, %v1505_v32, %v3800_v22  ;;  %v1539_v41 = vsel %vm1515_vm5, %v1506_v33, %v3801_v20 }
 0x112   : > { %v3809_v34 = vpop.permute.xlu1 %3808  ;;  %v1536_v25 = vsel %vm1515_vm5, %v1503_v35, %v3795_v29  ;;  %v1537_v43 = vsel %vm1515_vm5, %v1504_v36, %v3796_v28 }
 0x113   : > { %v3811_v37 = vunpack.i.h.bf16 %v3809_v34  ;;  %v3810_v38 = vunpack.i.l.bf16 %v3809_v34  ;;  %v3804_v39 = vpop.permute.xlu0 %3803 }
 0x114   : > { %v3806_v42 = vunpack.i.h.bf16 %v3804_v39  ;;  %v3805_v21 = vunpack.i.l.bf16 %v3804_v39 }
 0x115   : > { %v1571_v26 = vsel %vm1548_vm6, %v1538_v40, %v3810_v38  ;;  %v1572_v27 = vsel %vm1548_vm6, %v1539_v41, %v3811_v37 }
 0x116   : > { %v1592_v44 = vpack.c.bf16 %v1572_v27, %v1571_v26  ;;  %v1569_v45 = vsel %vm1548_vm6, %v1536_v25, %v3805_v21  ;;  %v1570_v46 = vsel %vm1548_vm6, %v1537_v43, %v3806_v42  ;;  %v3819_v47 = vpop.permute.xlu1 %3818 }
 0x117   : > { %v1591_v48 = vpack.c.bf16 %v1570_v46, %v1569_v45  ;;  %v3814_v49 = vpop.permute.xlu0 %3813  ;;  %v3821_v57 = vunpack.i.h.bf16 %v3819_v47  ;;  %v3820_v55 = vunpack.i.l.bf16 %v3819_v47 }
 0x118   : > { %v3816_v59 = vunpack.i.h.bf16 %v3814_v49  ;;  %v3815_v60 = vunpack.i.l.bf16 %v3814_v49 }
 0x119   : > { %3386 = vmatprep.mubr.msk.bf16.mxu0 %vm1619_vm7, %v1591_v48  ;;  %v1410_v5 = vsel %vm1383_vm1, %v417_v58, %v3820_v55  ;;  %v1411_v6 = vsel %vm1383_vm1, %v418_v56, %v3821_v57 }
 0x11a   : > { %3387 = vmatmul.mubr.msk.bf16.gmra.mrb[20].mxu0 %vm1619_vm7, %v1592_v44  ;;  %v3829_v51 = vpop.permute.xlu1 %3828  ;;  %v1408_v9 = vsel %vm1383_vm1, %v415_v61, %v3815_v60  ;;  %v1409_v10 = vsel %vm1383_vm1, %v416_v62, %v3816_v59  ;;  %v421_v60 = vld [vmem:[%s4202_s23 + $0x128] sm:$0xff]  ;;  %v422_v61 = vld [vmem:[%s4202_s23 + $0x130] sm:$0xff] }
 0x11b   : > { %v3824_v52 = vpop.permute.xlu0 %3823  ;;  %v3831_v2 = vunpack.i.h.bf16 %v3829_v51  ;;  %v3830_v3 = vunpack.i.l.bf16 %v3829_v51 }
 0x11c   : > { %v3826_v7 = vunpack.i.h.bf16 %v3824_v52  ;;  %v3825_v8 = vunpack.i.l.bf16 %v3824_v52 }
 0x11d   : > { %v1443_v0 = vsel %vm1416_vm2, %v1410_v5, %v3830_v3  ;;  %v1444_v1 = vsel %vm1416_vm2, %v1411_v6, %v3831_v2  ;;  %v419_v2 = vld [vmem:[%s4202_s23 + $0x118] sm:$0xff]  ;;  %v420_v3 = vld [vmem:[%s4202_s23 + $0x120] sm:$0xff]  ;;  %s4125_s23 = smov 32  }
 0x11e   : > { %v3839_v53 = vpop.permute.xlu1 %3838  ;;  %v1441_v22 = vsel %vm1416_vm2, %v1408_v9, %v3825_v8  ;;  %v1442_v23 = vsel %vm1416_vm2, %v1409_v10, %v3826_v7 }
 0x11f   : > { %v3834_v54 = vpop.permute.xlu0 %3833  ;;  %v3841_v11 = vunpack.i.h.bf16 %v3839_v53  ;;  %v3840_v12 = vunpack.i.l.bf16 %v3839_v53 }
 0x120   : > { %v3836_v13 = vunpack.i.h.bf16 %v3834_v54  ;;  %v3835_v14 = vunpack.i.l.bf16 %v3834_v54 }
 0x121   : > { %v1476_v29 = vsel %vm1449_vm3, %v1443_v0, %v3840_v12  ;;  %v1477_v30 = vsel %vm1449_vm3, %v1444_v1, %v3841_v11 }
 0x122   : > { %v3849_v63 = vpop.permute.xlu1 %3848  ;;  %v1474_v33 = vsel %vm1449_vm3, %v1441_v22, %v3835_v14  ;;  %v1475_v34 = vsel %vm1449_vm3, %v1442_v23, %v3836_v13 }
 0x123   : > { %v3844_v4 = vpop.permute.xlu0 %3843  ;;  %v3851_v15 = vunpack.i.h.bf16 %v3849_v63  ;;  %v3850_v16 = vunpack.i.l.bf16 %v3849_v63 }
 0x124   : > { %v3846_v18 = vunpack.i.h.bf16 %v3844_v4  ;;  %v3845_v19 = vunpack.i.l.bf16 %v3844_v4 }
 0x125   : > { %v1509_v35 = vsel %vm1482_vm4, %v1476_v29, %v3850_v16  ;;  %v1510_v36 = vsel %vm1482_vm4, %v1477_v30, %v3851_v15 }
 0x126   : > { %v3859_v17 = vpop.permute.xlu1 %3858  ;;  %v1507_v38 = vsel %vm1482_vm4, %v1474_v33, %v3845_v19  ;;  %v1508_v39 = vsel %vm1482_vm4, %v1475_v34, %v3846_v18 }
 0x127   : > { %v3854_v20 = vpop.permute.xlu0 %3853  ;;  %v3861_v24 = vunpack.i.h.bf16 %v3859_v17  ;;  %v3860_v28 = vunpack.i.l.bf16 %v3859_v17 }
 0x128   : > { %v3856_v31 = vunpack.i.h.bf16 %v3854_v20  ;;  %v3855_v32 = vunpack.i.l.bf16 %v3854_v20 }
 0x129   : > { %v1542_v21 = vsel %vm1515_vm5, %v1509_v35, %v3860_v28  ;;  %v1543_v25 = vsel %vm1515_vm5, %v1510_v36, %v3861_v24 }
 0x12a   : > { %v3869_v37 = vpop.permute.xlu1 %3868  ;;  %v1540_v27 = vsel %vm1515_vm5, %v1507_v38, %v3855_v32  ;;  %v1541_v44 = vsel %vm1515_vm5, %v1508_v39, %v3856_v31 }
 0x12b   : > { %v3871_v40 = vunpack.i.h.bf16 %v3869_v37  ;;  %v3870_v41 = vunpack.i.l.bf16 %v3869_v37  ;;  %v3864_v42 = vpop.permute.xlu0 %3863 }
 0x12c   : > { %v3866_v43 = vunpack.i.h.bf16 %v3864_v42  ;;  %v3865_v26 = vunpack.i.l.bf16 %v3864_v42 }
 0x12d   : > { %v1575_v45 = vsel %vm1548_vm6, %v1542_v21, %v3870_v41  ;;  %v1576_v46 = vsel %vm1548_vm6, %v1543_v25, %v3871_v40 }
 0x12e   : > { %v1594_v47 = vpack.c.bf16 %v1576_v46, %v1575_v45  ;;  %v1573_v48 = vsel %vm1548_vm6, %v1540_v27, %v3865_v26  ;;  %v1574_v49 = vsel %vm1548_vm6, %v1541_v44, %v3866_v43  ;;  %v3879_v51 = vpop.permute.xlu1 %3878 }
 0x12f   : > { %v1593_v52 = vpack.c.bf16 %v1574_v49, %v1573_v48  ;;  %v3874_v53 = vpop.permute.xlu0 %3873  ;;  %v3881_v56 = vunpack.i.h.bf16 %v3879_v51  ;;  %v3880_v59 = vunpack.i.l.bf16 %v3879_v51 }
 0x130   : > { %v3876_v62 = vunpack.i.h.bf16 %v3874_v53  ;;  %v3875_v63 = vunpack.i.l.bf16 %v3874_v53 }
 0x131   : > { %3390 = vmatprep.mubr.msk.bf16.mxu0 %vm1619_vm7, %v1593_v52  ;;  %v1414_v8 = vsel %vm1383_vm1, %v421_v60, %v3880_v59  ;;  %v1415_v9 = vsel %vm1383_vm1, %v422_v61, %v3881_v56  ;;  %v4076_v56 = vld [vmem:[%s5348_s3 + $0x10] sm:$0xff]   ;;  %v4077_v59 = vld [vmem:[%s5348_s3 + $0x18] sm:$0xff]   ;;  %v4941_v60 = vld [vmem:[%s5347_s2] ss:$0 sm:$0xff] }
 0x132   : > { %3391 = vmatmul.mubr.msk.bf16.gmra.mrb[24].mxu0 %vm1619_vm7, %v1594_v47  ;;  %v3889_v54 = vpop.permute.xlu1 %3888  ;;  %v1412_v12 = vsel %vm1383_vm1, %v419_v2, %v3875_v63  ;;  %v1413_v13 = vsel %vm1383_vm1, %v420_v3, %v3876_v62  ;;  %v4078_v62 = vld [vmem:[%s5348_s3 + $0x20] sm:$0xff]   ;;  %vm3013_vm1 = vcmask 1044484  }
 0x133   : > { %v3884_v57 = vpop.permute.xlu0 %3883  ;;  %v3891_v5 = vunpack.i.h.bf16 %v3889_v54  ;;  %v3890_v6 = vunpack.i.l.bf16 %v3889_v54 }
 0x134   : > { %v3886_v10 = vunpack.i.h.bf16 %v3884_v57  ;;  %v3885_v11 = vunpack.i.l.bf16 %v3884_v57  ;;  %v4074_v57 = vld [vmem:[%s5348_s3] sm:$0xff]  }
 0x135   : > { %v1447_v19 = vsel %vm1416_vm2, %v1414_v8, %v3890_v6  ;;  %v1448_v20 = vsel %vm1416_vm2, %v1415_v9, %v3891_v5 }
 0x136   : > { %v3899_v55 = vpop.permute.xlu1 %3898  ;;  %v1445_v28 = vsel %vm1416_vm2, %v1412_v12, %v3885_v11  ;;  %v1446_v29 = vsel %vm1416_vm2, %v1413_v13, %v3886_v10  ;;  %v4079_v10 = vld [vmem:[%s5348_s3 + $0x28] sm:$0xff]   ;;  %v4080_v13 = vld [vmem:[%s5348_s3 + $0x30] sm:$0xff]   ;;  %vm3015_vm2 = vcmask 1045509  }
 0x137   : > { %v3894_v58 = vpop.permute.xlu0 %3893  ;;  %v3901_v14 = vunpack.i.h.bf16 %v3899_v55  ;;  %v3900_v15 = vunpack.i.l.bf16 %v3899_v55  ;;  %v4123_v55 = vmov 0  }
 0x138   : > { %v3896_v16 = vunpack.i.h.bf16 %v3894_v58  ;;  %v3895_v17 = vunpack.i.l.bf16 %v3894_v58  ;;  %2459 = vmatprep.subr.bf16.mxu1 %v4123_v55  ;;  %2839 = vmatprep.subr.bf16.mxu0 %v4123_v55  ;;  %v4075_v58 = vld [vmem:[%s5348_s3 + $0x8] sm:$0xff]  }
 0x139   : > { %v1480_v32 = vsel %vm1449_vm3, %v1447_v19, %v3900_v15  ;;  %v1481_v33 = vsel %vm1449_vm3, %v1448_v20, %v3901_v14  ;;  %2460 = vmatpush1.bf16.msra.mxu1 %v4074_v57  ;;  %v4081_v14 = vld [vmem:[%s5348_s3 + $0x38] sm:$0xff]   ;;  %v4082_v19 = vld [vmem:[%s5348_s3 + $0x40] sm:$0xff]   ;;  %v4083_v20 = vld [vmem:[%s5348_s3 + $0x48] sm:$0xff]  }
 0x13a   : > { %v3909_v4 = vpop.permute.xlu1 %3908  ;;  %v1478_v36 = vsel %vm1449_vm3, %v1445_v28, %v3895_v17  ;;  %v1479_v37 = vsel %vm1449_vm3, %v1446_v29, %v3896_v16  ;;  %2461 = vmatprep.subr.bf16.mxu1 %v4123_v55  ;;  %vm3017_vm3 = vcmask 1046534  }
 0x13b   : > { %v3904_v7 = vpop.permute.xlu0 %3903  ;;  %v3911_v0 = vunpack.i.h.bf16 %v3909_v4  ;;  %v3910_v1 = vunpack.i.l.bf16 %v3909_v4 }
 0x13c   : > { %v3906_v22 = vunpack.i.h.bf16 %v3904_v7  ;;  %v3905_v23 = vunpack.i.l.bf16 %v3904_v7 }
 0x13d   : > { %v1513_v38 = vsel %vm1482_vm4, %v1480_v32, %v3910_v1  ;;  %v1514_v39 = vsel %vm1482_vm4, %v1481_v33, %v3911_v0  ;;  %2462 = vmatpush1.bf16.msra.mxu1 %v4075_v58 }
 0x13e   : > { %v3919_v18 = vpop.permute.xlu1 %3918  ;;  %v1511_v41 = vsel %vm1482_vm4, %v1478_v36, %v3905_v23  ;;  %v1512_v42 = vsel %vm1482_vm4, %v1479_v37, %v3906_v22  ;;  %2463 = vmatprep.subr.bf16.mxu1 %v4123_v55  ;;  %vm3019_vm4 = vcmask 1047559  }
 0x13f   : > { %v3914_v24 = vpop.permute.xlu0 %3913  ;;  %v3921_v30 = vunpack.i.h.bf16 %v3919_v18  ;;  %v3920_v31 = vunpack.i.l.bf16 %v3919_v18 }
 0x140   : > { %v3916_v34 = vunpack.i.h.bf16 %v3914_v24  ;;  %v3915_v35 = vunpack.i.l.bf16 %v3914_v24 }
 0x141   : > { %v1546_v26 = vsel %vm1515_vm5, %v1513_v38, %v3920_v31  ;;  %v1547_v27 = vsel %vm1515_vm5, %v1514_v39, %v3921_v30  ;;  %2464 = vmatpush1.bf16.msra.mxu1 %v4076_v56 }
 0x142   : > { %v3929_v40 = vpop.permute.xlu1 %3928  ;;  %v1544_v46 = vsel %vm1515_vm5, %v1511_v41, %v3915_v35  ;;  %v1545_v47 = vsel %vm1515_vm5, %v1512_v42, %v3916_v34  ;;  %2465 = vmatprep.subr.bf16.mxu1 %v4123_v55  ;;  %vm3195_vm5 = vcmask 15360  }
 0x143   : > { %v3931_v21 = vunpack.i.h.bf16 %v3929_v40  ;;  %v3930_v25 = vunpack.i.l.bf16 %v3929_v40  ;;  %v3924_v43 = vpop.permute.xlu0 %3923 }
 0x144   : > { %v3926_v44 = vunpack.i.h.bf16 %v3924_v43  ;;  %v3925_v45 = vunpack.i.l.bf16 %v3924_v43 }
 0x145   : > { %v1579_v48 = vsel %vm1548_vm6, %v1546_v26, %v3930_v25  ;;  %v1580_v49 = vsel %vm1548_vm6, %v1547_v27, %v3931_v21  ;;  %2466 = vmatpush1.bf16.msra.mxu1 %v4077_v59 }
 0x146   : > { %v1596_v51 = vpack.c.bf16 %v1580_v49, %v1579_v48  ;;  %v1577_v52 = vsel %vm1548_vm6, %v1544_v46, %v3925_v45  ;;  %v1578_v53 = vsel %vm1548_vm6, %v1545_v47, %v3926_v44  ;;  %2467 = vmatprep.subr.bf16.mxu1 %v4123_v55 }
 0x147   : > { %v1595_v54 = vpack.c.bf16 %v1578_v53, %v1577_v52 }
 0x149   : > { %3394 = vmatprep.mubr.msk.bf16.mxu0 %vm1619_vm7, %v1595_v54  ;;  %2468 = vmatpush1.bf16.msra.mxu1 %v4078_v62 }
 0x14a   : > { %3395 = vmatmul.mubr.msk.bf16.gmra.mrb[28].mxu0 %vm1619_vm7, %v1596_v51  ;;  %2469 = vmatprep.subr.bf16.mxu1 %v4123_v55 }
 0x14d   : > { %2470 = vmatpush1.bf16.msra.mxu1 %v4079_v10 }
 0x14e   : > { %2471 = vmatprep.subr.bf16.mxu1 %v4123_v55 }
 0x151   : > { %2472 = vmatpush1.bf16.msra.mxu1 %v4080_v13 }
 0x152   : > { %2473 = vmatprep.subr.bf16.mxu1 %v4123_v55 }
 0x155   : > { %2474 = vmatpush1.bf16.msra.mxu1 %v4081_v14 }
 0x156   : > { %2475 = vmatprep.subr.bf16.mxu1 %v4123_v55 }
 0x159   : > { %2476 = vmatpush1.bf16.msra.mxu1 %v4082_v19 }
 0x15a   : > { %2477 = vmatprep.subr.bf16.mxu1 %v4123_v55 }
 0x15d   : > { %2478 = vmatpush1.bf16.msra.mxu1 %v4083_v20 }
 0x15e   : > { %3418 = vmatprep.subr.bf16.mxu1 %v4122_v50 }
 0x175   : > { %v3368_v61 = vpop.f32.mrb[0].mxu0 }
 0x176   : > { %v1715_v63 = vadd.f32 %v3368_v61, %v4941_v60  ;;  %v1706_v2 = vpop.f32.mrb[1].mxu0 }
 0x177   : > { %v1707_v3 = vadd.f32 %v4941_v60, %v1706_v2  ;;  %v3369_v4 = vpop.f32.mrb[2].mxu0 }
 0x178   : > { %v1835_v5 = vmax.f32 %v1715_v63, 0.0  ;;  %v1718_v6 = vadd.f32 %v3369_v4, %v4941_v60  ;;  %v1709_v7 = vpop.f32.mrb[3].mxu0 }
 0x179   : > { %v1833_v8 = vmax.f32 %v1707_v3, 0.0  ;;  %v1710_v9 = vadd.f32 %v4941_v60, %v1709_v7 }
 0x17a   : > { %1868 = vst.msk [vmem:[#allocation2 + $0x10] sm:$0xff] %vm1865_vm9, %v1835_v5  ;;  %v1836_v11 = vmax.f32 %v1718_v6, 0.0 }
 0x17b   : > { %1866 = vst.msk [vmem:[#allocation2] sm:$0xff] %vm1865_vm9, %v1833_v8  ;;  %v1834_v12 = vmax.f32 %v1710_v9, 0.0 }
 0x17c   : > { %1869 = vst.msk [vmem:[#allocation2 + $0x18] sm:$0xff] %vm1865_vm9, %v1836_v11 }
 0x17d   : > { %1867 = vst.msk [vmem:[#allocation2 + $0x8] sm:$0xff] %vm1865_vm9, %v1834_v12 }
 0x183   : > { %v1900_v15 = vld [vmem:[#allocation2 + $0x10] ss:$2 sm:$0xff]  ;;  %v1932_v16 = vld [vmem:[#allocation2 + $0x11] ss:$2 sm:$0xff] }
 0x184   : > { %v1962_v17 = vmax.f32 %v1900_v15, %v1932_v16  ;;  %v1898_v0 = vld [vmem:[#allocation2] ss:$2 sm:$0xff]  ;;  %v1930_v1 = vld [vmem:[#allocation2 + $0x1] ss:$2 sm:$0xff] }
 0x185   : > { %v1961_v18 = vmax.f32 %v1898_v0, %v1930_v1 }
 0x186   : > { %1995 = vst.msk [vmem:[#allocation3 + $0xa] sm:$0xff] %vm1865_vm9, %v1962_v17 }
 0x187   : > { %1994 = vst.msk [vmem:[#allocation3 + $0x2] sm:$0xff] %vm1865_vm9, %v1961_v18 }
 0x18d   : > { %v3372_v22 = vpop.f32.mrb[4].mxu0  ;;  %v2075_v23 = vld [vmem:[#allocation3 + $0xc] sm:$0xff] }
 0x18e   : > { %v2043_v24 = vld [vmem:[#allocation3 + $0xa] sm:$0xff]  ;;  %v1731_v28 = vadd.f32 %v3372_v22, %v4941_v60  ;;  %v1722_v29 = vpop.f32.mrb[5].mxu0  ;;  %v2042_v31 = vld [vmem:[#allocation3 + $0x2] sm:$0xff] }
 0x18f   : > { %v2074_v30 = vld [vmem:[#allocation3 + $0x4] sm:$0xff]  ;;  %v1723_v33 = vadd.f32 %v4941_v60, %v1722_v29  ;;  %v3373_v34 = vpop.f32.mrb[6].mxu0  ;;  %v3937_v36 = vpack.i.bf16 %v2043_v24, %v2042_v31 }
 0x190   : > { %v2026_v32 = vld [vmem:[#allocation3 + $0x1] sm:$0xff]  ;;  %v2333_v35 = vpack.c.bf16 %v2075_v23, %v2074_v30  ;;  %v2027_v37 = vld [vmem:[#allocation3 + $0x9] sm:$0xff]  ;;  %v1839_v38 = vmax.f32 %v1731_v28, 0.0  ;;  %v1734_v39 = vadd.f32 %v3373_v34, %v4941_v60  ;;  %v1725_v40 = vpop.f32.mrb[7].mxu0 }
 0x191   : > { %v3932_v41 = vpack.i.bf16 %v2027_v37, %v2026_v32  ;;  %v1837_v42 = vmax.f32 %v1723_v33, 0.0  ;;  %v1726_v21 = vadd.f32 %v4941_v60, %v1725_v40  ;;  %3938 = vrot.lane.b32.xlu1 %v3937_v36, %s4124_s22  ;;  %v2058_v25 = vld [vmem:[#allocation3 + $0x3] sm:$0xff]  ;;  %v2059_v43 = vld [vmem:[#allocation3 + $0xb] sm:$0xff] }
 0x192   : > { %3288 = vmatprep.mubr.msk.bf16.mxu1 %vm1865_vm9, %v2333_v35  ;;  %1872 = vst.msk [vmem:[#allocation2 + $0x30] sm:$0xff] %vm1865_vm9, %v1839_v38  ;;  %v1840_v26 = vmax.f32 %v1734_v39, 0.0  ;;  %v3942_v44 = vpack.i.bf16 %v2059_v43, %v2058_v25 }
 0x193   : > { %3933 = vrot.lane.b32.xlu0 %v3932_v41, %s4125_s23  ;;  %1870 = vst.msk [vmem:[#allocation2 + $0x20] sm:$0xff] %vm1865_vm9, %v1837_v42  ;;  %v1838_v27 = vmax.f32 %v1726_v21, 0.0 }
 0x194   : > { %1873 = vst.msk [vmem:[#allocation2 + $0x38] sm:$0xff] %vm1865_vm9, %v1840_v26 }
 0x195   : > { %1871 = vst.msk [vmem:[#allocation2 + $0x28] sm:$0xff] %vm1865_vm9, %v1838_v27 }
 0x197   : > { %3943 = vrot.lane.b32.xlu0 %v3942_v44, %s4126_s24 }
 0x19b   : > { %v1904_v45 = vld [vmem:[#allocation2 + $0x30] ss:$2 sm:$0xff]  ;;  %v1936_v46 = vld [vmem:[#allocation2 + $0x31] ss:$2 sm:$0xff] }
 0x19c   : > { %v1964_v47 = vmax.f32 %v1904_v45, %v1936_v46  ;;  %v1902_v48 = vld [vmem:[#allocation2 + $0x20] ss:$2 sm:$0xff]  ;;  %v1934_v49 = vld [vmem:[#allocation2 + $0x21] ss:$2 sm:$0xff] }
 0x19d   : > { %v1963_v51 = vmax.f32 %v1902_v48, %v1934_v49 }
 0x19e   : > { %1997 = vst.msk [vmem:[#allocation3 + $0x22] sm:$0xff] %vm1865_vm9, %v1964_v47 }
 0x19f   : > { %1996 = vst.msk [vmem:[#allocation3 + $0x1a] sm:$0xff] %vm1865_vm9, %v1963_v51 }
 0x1a5   : > { %v3376_v52 = vpop.f32.mrb[8].mxu0  ;;  %v2045_v53 = vld [vmem:[#allocation3 + $0x22] sm:$0xff] }
 0x1a6   : > { %v1747_v54 = vadd.f32 %v3376_v52, %v4941_v60  ;;  %v1738_v57 = vpop.f32.mrb[9].mxu0  ;;  %v2028_v58 = vld [vmem:[#allocation3 + $0x19] sm:$0xff]  ;;  %v2029_v56 = vld [vmem:[#allocation3 + $0x21] sm:$0xff] }
 0x1a7   : > { %v2044_v59 = vld [vmem:[#allocation3 + $0x1a] sm:$0xff]  ;;  %v1739_v61 = vadd.f32 %v4941_v60, %v1738_v57  ;;  %v3377_v62 = vpop.f32.mrb[10].mxu0  ;;  %v3947_v63 = vpack.i.bf16 %v2029_v56, %v2028_v58  ;;  %v2061_v7 = vld [vmem:[#allocation3 + $0x23] sm:$0xff] }
 0x1a8   : > { %v3952_v2 = vpack.i.bf16 %v2045_v53, %v2044_v59  ;;  %v1843_v3 = vmax.f32 %v1747_v54, 0.0  ;;  %v1750_v4 = vadd.f32 %v3377_v62, %v4941_v60  ;;  %v1741_v5 = vpop.f32.mrb[11].mxu0  ;;  %v2060_v6 = vld [vmem:[#allocation3 + $0x1b] sm:$0xff] }
 0x1a9   : > { %v1841_v8 = vmax.f32 %v1739_v61, 0.0  ;;  %v1742_v9 = vadd.f32 %v4941_v60, %v1741_v5  ;;  %3948 = vrot.lane.b32.xlu1 %v3947_v63, %s4125_s23  ;;  %v3957_v12 = vpack.i.bf16 %v2061_v7, %v2060_v6 }
 0x1aa   : > { %3953 = vrot.lane.b32.xlu0 %v3952_v2, %s4124_s22  ;;  %1876 = vst.msk [vmem:[#allocation2 + $0x50] sm:$0xff] %vm1865_vm9, %v1843_v3  ;;  %v1844_v10 = vmax.f32 %v1750_v4, 0.0 }
 0x1ab   : > { %1874 = vst.msk [vmem:[#allocation2 + $0x40] sm:$0xff] %vm1865_vm9, %v1841_v8  ;;  %v1842_v11 = vmax.f32 %v1742_v9, 0.0 }
 0x1ac   : > { %1877 = vst.msk [vmem:[#allocation2 + $0x58] sm:$0xff] %vm1865_vm9, %v1844_v10 }
 0x1ad   : > { %1875 = vst.msk [vmem:[#allocation2 + $0x48] sm:$0xff] %vm1865_vm9, %v1842_v11  ;;  %3958 = vrot.lane.b32.xlu1 %v3957_v12, %s4126_s24 }
 0x1b3   : > { %v1908_v13 = vld [vmem:[#allocation2 + $0x50] ss:$2 sm:$0xff]  ;;  %v1940_v14 = vld [vmem:[#allocation2 + $0x51] ss:$2 sm:$0xff] }
 0x1b4   : > { %v1966_v15 = vmax.f32 %v1908_v13, %v1940_v14  ;;  %v1906_v16 = vld [vmem:[#allocation2 + $0x40] ss:$2 sm:$0xff]  ;;  %v1938_v17 = vld [vmem:[#allocation2 + $0x41] ss:$2 sm:$0xff] }
 0x1b5   : > { %v1965_v0 = vmax.f32 %v1906_v16, %v1938_v17 }
 0x1b6   : > { %1999 = vst.msk [vmem:[#allocation3 + $0x3a] sm:$0xff] %vm1865_vm9, %v1966_v15 }
 0x1b7   : > { %1998 = vst.msk [vmem:[#allocation3 + $0x32] sm:$0xff] %vm1865_vm9, %v1965_v0 }
 0x1bd   : > { %v3380_v1 = vpop.f32.mrb[12].mxu0  ;;  %v2047_v18 = vld [vmem:[#allocation3 + $0x3a] sm:$0xff] }
 0x1be   : > { %v1763_v19 = vadd.f32 %v3380_v1, %v4941_v60  ;;  %v1754_v20 = vpop.f32.mrb[13].mxu0  ;;  %v2046_v22 = vld [vmem:[#allocation3 + $0x32] sm:$0xff]  ;;  %v2063_v36 = vld [vmem:[#allocation3 + $0x3b] sm:$0xff] }
 0x1bf   : > { %v2030_v23 = vld [vmem:[#allocation3 + $0x31] sm:$0xff]  ;;  %v2031_v24 = vld [vmem:[#allocation3 + $0x39] sm:$0xff]  ;;  %v1755_v28 = vadd.f32 %v4941_v60, %v1754_v20  ;;  %v3381_v29 = vpop.f32.mrb[14].mxu0  ;;  %v3967_v30 = vpack.i.bf16 %v2047_v18, %v2046_v22 }
 0x1c0   : > { %v3962_v31 = vpack.i.bf16 %v2031_v24, %v2030_v23  ;;  %v1847_v32 = vmax.f32 %v1763_v19, 0.0  ;;  %v1766_v33 = vadd.f32 %v3381_v29, %v4941_v60  ;;  %v1757_v34 = vpop.f32.mrb[15].mxu0  ;;  %v2062_v35 = vld [vmem:[#allocation3 + $0x33] sm:$0xff] }
 0x1c1   : > { %v1845_v37 = vmax.f32 %v1755_v28, 0.0  ;;  %v1758_v38 = vadd.f32 %v4941_v60, %v1757_v34  ;;  %3968 = vrot.lane.b32.xlu1 %v3967_v30, %s4124_s22  ;;  %v3972_v41 = vpack.i.bf16 %v2063_v36, %v2062_v35 }
 0x1c2   : > { %3963 = vrot.lane.b32.xlu0 %v3962_v31, %s4125_s23  ;;  %1880 = vst.msk [vmem:[#allocation2 + $0x70] sm:$0xff] %vm1865_vm9, %v1847_v32  ;;  %v1848_v39 = vmax.f32 %v1766_v33, 0.0 }
 0x1c3   : > { %1878 = vst.msk [vmem:[#allocation2 + $0x60] sm:$0xff] %vm1865_vm9, %v1845_v37  ;;  %v1846_v40 = vmax.f32 %v1758_v38, 0.0 }
 0x1c4   : > { %1881 = vst.msk [vmem:[#allocation2 + $0x78] sm:$0xff] %vm1865_vm9, %v1848_v39 }
 0x1c5   : > { %1879 = vst.msk [vmem:[#allocation2 + $0x68] sm:$0xff] %vm1865_vm9, %v1846_v40 }
 0x1c6   : > { %3973 = vrot.lane.b32.xlu0 %v3972_v41, %s4126_s24 }
 0x1cb   : > { %v1912_v42 = vld [vmem:[#allocation2 + $0x70] ss:$2 sm:$0xff]  ;;  %v1944_v21 = vld [vmem:[#allocation2 + $0x71] ss:$2 sm:$0xff] }
 0x1cc   : > { %v1968_v25 = vmax.f32 %v1912_v42, %v1944_v21  ;;  %v1910_v43 = vld [vmem:[#allocation2 + $0x60] ss:$2 sm:$0xff]  ;;  %v1942_v26 = vld [vmem:[#allocation2 + $0x61] ss:$2 sm:$0xff] }
 0x1cd   : > { %v1967_v27 = vmax.f32 %v1910_v43, %v1942_v26  ;;  %v2010_v43 = vld [vmem:[#allocation3] sm:$0xff]  ;;  %v2011_v26 = vld [vmem:[#allocation3 + $0x8] sm:$0xff] }
 0x1ce   : > { %2001 = vst.msk [vmem:[#allocation3 + $0x52] sm:$0xff] %vm1865_vm9, %v1968_v25 }
 0x1cf   : > { %2000 = vst.msk [vmem:[#allocation3 + $0x4a] sm:$0xff] %vm1865_vm9, %v1967_v27 }
 0x1d5   : > { %v3384_v44 = vpop.f32.mrb[16].mxu0  ;;  %v2049_v45 = vld [vmem:[#allocation3 + $0x52] sm:$0xff] }
 0x1d6   : > { %v1779_v46 = vadd.f32 %v3384_v44, %v4941_v60  ;;  %v1770_v47 = vpop.f32.mrb[17].mxu0  ;;  %v2032_v48 = vld [vmem:[#allocation3 + $0x49] sm:$0xff]  ;;  %v2033_v49 = vld [vmem:[#allocation3 + $0x51] sm:$0xff] }
 0x1d7   : > { %v2048_v51 = vld [vmem:[#allocation3 + $0x4a] sm:$0xff]  ;;  %v1771_v52 = vadd.f32 %v4941_v60, %v1770_v47  ;;  %v3385_v53 = vpop.f32.mrb[18].mxu0  ;;  %v3977_v54 = vpack.i.bf16 %v2033_v49, %v2032_v48  ;;  %v2065_v62 = vld [vmem:[#allocation3 + $0x53] sm:$0xff] }
 0x1d8   : > { %v3982_v57 = vpack.i.bf16 %v2049_v45, %v2048_v51  ;;  %v1851_v58 = vmax.f32 %v1779_v46, 0.0  ;;  %v1782_v56 = vadd.f32 %v3385_v53, %v4941_v60  ;;  %v1773_v59 = vpop.f32.mrb[19].mxu0  ;;  %v2064_v61 = vld [vmem:[#allocation3 + $0x4b] sm:$0xff] }
 0x1d9   : > { %v1849_v63 = vmax.f32 %v1771_v52, 0.0  ;;  %v1774_v2 = vadd.f32 %v4941_v60, %v1773_v59  ;;  %3978 = vrot.lane.b32.xlu1 %v3977_v54, %s4125_s23  ;;  %v3987_v5 = vpack.i.bf16 %v2065_v62, %v2064_v61 }
 0x1da   : > { %3983 = vrot.lane.b32.xlu0 %v3982_v57, %s4124_s22  ;;  %1884 = vst.msk [vmem:[#allocation2 + $0x90] sm:$0xff] %vm1865_vm9, %v1851_v58  ;;  %v1852_v3 = vmax.f32 %v1782_v56, 0.0 }
 0x1db   : > { %1882 = vst.msk [vmem:[#allocation2 + $0x80] sm:$0xff] %vm1865_vm9, %v1849_v63  ;;  %v1850_v4 = vmax.f32 %v1774_v2, 0.0 }
 0x1dc   : > { %1885 = vst.msk [vmem:[#allocation2 + $0x98] sm:$0xff] %vm1865_vm9, %v1852_v3 }
 0x1dd   : > { %1883 = vst.msk [vmem:[#allocation2 + $0x88] sm:$0xff] %vm1865_vm9, %v1850_v4  ;;  %3988 = vrot.lane.b32.xlu1 %v3987_v5, %s4126_s24 }
 0x1e3   : > { %v1916_v6 = vld [vmem:[#allocation2 + $0x90] ss:$2 sm:$0xff]  ;;  %v1948_v7 = vld [vmem:[#allocation2 + $0x91] ss:$2 sm:$0xff] }
 0x1e4   : > { %v1970_v8 = vmax.f32 %v1916_v6, %v1948_v7  ;;  %v1914_v9 = vld [vmem:[#allocation2 + $0x80] ss:$2 sm:$0xff]  ;;  %v1946_v10 = vld [vmem:[#allocation2 + $0x81] ss:$2 sm:$0xff] }
 0x1e5   : > { %v1969_v11 = vmax.f32 %v1914_v9, %v1946_v10 }
 0x1e6   : > { %2003 = vst.msk [vmem:[#allocation3 + $0x6a] sm:$0xff] %vm1865_vm9, %v1970_v8 }
 0x1e7   : > { %2002 = vst.msk [vmem:[#allocation3 + $0x62] sm:$0xff] %vm1865_vm9, %v1969_v11 }
 0x1ed   : > { %v3388_v12 = vpop.f32.mrb[20].mxu0  ;;  %v2051_v13 = vld [vmem:[#allocation3 + $0x6a] sm:$0xff] }
 0x1ee   : > { %v1795_v14 = vadd.f32 %v3388_v12, %v4941_v60  ;;  %v1786_v15 = vpop.f32.mrb[21].mxu0  ;;  %v2050_v16 = vld [vmem:[#allocation3 + $0x62] sm:$0xff]  ;;  %v2067_v29 = vld [vmem:[#allocation3 + $0x6b] sm:$0xff] }
 0x1ef   : > { %v2034_v17 = vld [vmem:[#allocation3 + $0x61] sm:$0xff]  ;;  %v2035_v0 = vld [vmem:[#allocation3 + $0x69] sm:$0xff]  ;;  %v1787_v1 = vadd.f32 %v4941_v60, %v1786_v15  ;;  %v3389_v18 = vpop.f32.mrb[22].mxu0  ;;  %v3997_v19 = vpack.i.bf16 %v2051_v13, %v2050_v16 }
 0x1f0   : > { %v3992_v20 = vpack.i.bf16 %v2035_v0, %v2034_v17  ;;  %v1855_v22 = vmax.f32 %v1795_v14, 0.0  ;;  %v1798_v23 = vadd.f32 %v3389_v18, %v4941_v60  ;;  %v1789_v24 = vpop.f32.mrb[23].mxu0  ;;  %v2066_v28 = vld [vmem:[#allocation3 + $0x63] sm:$0xff] }
 0x1f1   : > { %v1853_v30 = vmax.f32 %v1787_v1, 0.0  ;;  %v1790_v31 = vadd.f32 %v4941_v60, %v1789_v24  ;;  %3998 = vrot.lane.b32.xlu1 %v3997_v19, %s4124_s22  ;;  %v4002_v34 = vpack.i.bf16 %v2067_v29, %v2066_v28  ;;  %v2076_v12 = vld [vmem:[#allocation3 + $0x1c] sm:$0xff]  ;;  %v2077_v13 = vld [vmem:[#allocation3 + $0x24] sm:$0xff] }
 0x1f2   : > { %3993 = vrot.lane.b32.xlu0 %v3992_v20, %s4125_s23  ;;  %1888 = vst.msk [vmem:[#allocation2 + $0xb0] sm:$0xff] %vm1865_vm9, %v1855_v22  ;;  %v1856_v32 = vmax.f32 %v1798_v23, 0.0  ;;  %v2335_v1 = vpack.c.bf16 %v2077_v13, %v2076_v12 }
 0x1f3   : > { %1886 = vst.msk [vmem:[#allocation2 + $0xa0] sm:$0xff] %vm1865_vm9, %v1853_v30  ;;  %v1854_v33 = vmax.f32 %v1790_v31, 0.0 }
 0x1f4   : > { %1889 = vst.msk [vmem:[#allocation2 + $0xb8] sm:$0xff] %vm1865_vm9, %v1856_v32 }
 0x1f5   : > { %1887 = vst.msk [vmem:[#allocation2 + $0xa8] sm:$0xff] %vm1865_vm9, %v1854_v33  ;;  %v2012_v33 = vld [vmem:[#allocation3 + $0x18] sm:$0xff] }
 0x1f6   : > { %4003 = vrot.lane.b32.xlu0 %v4002_v34, %s4126_s24  ;;  %v2013_v34 = vld [vmem:[#allocation3 + $0x20] sm:$0xff] }
 0x1fb   : > { %v1920_v35 = vld [vmem:[#allocation2 + $0xb0] ss:$2 sm:$0xff]  ;;  %v1952_v36 = vld [vmem:[#allocation2 + $0xb1] ss:$2 sm:$0xff] }
 0x1fc   : > { %v1972_v37 = vmax.f32 %v1920_v35, %v1952_v36  ;;  %v1918_v38 = vld [vmem:[#allocation2 + $0xa0] ss:$2 sm:$0xff]  ;;  %v1950_v39 = vld [vmem:[#allocation2 + $0xa1] ss:$2 sm:$0xff] }
 0x1fd   : > { %v1971_v40 = vmax.f32 %v1918_v38, %v1950_v39 }
 0x1fe   : > { %2005 = vst.msk [vmem:[#allocation3 + $0x82] sm:$0xff] %vm1865_vm9, %v1972_v37 }
 0x1ff   : > { %2004 = vst.msk [vmem:[#allocation3 + $0x7a] sm:$0xff] %vm1865_vm9, %v1971_v40 }
 0x203   : > { %v3939_v41 = vpop.permute.xlu1 %3938 }
 0x204   : > { %v3941_v45 = vunpack.i.h.bf16 %v3939_v41  ;;  %v3940_v46 = vunpack.i.l.bf16 %v3939_v41 }
 0x205   : > { %v3934_v42 = vpop.permute.xlu0 %3933  ;;  %v3392_v27 = vpop.f32.mrb[24].mxu0  ;;  %v2053_v44 = vld [vmem:[#allocation3 + $0x82] sm:$0xff] }
 0x206   : > { %v3936_v21 = vunpack.i.h.bf16 %v3934_v42  ;;  %v3935_v25 = vunpack.i.l.bf16 %v3934_v42  ;;  %v1811_v47 = vadd.f32 %v3392_v27, %v4941_v60  ;;  %v1802_v48 = vpop.f32.mrb[25].mxu0  ;;  %v2036_v49 = vld [vmem:[#allocation3 + $0x79] sm:$0xff]  ;;  %v2037_v51 = vld [vmem:[#allocation3 + $0x81] sm:$0xff] }
 0x207   : > { %v2052_v52 = vld [vmem:[#allocation3 + $0x7a] sm:$0xff]  ;;  %v1803_v57 = vadd.f32 %v4941_v60, %v1802_v48  ;;  %v3393_v58 = vpop.f32.mrb[26].mxu0  ;;  %v4007_v56 = vpack.i.bf16 %v2037_v51, %v2036_v49  ;;  %v2069_v4 = vld [vmem:[#allocation3 + $0x83] sm:$0xff] }
 0x208   : > { %v2282_v53 = vsel %vm1865_vm9, %v2010_v43, %v3935_v25  ;;  %v2283_v54 = vsel %vm1865_vm9, %v2011_v26, %v3936_v21  ;;  %v1859_v59 = vmax.f32 %v1811_v47, 0.0  ;;  %v1814_v61 = vadd.f32 %v3393_v58, %v4941_v60  ;;  %v1805_v63 = vpop.f32.mrb[27].mxu0  ;;  %v2068_v3 = vld [vmem:[#allocation3 + $0x7b] sm:$0xff] }
 0x209   : > { %v3944_v62 = vpop.permute.xlu0 %3943  ;;  %v4012_v2 = vpack.i.bf16 %v2053_v44, %v2052_v52  ;;  %v1857_v5 = vmax.f32 %v1803_v57, 0.0  ;;  %v1806_v8 = vadd.f32 %v4941_v60, %v1805_v63  ;;  %4008 = vrot.lane.b32.xlu1 %v4007_v56, %s4125_s23  ;;  %v2299_v10 = vsel %vm2298_vm10, %v2282_v53, %v3940_v46  ;;  %v2078_v58 = vld [vmem:[#allocation3 + $0x34] sm:$0xff]  ;;  %v2079_v56 = vld [vmem:[#allocation3 + $0x3c] sm:$0xff] }
 0x20a   : > { %v3946_v6 = vunpack.i.h.bf16 %v3944_v62  ;;  %v3945_v7 = vunpack.i.l.bf16 %v3944_v62  ;;  %1892 = vst.msk [vmem:[#allocation2 + $0xd0] sm:$0xff] %vm1865_vm9, %v1859_v59  ;;  %v1860_v9 = vmax.f32 %v1814_v61, 0.0  ;;  %v2300_v11 = vsel %vm2298_vm10, %v2283_v54, %v3941_v45 }
 0x20b   : > { %4013 = vrot.lane.b32.xlu0 %v4012_v2, %s4124_s22  ;;  %1890 = vst.msk [vmem:[#allocation2 + $0xc0] sm:$0xff] %vm1865_vm9, %v1857_v5  ;;  %v1858_v14 = vmax.f32 %v1806_v8, 0.0  ;;  %v4017_v15 = vpack.i.bf16 %v2069_v4, %v2068_v3  ;;  %v2337_v4 = vpack.c.bf16 %v2079_v56, %v2078_v58  ;;  %v2082_v58 = vld [vmem:[#allocation3 + $0x64] sm:$0xff]  ;;  %v2083_v56 = vld [vmem:[#allocation3 + $0x6c] sm:$0xff] }
 0x20c   : > { %v2316_v16 = vsel %vm2315_vm11, %v2299_v10, %v3945_v7  ;;  %v2317_v17 = vsel %vm2315_vm11, %v2300_v11, %v3946_v6  ;;  %1893 = vst.msk [vmem:[#allocation2 + $0xd8] sm:$0xff] %vm1865_vm9, %v1860_v9 }
 0x20d   : > { %v2332_v0 = vpack.c.bf16 %v2317_v17, %v2316_v16  ;;  %1891 = vst.msk [vmem:[#allocation2 + $0xc8] sm:$0xff] %vm1865_vm9, %v1858_v14  ;;  %4018 = vrot.lane.b32.xlu1 %v4017_v15, %s4126_s24 }
 0x20f   : > { %2492 = vmatmul.mubr.bf16.vlgmr.msra.gmra.mrb[0].mxu1 %v2332_v0  ;;  %v2014_v0 = vld [vmem:[#allocation3 + $0x30] sm:$0xff] }
 0x210   : > { %3289 = vmatprep.mubr.msk.bf16.mxu1 %vm1865_vm9, %v2335_v1  ;;  %v2015_v1 = vld [vmem:[#allocation3 + $0x38] sm:$0xff] }
 0x213   : > { %v1924_v18 = vld [vmem:[#allocation2 + $0xd0] ss:$2 sm:$0xff]  ;;  %v1956_v19 = vld [vmem:[#allocation2 + $0xd1] ss:$2 sm:$0xff] }
 0x214   : > { %v1974_v20 = vmax.f32 %v1924_v18, %v1956_v19  ;;  %v1922_v22 = vld [vmem:[#allocation2 + $0xc0] ss:$2 sm:$0xff]  ;;  %v1954_v23 = vld [vmem:[#allocation2 + $0xc1] ss:$2 sm:$0xff] }
 0x215   : > { %v1973_v24 = vmax.f32 %v1922_v22, %v1954_v23 }
 0x216   : > { %2007 = vst.msk [vmem:[#allocation3 + $0x9a] sm:$0xff] %vm1865_vm9, %v1974_v20 }
 0x217   : > { %2006 = vst.msk [vmem:[#allocation3 + $0x92] sm:$0xff] %vm1865_vm9, %v1973_v24 }
 0x21b   : > { %v3949_v28 = vpop.permute.xlu1 %3948 }
 0x21c   : > { %v3954_v29 = vpop.permute.xlu0 %3953  ;;  %v3951_v30 = vunpack.i.h.bf16 %v3949_v28  ;;  %v3950_v31 = vunpack.i.l.bf16 %v3949_v28 }
 0x21d   : > { %v3956_v32 = vunpack.i.h.bf16 %v3954_v29  ;;  %v3955_v35 = vunpack.i.l.bf16 %v3954_v29  ;;  %v3396_v36 = vpop.f32.mrb[28].mxu0  ;;  %v2055_v37 = vld [vmem:[#allocation3 + $0x9a] sm:$0xff] }
 0x21e   : > { %v2285_v38 = vsel %vm1865_vm9, %v2013_v34, %v3951_v30  ;;  %v2284_v39 = vsel %vm1865_vm9, %v2012_v33, %v3950_v31  ;;  %v1827_v40 = vadd.f32 %v3396_v36, %v4941_v60  ;;  %v1818_v41 = vpop.f32.mrb[29].mxu0  ;;  %v2054_v42 = vld [vmem:[#allocation3 + $0x92] sm:$0xff]  ;;  %v2071_v62 = vld [vmem:[#allocation3 + $0x9b] sm:$0xff] }
 0x21f   : > { %v2038_v21 = vld [vmem:[#allocation3 + $0x91] sm:$0xff]  ;;  %v2039_v25 = vld [vmem:[#allocation3 + $0x99] sm:$0xff]  ;;  %v2302_v43 = vsel %vm2298_vm10, %v2285_v38, %v3956_v32  ;;  %v1819_v26 = vadd.f32 %v4941_v60, %v1818_v41  ;;  %v3397_v27 = vpop.f32.mrb[30].mxu0  ;;  %v3959_v44 = vpop.permute.xlu1 %3958  ;;  %v4027_v45 = vpack.i.bf16 %v2055_v37, %v2054_v42  ;;  %v2301_v52 = vsel %vm2298_vm10, %v2284_v39, %v3955_v35 }
 0x220   : > { %v1863_v46 = vmax.f32 %v1827_v40, 0.0  ;;  %v1830_v47 = vadd.f32 %v3397_v27, %v4941_v60  ;;  %v3961_v48 = vunpack.i.h.bf16 %v3959_v44  ;;  %v3960_v49 = vunpack.i.l.bf16 %v3959_v44  ;;  %v1821_v51 = vpop.f32.mrb[31].mxu0  ;;  %v2070_v61 = vld [vmem:[#allocation3 + $0x93] sm:$0xff]  ;;  %v2016_v44 = vld [vmem:[#allocation3 + $0x48] sm:$0xff] }
 0x221   : > { %v1861_v53 = vmax.f32 %v1819_v26, 0.0  ;;  %v1822_v54 = vadd.f32 %v4941_v60, %v1821_v51  ;;  %4028 = vrot.lane.b32.xlu1 %v4027_v45, %s4124_s22  ;;  %v4022_v57 = vpack.i.bf16 %v2039_v25, %v2038_v21  ;;  %v4032_v5 = vpack.i.bf16 %v2071_v62, %v2070_v61  ;;  %v2080_v37 = vld [vmem:[#allocation3 + $0x4c] sm:$0xff]  ;;  %v2081_v38 = vld [vmem:[#allocation3 + $0x54] sm:$0xff] }
 0x222   : > { %1896 = vst.msk [vmem:[#allocation2 + $0xf0] sm:$0xff] %vm1865_vm9, %v1863_v46  ;;  %v1864_v59 = vmax.f32 %v1830_v47, 0.0  ;;  %v2318_v63 = vsel %vm2315_vm11, %v2301_v52, %v3960_v49  ;;  %v2319_v2 = vsel %vm2315_vm11, %v2302_v43, %v3961_v48  ;;  %v2339_v21 = vpack.c.bf16 %v2081_v38, %v2080_v37  ;;  %v2017_v45 = vld [vmem:[#allocation3 + $0x50] sm:$0xff] }
 0x223   : > { %1894 = vst.msk [vmem:[#allocation2 + $0xe0] sm:$0xff] %vm1865_vm9, %v1861_v53  ;;  %v1862_v3 = vmax.f32 %v1822_v54, 0.0  ;;  %4023 = vrot.lane.b32.xlu0 %v4022_v57, %s4125_s23  ;;  %v2334_v60 = vpack.c.bf16 %v2319_v2, %v2318_v63  ;;  %v2341_v63 = vpack.c.bf16 %v2083_v56, %v2082_v58 }
 0x224   : > { %1897 = vst.msk [vmem:[#allocation2 + $0xf8] sm:$0xff] %vm1865_vm9, %v1864_v59 }
 0x225   : > { %1895 = vst.msk [vmem:[#allocation2 + $0xe8] sm:$0xff] %vm1865_vm9, %v1862_v3  ;;  %2500 = vmatmul.mubr.bf16.gmra.mrb[4].mxu1 %v2334_v60 }
 0x226   : > { %3290 = vmatprep.mubr.msk.bf16.mxu1 %vm1865_vm9, %v2337_v4 }
 0x227   : > { %4033 = vrot.lane.b32.xlu0 %v4032_v5, %s4126_s24 }
 0x22b   : > { %v1928_v6 = vld [vmem:[#allocation2 + $0xf0] ss:$2 sm:$0xff]  ;;  %v1960_v7 = vld [vmem:[#allocation2 + $0xf1] ss:$2 sm:$0xff] }
 0x22c   : > { %v1976_v8 = vmax.f32 %v1928_v6, %v1960_v7  ;;  %v1926_v9 = vld [vmem:[#allocation2 + $0xe0] ss:$2 sm:$0xff]  ;;  %v1958_v10 = vld [vmem:[#allocation2 + $0xe1] ss:$2 sm:$0xff] }
 0x22d   : > { %v1975_v11 = vmax.f32 %v1926_v9, %v1958_v10  ;;  %v2018_v7 = vld [vmem:[#allocation3 + $0x60] sm:$0xff] }
 0x22e   : > { %2009 = vst.msk [vmem:[#allocation3 + $0xb2] sm:$0xff] %vm1865_vm9, %v1976_v8  ;;  %v2019_v8 = vld [vmem:[#allocation3 + $0x68] sm:$0xff] }
 0x22f   : > { %2008 = vst.msk [vmem:[#allocation3 + $0xaa] sm:$0xff] %vm1865_vm9, %v1975_v11 }
 0x233   : > { %v3969_v12 = vpop.permute.xlu1 %3968 }
 0x234   : > { %v3964_v13 = vpop.permute.xlu0 %3963  ;;  %v3971_v16 = vunpack.i.h.bf16 %v3969_v12  ;;  %v3970_v17 = vunpack.i.l.bf16 %v3969_v12 }
 0x235   : > { %v3966_v14 = vunpack.i.h.bf16 %v3964_v13  ;;  %v3965_v15 = vunpack.i.l.bf16 %v3964_v13  ;;  %v2057_v18 = vld [vmem:[#allocation3 + $0xb2] sm:$0xff] }
 0x236   : > { %v2040_v22 = vld [vmem:[#allocation3 + $0xa9] sm:$0xff]  ;;  %v2041_v23 = vld [vmem:[#allocation3 + $0xb1] sm:$0xff] }
 0x237   : > { %v2287_v19 = vsel %vm1865_vm9, %v2015_v1, %v3966_v14  ;;  %v2286_v20 = vsel %vm1865_vm9, %v2014_v0, %v3965_v15  ;;  %v2056_v24 = vld [vmem:[#allocation3 + $0xaa] sm:$0xff]  ;;  %v4037_v29 = vpack.i.bf16 %v2041_v23, %v2040_v22  ;;  %v2073_v34 = vld [vmem:[#allocation3 + $0xb3] sm:$0xff] }
 0x238   : > { %v3974_v28 = vpop.permute.xlu0 %3973  ;;  %v4042_v30 = vpack.i.bf16 %v2057_v18, %v2056_v24  ;;  %v2072_v33 = vld [vmem:[#allocation3 + $0xab] sm:$0xff]  ;;  %v2303_v35 = vsel %vm2298_vm10, %v2286_v20, %v3970_v17  ;;  %v2304_v36 = vsel %vm2298_vm10, %v2287_v19, %v3971_v16  ;;  %v2084_v16 = vld [vmem:[#allocation3 + $0x7c] sm:$0xff] }
 0x239   : > { %v3976_v31 = vunpack.i.h.bf16 %v3974_v28  ;;  %v3975_v32 = vunpack.i.l.bf16 %v3974_v28  ;;  %4038 = vrot.lane.b32.xlu1 %v4037_v29, %s4125_s23  ;;  %v4047_v41 = vpack.i.bf16 %v2073_v34, %v2072_v33  ;;  %v2085_v17 = vld [vmem:[#allocation3 + $0x84] sm:$0xff]  ;;  %v2020_v28 = vld [vmem:[#allocation3 + $0x78] sm:$0xff]  ;;  %v2088_v56 = vld [vmem:[#allocation3 + $0xac] sm:$0xff] }
 0x23a   : > { %4043 = vrot.lane.b32.xlu0 %v4042_v30, %s4124_s22  ;;  %v2343_v19 = vpack.c.bf16 %v2085_v17, %v2084_v16  ;;  %v2021_v29 = vld [vmem:[#allocation3 + $0x80] sm:$0xff] }
 0x23b   : > { %v2320_v39 = vsel %vm2315_vm11, %v2303_v35, %v3975_v32  ;;  %v2321_v40 = vsel %vm2315_vm11, %v2304_v36, %v3976_v31 }
 0x23c   : > { %v2336_v42 = vpack.c.bf16 %v2321_v40, %v2320_v39  ;;  %v2086_v39 = vld [vmem:[#allocation3 + $0x94] sm:$0xff]  ;;  %v2087_v40 = vld [vmem:[#allocation3 + $0x9c] sm:$0xff] }
 0x23d   : > { %4048 = vrot.lane.b32.xlu1 %v4047_v41, %s4126_s24 }
 0x23e   : > { %2508 = vmatmul.mubr.bf16.gmra.mrb[8].mxu1 %v2336_v42 }
 0x23f   : > { %3291 = vmatprep.mubr.msk.bf16.mxu1 %vm1865_vm9, %v2339_v21 }
 0x24b   : > { %v3979_v25 = vpop.permute.xlu1 %3978 }
 0x24c   : > { %v3984_v43 = vpop.permute.xlu0 %3983  ;;  %v3981_v26 = vunpack.i.h.bf16 %v3979_v25  ;;  %v3980_v27 = vunpack.i.l.bf16 %v3979_v25  ;;  %v2345_v25 = vpack.c.bf16 %v2087_v40, %v2086_v39  ;;  %v4089_v39 = vld [vmem:[%s5350_s5 + $0x28] sm:$0xff]   ;;  %v4090_v40 = vld [vmem:[%s5350_s5 + $0x30] sm:$0xff]  }
 0x24d   : > { %v3986_v46 = vunpack.i.h.bf16 %v3984_v43  ;;  %v3985_v47 = vunpack.i.l.bf16 %v3984_v43 }
 0x24e   : > { %v2289_v48 = vsel %vm1865_vm9, %v2017_v45, %v3981_v26  ;;  %v2288_v49 = vsel %vm1865_vm9, %v2016_v44, %v3980_v27 }
 0x24f   : > { %v3989_v51 = vpop.permute.xlu1 %3988  ;;  %v2306_v54 = vsel %vm2298_vm10, %v2289_v48, %v3986_v46  ;;  %v2305_v57 = vsel %vm2298_vm10, %v2288_v49, %v3985_v47  ;;  %v2022_v47 = vld [vmem:[#allocation3 + $0x90] sm:$0xff]  ;;  %v2023_v48 = vld [vmem:[#allocation3 + $0x98] sm:$0xff] }
 0x250   : > { %v3991_v52 = vunpack.i.h.bf16 %v3989_v51  ;;  %v3990_v53 = vunpack.i.l.bf16 %v3989_v51 }
 0x252   : > { %v2322_v59 = vsel %vm2315_vm11, %v2305_v57, %v3990_v53  ;;  %v2323_v61 = vsel %vm2315_vm11, %v2306_v54, %v3991_v52 }
 0x253   : > { %v2338_v62 = vpack.c.bf16 %v2323_v61, %v2322_v59  ;;  %v2089_v59 = vld [vmem:[#allocation3 + $0xb4] sm:$0xff] }
 0x255   : > { %2516 = vmatmul.mubr.bf16.gmra.mrb[12].mxu1 %v2338_v62 }
 0x256   : > { %3292 = vmatprep.mubr.msk.bf16.mxu1 %vm1865_vm9, %v2341_v63 }
 0x263   : > { %v3999_v2 = vpop.permute.xlu1 %3998 }
 0x264   : > { %v3994_v3 = vpop.permute.xlu0 %3993  ;;  %v4001_v5 = vunpack.i.h.bf16 %v3999_v2  ;;  %v4000_v6 = vunpack.i.l.bf16 %v3999_v2  ;;  %v2347_v2 = vpack.c.bf16 %v2089_v59, %v2088_v56 }
 0x265   : > { %v3996_v60 = vunpack.i.h.bf16 %v3994_v3  ;;  %v3995_v4 = vunpack.i.l.bf16 %v3994_v3 }
 0x267   : > { %v2291_v9 = vsel %vm1865_vm9, %v2019_v8, %v3996_v60  ;;  %v2290_v10 = vsel %vm1865_vm9, %v2018_v7, %v3995_v4  ;;  %v2025_v7 = vld [vmem:[#allocation3 + $0xb0] sm:$0xff] }
 0x268   : > { %v4004_v11 = vpop.permute.xlu0 %4003  ;;  %v2307_v14 = vsel %vm2298_vm10, %v2290_v10, %v4000_v6  ;;  %v2308_v15 = vsel %vm2298_vm10, %v2291_v9, %v4001_v5  ;;  %v2024_v6 = vld [vmem:[#allocation3 + $0xa8] sm:$0xff] }
 0x269   : > { %v4006_v12 = vunpack.i.h.bf16 %v4004_v11  ;;  %v4005_v13 = vunpack.i.l.bf16 %v4004_v11 }
 0x26b   : > { %v2324_v0 = vsel %vm2315_vm11, %v2307_v14, %v4005_v13  ;;  %v2325_v1 = vsel %vm2315_vm11, %v2308_v15, %v4006_v12 }
 0x26c   : > { %v2340_v18 = vpack.c.bf16 %v2325_v1, %v2324_v0 }
 0x26e   : > { %2524 = vmatmul.mubr.bf16.gmra.mrb[16].mxu1 %v2340_v18  ;;  %v4084_v18 = vld [vmem:[%s5350_s5] sm:$0xff]  }
 0x26f   : > { %3293 = vmatprep.mubr.msk.bf16.mxu1 %vm1865_vm9, %v2343_v19  ;;  %v5166_v19 = vld [vmem:[%s5349_s4] ss:$0 sm:$0xff]  ;;  %2840 = vmatpush1.bf16.msra.mxu0 %v4084_v18 }
 0x270   : > { %2841 = vmatprep.subr.bf16.mxu0 %v4123_v55 }
 0x27b   : > { %v4009_v20 = vpop.permute.xlu1 %4008 }
 0x27c   : > { %v4011_v22 = vunpack.i.h.bf16 %v4009_v20  ;;  %v4010_v23 = vunpack.i.l.bf16 %v4009_v20 }
 0x27d   : > { %v4014_v24 = vpop.permute.xlu0 %4013 }
 0x27e   : > { %v4016_v30 = vunpack.i.h.bf16 %v4014_v24  ;;  %v4015_v31 = vunpack.i.l.bf16 %v4014_v24  ;;  %v2293_v32 = vsel %vm1865_vm9, %v2021_v29, %v4011_v22  ;;  %v2292_v33 = vsel %vm1865_vm9, %v2020_v28, %v4010_v23  ;;  %v4085_v22 = vld [vmem:[%s5350_s5 + $0x8] sm:$0xff]  }
 0x27f   : > { %v4019_v34 = vpop.permute.xlu1 %4018  ;;  %2842 = vmatpush1.bf16.msra.mxu0 %v4085_v22 }
 0x280   : > { %v4021_v35 = vunpack.i.h.bf16 %v4019_v34  ;;  %v4020_v36 = vunpack.i.l.bf16 %v4019_v34  ;;  %v2310_v37 = vsel %vm2298_vm10, %v2293_v32, %v4016_v30  ;;  %v2309_v38 = vsel %vm2298_vm10, %v2292_v33, %v4015_v31  ;;  %2843 = vmatprep.subr.bf16.mxu0 %v4123_v55  ;;  %v4086_v32 = vld [vmem:[%s5350_s5 + $0x10] sm:$0xff]   ;;  %v4087_v34 = vld [vmem:[%s5350_s5 + $0x18] sm:$0xff]  }
 0x282   : > { %v2326_v41 = vsel %vm2315_vm11, %v2309_v38, %v4020_v36  ;;  %v2327_v42 = vsel %vm2315_vm11, %v2310_v37, %v4021_v35  ;;  %v4088_v35 = vld [vmem:[%s5350_s5 + $0x20] sm:$0xff]  }
 0x283   : > { %v2342_v21 = vpack.c.bf16 %v2327_v42, %v2326_v41  ;;  %2844 = vmatpush1.bf16.msra.mxu0 %v4086_v32 }
 0x284   : > { %2845 = vmatprep.subr.bf16.mxu0 %v4123_v55 }
 0x285   : > { %2532 = vmatmul.mubr.bf16.gmra.mrb[20].mxu1 %v2342_v21 }
 0x286   : > { %3294 = vmatprep.mubr.msk.bf16.mxu1 %vm1865_vm9, %v2345_v25  ;;  %v4091_v25 = vld [vmem:[%s5350_s5 + $0x38] sm:$0xff]  }
 0x287   : > { %2846 = vmatpush1.bf16.msra.mxu0 %v4087_v34 }
 0x288   : > { %2847 = vmatprep.subr.bf16.mxu0 %v4123_v55 }
 0x28b   : > { %2848 = vmatpush1.bf16.msra.mxu0 %v4088_v35 }
 0x28c   : > { %2849 = vmatprep.subr.bf16.mxu0 %v4123_v55 }
 0x28f   : > { %2850 = vmatpush1.bf16.msra.mxu0 %v4089_v39 }
 0x290   : > { %2851 = vmatprep.subr.bf16.mxu0 %v4123_v55 }
 0x293   : > { %v4029_v43 = vpop.permute.xlu1 %4028  ;;  %2852 = vmatpush1.bf16.msra.mxu0 %v4090_v40 }
 0x294   : > { %v4031_v45 = vunpack.i.h.bf16 %v4029_v43  ;;  %v4030_v46 = vunpack.i.l.bf16 %v4029_v43  ;;  %2853 = vmatprep.subr.bf16.mxu0 %v4123_v55 }
 0x295   : > { %v4024_v26 = vpop.permute.xlu0 %4023 }
 0x296   : > { %v4026_v27 = vunpack.i.h.bf16 %v4024_v26  ;;  %v4025_v44 = vunpack.i.l.bf16 %v4024_v26 }
 0x297   : > { %2854 = vmatpush1.bf16.msra.mxu0 %v4091_v25 }
 0x298   : > { %v2295_v49 = vsel %vm1865_vm9, %v2023_v48, %v4026_v27  ;;  %v2294_v51 = vsel %vm1865_vm9, %v2022_v47, %v4025_v44  ;;  %2855 = vmatprep.subr.bf16.mxu0 %v4123_v55  ;;  %v4093_v47 = vld [vmem:[%s5350_s5 + $0x48] sm:$0xff]   ;;  %v4094_v48 = vld [vmem:[%s5350_s5 + $0x50] sm:$0xff]  }
 0x299   : > { %v4034_v52 = vpop.permute.xlu0 %4033  ;;  %v2311_v57 = vsel %vm2298_vm10, %v2294_v51, %v4030_v46  ;;  %v2312_v58 = vsel %vm2298_vm10, %v2295_v49, %v4031_v45  ;;  %v4092_v46 = vld [vmem:[%s5350_s5 + $0x40] sm:$0xff]  }
 0x29a   : > { %v4036_v53 = vunpack.i.h.bf16 %v4034_v52  ;;  %v4035_v54 = vunpack.i.l.bf16 %v4034_v52 }
 0x29b   : > { %2856 = vmatpush1.bf16.msra.mxu0 %v4092_v46 }
 0x29c   : > { %v2328_v61 = vsel %vm2315_vm11, %v2311_v57, %v4035_v54  ;;  %v2329_v62 = vsel %vm2315_vm11, %v2312_v58, %v4036_v53  ;;  %2857 = vmatprep.subr.bf16.mxu0 %v4123_v55  ;;  %v4095_v53 = vld [vmem:[%s5350_s5 + $0x58] sm:$0xff]  }
 0x29d   : > { %v2344_v63 = vpack.c.bf16 %v2329_v62, %v2328_v61 }
 0x29f   : > { %2540 = vmatmul.mubr.bf16.gmra.mrb[24].mxu1 %v2344_v63  ;;  %2858 = vmatpush1.bf16.msra.mxu0 %v4093_v47 }
 0x2a0   : > { %3295 = vmatprep.mubr.msk.bf16.mxu1 %vm1865_vm9, %v2347_v2  ;;  %2859 = vmatprep.subr.bf16.mxu0 %v4123_v55 }
 0x2a3   : > { %2860 = vmatpush1.bf16.msra.mxu0 %v4094_v48 }
 0x2a4   : > { %2861 = vmatprep.subr.bf16.mxu0 %v4123_v55 }
 0x2a7   : > { %2862 = vmatpush1.bf16.msra.mxu0 %v4095_v53 }
 0x2a8   : > { %3398 = vmatprep.subr.bf16.mxu0 %v4122_v50 }
 0x2ab   : > { %v4039_v3 = vpop.permute.xlu1 %4038 }
 0x2ac   : > { %v4044_v60 = vpop.permute.xlu0 %4043  ;;  %v4041_v4 = vunpack.i.h.bf16 %v4039_v3  ;;  %v4040_v5 = vunpack.i.l.bf16 %v4039_v3 }
 0x2ad   : > { %v4046_v8 = vunpack.i.h.bf16 %v4044_v60  ;;  %v4045_v9 = vunpack.i.l.bf16 %v4044_v60 }
 0x2ae   : > { %v2297_v10 = vsel %vm1865_vm9, %v2025_v7, %v4041_v4  ;;  %v2296_v11 = vsel %vm1865_vm9, %v2024_v6, %v4040_v5 }
 0x2af   : > { %v4049_v12 = vpop.permute.xlu1 %4048  ;;  %v2314_v15 = vsel %vm2298_vm10, %v2297_v10, %v4046_v8  ;;  %v2313_v16 = vsel %vm2298_vm10, %v2296_v11, %v4045_v9 }
 0x2b0   : > { %v4051_v13 = vunpack.i.h.bf16 %v4049_v12  ;;  %v4050_v14 = vunpack.i.l.bf16 %v4049_v12 }
 0x2b2   : > { %v2330_v17 = vsel %vm2315_vm11, %v2313_v16, %v4050_v14  ;;  %v2331_v0 = vsel %vm2315_vm11, %v2314_v15, %v4051_v13 }
 0x2b3   : > { %v2346_v1 = vpack.c.bf16 %v2331_v0, %v2330_v17 }
 0x2b5   : > { %2548 = vmatmul.mubr.bf16.gmra.mrb[28].mxu1 %v2346_v1 }
 0x2b6   : > { %3426 = vmatprep.mubr.msk.bf16.mxu1 %vm4127_vm14, %v4122_v50 }
 0x2e2   : > { %v2493_v20 = vpop.f32.mrb[0].mxu1 }
 0x2e3   : > { %v2494_v23 = vadd.f32 %v5166_v19, %v2493_v20  ;;  %v2495_v24 = vpop.f32.mrb[1].mxu1 }
 0x2e4   : > { %v2496_v28 = vpop.f32.mrb[2].mxu1 }
 0x2e5   : > { %v2556_v29 = vmax.f32 %v2494_v23, 0.0  ;;  %v2497_v30 = vadd.f32 %v5166_v19, %v2496_v28  ;;  %v2498_v31 = vpop.f32.mrb[3].mxu1 }
 0x2e7   : > { %2572 = vst.msk [vmem:[#allocation4] sm:$0xff] %vm2298_vm10, %v2556_v29  ;;  %v2557_v33 = vmax.f32 %v2497_v30, 0.0 }
 0x2e9   : > { %2573 = vst.msk [vmem:[#allocation4 + $0x8] sm:$0xff] %vm2298_vm10, %v2557_v33 }
 0x2f0   : > { %v2588_v36 = vld [vmem:[#allocation4] ss:$2 sm:$0xff]  ;;  %v2604_v37 = vld [vmem:[#allocation4 + $0x1] ss:$2 sm:$0xff] }
 0x2f1   : > { %v2619_v38 = vmax.f32 %v2588_v36, %v2604_v37 }
 0x2f3   : > { %2644 = vst.msk [vmem:[#allocation5 + $0x1] sm:$0xff] %vm2298_vm10, %v2619_v38 }
 0x2f8   : > { %v2501_v41 = vpop.f32.mrb[4].mxu1 }
 0x2f9   : > { %v2502_v42 = vadd.f32 %v5166_v19, %v2501_v41  ;;  %v2503_v21 = vpop.f32.mrb[5].mxu1 }
 0x2fa   : > { %v2504_v43 = vpop.f32.mrb[6].mxu1  ;;  %v2668_v54 = vld [vmem:[#allocation5 + $0x2] sm:$0xff] }
 0x2fb   : > { %v2558_v26 = vmax.f32 %v2502_v42, 0.0  ;;  %v2505_v27 = vadd.f32 %v5166_v19, %v2504_v43  ;;  %v2506_v44 = vpop.f32.mrb[7].mxu1  ;;  %v2660_v56 = vld [vmem:[#allocation5 + $0x1] sm:$0xff] }
 0x2fd   : > { %2574 = vst.msk [vmem:[#allocation4 + $0x10] sm:$0xff] %vm2298_vm10, %v2558_v26  ;;  %v2559_v45 = vmax.f32 %v2505_v27, 0.0 }
 0x2ff   : > { %2575 = vst.msk [vmem:[#allocation4 + $0x18] sm:$0xff] %vm2298_vm10, %v2559_v45 }
 0x306   : > { %v2590_v49 = vld [vmem:[#allocation4 + $0x10] ss:$2 sm:$0xff]  ;;  %v2606_v51 = vld [vmem:[#allocation4 + $0x11] ss:$2 sm:$0xff] }
 0x307   : > { %v2620_v52 = vmax.f32 %v2590_v49, %v2606_v51 }
 0x309   : > { %2645 = vst.msk [vmem:[#allocation5 + $0x11] sm:$0xff] %vm2298_vm10, %v2620_v52 }
 0x310   : > { %v2669_v58 = vld [vmem:[#allocation5 + $0x12] sm:$0xff] }
 0x311   : > { %v2509_v57 = vpop.f32.mrb[8].mxu1  ;;  %v2661_v59 = vld [vmem:[#allocation5 + $0x11] sm:$0xff]  ;;  %v2717_v63 = vpack.c.bf16 %v2669_v58, %v2668_v54 }
 0x312   : > { %v2510_v61 = vadd.f32 %v5166_v19, %v2509_v57  ;;  %v2511_v62 = vpop.f32.mrb[9].mxu1  ;;  %v4052_v2 = vpack.i.bf16 %v2661_v59, %v2660_v56 }
 0x313   : > { %v2512_v55 = vpop.f32.mrb[10].mxu1  ;;  %3309 = vmatprep.mubr.msk.bf16.mxu0 %vm2298_vm10, %v2717_v63 }
 0x314   : > { %v2560_v3 = vmax.f32 %v2510_v61, 0.0  ;;  %v2513_v60 = vadd.f32 %v5166_v19, %v2512_v55  ;;  %v2514_v4 = vpop.f32.mrb[11].mxu1  ;;  %4053 = vrot.lane.b32.xlu0 %v4052_v2, %s4124_s22  ;;  %v2653_v2 = vld [vmem:[#allocation5 + $0x10] sm:$0xff]  ;;  %v2652_v55 = vld [vmem:[#allocation5] sm:$0xff] }
 0x316   : > { %2576 = vst.msk [vmem:[#allocation4 + $0x20] sm:$0xff] %vm2298_vm10, %v2560_v3  ;;  %v2561_v5 = vmax.f32 %v2513_v60, 0.0 }
 0x318   : > { %2577 = vst.msk [vmem:[#allocation4 + $0x28] sm:$0xff] %vm2298_vm10, %v2561_v5 }
 0x31f   : > { %v2592_v6 = vld [vmem:[#allocation4 + $0x20] ss:$2 sm:$0xff]  ;;  %v2608_v7 = vld [vmem:[#allocation4 + $0x21] ss:$2 sm:$0xff] }
 0x320   : > { %v2621_v8 = vmax.f32 %v2592_v6, %v2608_v7 }
 0x322   : > { %2646 = vst.msk [vmem:[#allocation5 + $0x21] sm:$0xff] %vm2298_vm10, %v2621_v8 }
 0x328   : > { %v2517_v9 = vpop.f32.mrb[12].mxu1 }
 0x329   : > { %v2518_v10 = vadd.f32 %v5166_v19, %v2517_v9  ;;  %v2519_v11 = vpop.f32.mrb[13].mxu1  ;;  %v2662_v20 = vld [vmem:[#allocation5 + $0x21] sm:$0xff] }
 0x32a   : > { %v2520_v12 = vpop.f32.mrb[14].mxu1  ;;  %v2670_v9 = vld [vmem:[#allocation5 + $0x22] sm:$0xff] }
 0x32b   : > { %v2562_v13 = vmax.f32 %v2518_v10, 0.0  ;;  %v2521_v14 = vadd.f32 %v5166_v19, %v2520_v12  ;;  %v2522_v15 = vpop.f32.mrb[15].mxu1 }
 0x32d   : > { %2578 = vst.msk [vmem:[#allocation4 + $0x30] sm:$0xff] %vm2298_vm10, %v2562_v13  ;;  %v2563_v16 = vmax.f32 %v2521_v14, 0.0 }
 0x32f   : > { %2579 = vst.msk [vmem:[#allocation4 + $0x38] sm:$0xff] %vm2298_vm10, %v2563_v16 }
 0x336   : > { %v2594_v17 = vld [vmem:[#allocation4 + $0x30] ss:$2 sm:$0xff]  ;;  %v2610_v0 = vld [vmem:[#allocation4 + $0x31] ss:$2 sm:$0xff] }
 0x337   : > { %v2622_v1 = vmax.f32 %v2594_v17, %v2610_v0 }
 0x339   : > { %2647 = vst.msk [vmem:[#allocation5 + $0x31] sm:$0xff] %vm2298_vm10, %v2622_v1 }
 0x340   : > { %v2663_v22 = vld [vmem:[#allocation5 + $0x31] sm:$0xff] }
 0x341   : > { %v2525_v18 = vpop.f32.mrb[16].mxu1  ;;  %v4057_v28 = vpack.i.bf16 %v2663_v22, %v2662_v20  ;;  %v2671_v3 = vld [vmem:[#allocation5 + $0x32] sm:$0xff] }
 0x342   : > { %v2526_v23 = vadd.f32 %v5166_v19, %v2525_v18  ;;  %v2527_v24 = vpop.f32.mrb[17].mxu1  ;;  %v2719_v11 = vpack.c.bf16 %v2671_v3, %v2670_v9 }
 0x343   : > { %v2528_v29 = vpop.f32.mrb[18].mxu1  ;;  %4058 = vrot.lane.b32.xlu1 %v4057_v28, %s4124_s22  ;;  %v2654_v24 = vld [vmem:[#allocation5 + $0x20] sm:$0xff]  ;;  %v2655_v28 = vld [vmem:[#allocation5 + $0x30] sm:$0xff] }
 0x344   : > { %v2564_v30 = vmax.f32 %v2526_v23, 0.0  ;;  %v2529_v31 = vadd.f32 %v5166_v19, %v2528_v29  ;;  %v2530_v32 = vpop.f32.mrb[19].mxu1 }
 0x346   : > { %2580 = vst.msk [vmem:[#allocation4 + $0x40] sm:$0xff] %vm2298_vm10, %v2564_v30  ;;  %v2565_v33 = vmax.f32 %v2529_v31, 0.0 }
 0x348   : > { %2581 = vst.msk [vmem:[#allocation4 + $0x48] sm:$0xff] %vm2298_vm10, %v2565_v33 }
 0x34f   : > { %v2596_v34 = vld [vmem:[#allocation4 + $0x40] ss:$2 sm:$0xff]  ;;  %v2612_v35 = vld [vmem:[#allocation4 + $0x41] ss:$2 sm:$0xff] }
 0x350   : > { %v2623_v36 = vmax.f32 %v2596_v34, %v2612_v35 }
 0x352   : > { %2648 = vst.msk [vmem:[#allocation5 + $0x41] sm:$0xff] %vm2298_vm10, %v2623_v36 }
 0x358   : > { %v2533_v37 = vpop.f32.mrb[20].mxu1 }
 0x359   : > { %v2534_v38 = vadd.f32 %v5166_v19, %v2533_v37  ;;  %v2535_v39 = vpop.f32.mrb[21].mxu1  ;;  %v2664_v44 = vld [vmem:[#allocation5 + $0x41] sm:$0xff] }
 0x35a   : > { %v2536_v40 = vpop.f32.mrb[22].mxu1  ;;  %v2672_v33 = vld [vmem:[#allocation5 + $0x42] sm:$0xff] }
 0x35b   : > { %v2566_v41 = vmax.f32 %v2534_v38, 0.0  ;;  %v2537_v42 = vadd.f32 %v5166_v19, %v2536_v40  ;;  %v2538_v21 = vpop.f32.mrb[23].mxu1  ;;  %v2656_v38 = vld [vmem:[#allocation5 + $0x40] sm:$0xff] }
 0x35d   : > { %2582 = vst.msk [vmem:[#allocation4 + $0x50] sm:$0xff] %vm2298_vm10, %v2566_v41  ;;  %v2567_v25 = vmax.f32 %v2537_v42, 0.0 }
 0x35f   : > { %2583 = vst.msk [vmem:[#allocation4 + $0x58] sm:$0xff] %vm2298_vm10, %v2567_v25 }
 0x366   : > { %v2598_v43 = vld [vmem:[#allocation4 + $0x50] ss:$2 sm:$0xff]  ;;  %v2614_v26 = vld [vmem:[#allocation4 + $0x51] ss:$2 sm:$0xff] }
 0x367   : > { %v2624_v27 = vmax.f32 %v2598_v43, %v2614_v26 }
 0x369   : > { %2649 = vst.msk [vmem:[#allocation5 + $0x51] sm:$0xff] %vm2298_vm10, %v2624_v27 }
 0x370   : > { %v2665_v45 = vld [vmem:[#allocation5 + $0x51] sm:$0xff] }
 0x371   : > { %v4062_v46 = vpack.i.bf16 %v2665_v45, %v2664_v44  ;;  %v2673_v29 = vld [vmem:[#allocation5 + $0x52] sm:$0xff] }
 0x372   : > { %v2541_v47 = vpop.f32.mrb[24].mxu1  ;;  %v2721_v34 = vpack.c.bf16 %v2673_v29, %v2672_v33  ;;  %v2657_v39 = vld [vmem:[#allocation5 + $0x50] sm:$0xff] }
 0x373   : > { %v2542_v48 = vadd.f32 %v5166_v19, %v2541_v47  ;;  %v2543_v49 = vpop.f32.mrb[25].mxu1  ;;  %4063 = vrot.lane.b32.xlu0 %v4062_v46, %s4124_s22 }
 0x374   : > { %v2544_v51 = vpop.f32.mrb[26].mxu1 }
 0x375   : > { %v2568_v52 = vmax.f32 %v2542_v48, 0.0  ;;  %v2545_v53 = vadd.f32 %v5166_v19, %v2544_v51  ;;  %v2546_v54 = vpop.f32.mrb[27].mxu1  ;;  %v4096_v51 = vld [vmem:[%s5352_s7] sm:$0xff]  }
 0x377   : > { %2584 = vst.msk [vmem:[#allocation4 + $0x60] sm:$0xff] %vm2298_vm10, %v2568_v52  ;;  %v2569_v57 = vmax.f32 %v2545_v53, 0.0  ;;  %v4097_v52 = vld [vmem:[%s5352_s7 + $0x8] sm:$0xff]   ;;  %v5279_v53 = vld [vmem:[%s5351_s6] ss:$0 sm:$0xff] }
 0x379   : > { %2585 = vst.msk [vmem:[#allocation4 + $0x68] sm:$0xff] %vm2298_vm10, %v2569_v57 }
 0x380   : > { %v2600_v58 = vld [vmem:[#allocation4 + $0x60] ss:$2 sm:$0xff]  ;;  %v2616_v56 = vld [vmem:[#allocation4 + $0x61] ss:$2 sm:$0xff] }
 0x381   : > { %v2625_v59 = vmax.f32 %v2600_v58, %v2616_v56 }
 0x383   : > { %2650 = vst.msk [vmem:[#allocation5 + $0x61] sm:$0xff] %vm2298_vm10, %v2625_v59 }
 0x386   : > { %v4054_v61 = vpop.permute.xlu0 %4053 }
 0x387   : > { %v4056_v62 = vunpack.i.h.bf16 %v4054_v61  ;;  %v4055_v63 = vunpack.i.l.bf16 %v4054_v61 }
 0x388   : > { %v2549_v5 = vpop.f32.mrb[28].mxu1 }
 0x389   : > { %v2709_v60 = vsel %vm2298_vm10, %v2653_v2, %v4056_v62  ;;  %v2708_v4 = vsel %vm2298_vm10, %v2652_v55, %v4055_v63  ;;  %v2550_v7 = vadd.f32 %v5166_v19, %v2549_v5  ;;  %v2551_v8 = vpop.f32.mrb[29].mxu1 }
 0x38a   : > { %v2716_v6 = vpack.c.bf16 %v2709_v60, %v2708_v4  ;;  %v2552_v10 = vpop.f32.mrb[30].mxu1  ;;  %v2666_v1 = vld [vmem:[#allocation5 + $0x61] sm:$0xff] }
 0x38b   : > { %v2570_v12 = vmax.f32 %v2550_v7, 0.0  ;;  %v2553_v13 = vadd.f32 %v5166_v19, %v2552_v10  ;;  %v2554_v14 = vpop.f32.mrb[31].mxu1  ;;  %v2674_v25 = vld [vmem:[#allocation5 + $0x62] sm:$0xff] }
 0x38c   : > { %2872 = vmatmul.mubr.bf16.vlgmr.msra.gmra.mrb[32].mxu0 %v2716_v6  ;;  %v2658_v45 = vld [vmem:[#allocation5 + $0x60] sm:$0xff]  ;;  %v4098_v14 = vld [vmem:[%s5352_s7 + $0x10] sm:$0xff]  }
 0x38d   : > { %3310 = vmatprep.mubr.msk.bf16.mxu0 %vm2298_vm10, %v2719_v11  ;;  %2586 = vst.msk [vmem:[#allocation4 + $0x70] sm:$0xff] %vm2298_vm10, %v2570_v12  ;;  %v2571_v15 = vmax.f32 %v2553_v13, 0.0  ;;  %3399 = vmatpush3.bf16.msra.mxu0 %v4096_v51 }
 0x38e   : > { %3400 = vmatprep.subr.bf16.mxu0 %v4122_v50 }
 0x38f   : > { %2587 = vst.msk [vmem:[#allocation4 + $0x78] sm:$0xff] %vm2298_vm10, %v2571_v15 }
 0x391   : > { %3401 = vmatpush3.bf16.msra.mxu0 %v4097_v52 }
 0x392   : > { %3402 = vmatprep.subr.bf16.mxu0 %v4122_v50 }
 0x395   : > { %3403 = vmatpush3.bf16.msra.mxu0 %v4098_v14 }
 0x396   : > { %v2602_v16 = vld [vmem:[#allocation4 + $0x70] ss:$2 sm:$0xff]  ;;  %v2618_v17 = vld [vmem:[#allocation4 + $0x71] ss:$2 sm:$0xff]  ;;  %3404 = vmatprep.subr.bf16.mxu0 %v4122_v50 }
 0x397   : > { %v2626_v0 = vmax.f32 %v2602_v16, %v2618_v17 }
 0x399   : > { %2651 = vst.msk [vmem:[#allocation5 + $0x71] sm:$0xff] %vm2298_vm10, %v2626_v0  ;;  %v4099_v0 = vld [vmem:[%s5352_s7 + $0x18] sm:$0xff]  }
 0x39a   : > { %3405 = vmatpush3.bf16.msra.mxu0 %v4099_v0 }
 0x39b   : > { %3406 = vmatprep.subr.bf16.mxu0 %v4122_v50 }
 0x3a0   : > { %v2667_v18 = vld [vmem:[#allocation5 + $0x71] sm:$0xff] }
 0x3a1   : > { %v4067_v20 = vpack.i.bf16 %v2667_v18, %v2666_v1  ;;  %v2675_v40 = vld [vmem:[#allocation5 + $0x72] sm:$0xff]  ;;  %v4100_v1 = vld [vmem:[%s5352_s7 + $0x20] sm:$0xff]   ;;  %v4101_v18 = vld [vmem:[%s5352_s7 + $0x28] sm:$0xff]  }
 0x3a2   : > { %v2723_v43 = vpack.c.bf16 %v2675_v40, %v2674_v25  ;;  %v2659_v46 = vld [vmem:[#allocation5 + $0x70] sm:$0xff]  ;;  %3407 = vmatpush3.bf16.msra.mxu0 %v4100_v1 }
 0x3a3   : > { %4068 = vrot.lane.b32.xlu1 %v4067_v20, %s4124_s22  ;;  %3408 = vmatprep.subr.bf16.mxu0 %v4122_v50  ;;  %v4102_v20 = vld [vmem:[%s5352_s7 + $0x30] sm:$0xff]  }
 0x3a6   : > { %3409 = vmatpush3.bf16.msra.mxu0 %v4101_v18 }
 0x3a7   : > { %3410 = vmatprep.subr.bf16.mxu0 %v4122_v50 }
 0x3aa   : > { %3411 = vmatpush3.bf16.msra.mxu0 %v4102_v20 }
 0x3ab   : > { %3412 = vmatprep.subr.bf16.mxu0 %v4122_v50 }
 0x3b5   : > { %v4059_v19 = vpop.permute.xlu1 %4058 }
 0x3b6   : > { %v4061_v22 = vunpack.i.h.bf16 %v4059_v19  ;;  %v4060_v23 = vunpack.i.l.bf16 %v4059_v19  ;;  %v4103_v19 = vld [vmem:[%s5352_s7 + $0x38] sm:$0xff]  }
 0x3b7   : > { %3413 = vmatpush3.bf16.msra.mxu0 %v4103_v19 }
 0x3b8   : > { %v2710_v30 = vsel %vm2298_vm10, %v2654_v24, %v4060_v23  ;;  %v2711_v31 = vsel %vm2298_vm10, %v2655_v28, %v4061_v22  ;;  %v4104_v22 = vld [vmem:[%s5354_s9] sm:$0xff]   ;;  %v4105_v23 = vld [vmem:[%s5354_s9 + $0x8] sm:$0xff]   ;;  %v4106_v28 = vld [vmem:[%s5354_s9 + $0x10] sm:$0xff]  }
 0x3b9   : > { %v2718_v32 = vpack.c.bf16 %v2711_v31, %v2710_v30  ;;  %3419 = vmatpush3.bf16.msra.mxu1 %v4104_v22 }
 0x3ba   : > { %3420 = vmatprep.subr.bf16.mxu1 %v4122_v50 }
 0x3bb   : > { %2880 = vmatmul.mubr.bf16.gmra.mrb[36].mxu0 %v2718_v32 }
 0x3bc   : > { %3311 = vmatprep.mubr.msk.bf16.mxu0 %vm2298_vm10, %v2721_v34 }
 0x3bd   : > { %3421 = vmatpush3.bf16.msra.mxu1 %v4105_v23 }
 0x3be   : > { %3422 = vmatprep.subr.bf16.mxu1 %v4122_v50 }
 0x3c1   : > { %3423 = vmatpush3.bf16.msra.mxu1 %v4106_v28 }
 0x3c2   : > { %3424 = vmatprep.subr.bf16.mxu1 %v4122_v50 }
 0x3e5   : > { %v4064_v35 = vpop.permute.xlu0 %4063 }
 0x3e6   : > { %v4066_v36 = vunpack.i.h.bf16 %v4064_v35  ;;  %v4065_v37 = vunpack.i.l.bf16 %v4064_v35  ;;  %v4107_v35 = vld [vmem:[%s5354_s9 + $0x18] sm:$0xff]  }
 0x3e7   : > { %3425 = vmatpush3.bf16.msra.mxu1 %v4107_v35 }
 0x3e8   : > { %v2712_v41 = vsel %vm2298_vm10, %v2656_v38, %v4065_v37  ;;  %v2713_v42 = vsel %vm2298_vm10, %v2657_v39, %v4066_v36 }
 0x3e9   : > { %v2720_v21 = vpack.c.bf16 %v2713_v42, %v2712_v41 }
 0x3eb   : > { %2888 = vmatmul.mubr.bf16.gmra.mrb[40].mxu0 %v2720_v21 }
 0x3ec   : > { %3312 = vmatprep.mubr.msk.bf16.mxu0 %vm2298_vm10, %v2723_v43 }
 0x415   : > { %v4069_v26 = vpop.permute.xlu1 %4068 }
 0x416   : > { %v4071_v27 = vunpack.i.h.bf16 %v4069_v26  ;;  %v4070_v44 = vunpack.i.l.bf16 %v4069_v26 }
 0x418   : > { %v2714_v47 = vsel %vm2298_vm10, %v2658_v45, %v4070_v44  ;;  %v2715_v48 = vsel %vm2298_vm10, %v2659_v46, %v4071_v27 }
 0x419   : > { %v2722_v49 = vpack.c.bf16 %v2715_v48, %v2714_v47 }
 0x41b   : > { %2896 = vmatmul.mubr.bf16.gmra.mrb[44].mxu0 %v2722_v49 }
 0x41c   : > { %3414 = vmatprep.mubr.msk.bf16.mxu0 %vm4127_vm14, %v4122_v50 }
 0x45f   : > { %v2873_v54 = vpop.f32.mrb[32].mxu0 }
 0x460   : > { %v2874_v57 = vadd.f32 %v5279_v53, %v2873_v54  ;;  %v2875_v58 = vpop.f32.mrb[33].mxu0 }
 0x461   : > { %v2876_v56 = vpop.f32.mrb[34].mxu0 }
 0x462   : > { %v2904_v59 = vmax.f32 %v2874_v57, 0.0  ;;  %v2877_v61 = vadd.f32 %v5279_v53, %v2876_v56  ;;  %v2878_v62 = vpop.f32.mrb[35].mxu0 }
 0x464   : > { %v2912_v63 = vrot.slane %v2904_v59, 4  ;;  %v2905_v2 = vmax.f32 %v2877_v61, 0.0 }
 0x466   : > { %v2913_v55 = vmax.f32 %v2904_v59, %v2912_v63  ;;  %v2918_v3 = vrot.slane %v2905_v2, 4 }
 0x468   : > { %v2914_v60 = vrot.slane %v2913_v55, 2  ;;  %v2919_v4 = vmax.f32 %v2905_v2, %v2918_v3 }
 0x46a   : > { %v2915_v5 = vmax.f32 %v2913_v55, %v2914_v60  ;;  %v2920_v6 = vrot.slane %v2919_v4, 2 }
 0x46c   : > { %v2916_v7 = vrot.slane %v2915_v5, 1  ;;  %v2921_v8 = vmax.f32 %v2919_v4, %v2920_v6 }
 0x46e   : > { %v2917_v9 = vmax.f32 %v2915_v5, %v2916_v7  ;;  %v2922_v10 = vrot.slane %v2921_v8, 1 }
 0x470   : > { %v2960_v11 = vpack.c.bf16 %v2917_v9, %v2917_v9  ;;  %v2923_v12 = vmax.f32 %v2921_v8, %v2922_v10 }
 0x472   : > { %v2961_v13 = vpack.c.bf16 %v2923_v12, %v2923_v12  ;;  %v2999_v15 = vunpack.c.l.b16 %v2960_v11 }
 0x474   : > { %v3000_v16 = vunpack.c.l.b16 %v2961_v13 }
 0x476   : > { %v3008_v17 = vsel %vm3007_vm13, %v3000_v16, %v2999_v15 }
 0x48e   : > { %v2881_v24 = vpop.f32.mrb[36].mxu0 }
 0x48f   : > { %v2882_v29 = vadd.f32 %v5279_v53, %v2881_v24  ;;  %v2883_v30 = vpop.f32.mrb[37].mxu0 }
 0x490   : > { %v2884_v31 = vpop.f32.mrb[38].mxu0 }
 0x491   : > { %v2906_v32 = vmax.f32 %v2882_v29, 0.0  ;;  %v2885_v33 = vadd.f32 %v5279_v53, %v2884_v31  ;;  %v2886_v34 = vpop.f32.mrb[39].mxu0 }
 0x493   : > { %v2924_v36 = vrot.slane %v2906_v32, 4  ;;  %v2907_v37 = vmax.f32 %v2885_v33, 0.0 }
 0x495   : > { %v2925_v38 = vmax.f32 %v2906_v32, %v2924_v36  ;;  %v2930_v39 = vrot.slane %v2907_v37, 4 }
 0x497   : > { %v2926_v40 = vrot.slane %v2925_v38, 2  ;;  %v2931_v41 = vmax.f32 %v2907_v37, %v2930_v39 }
 0x499   : > { %v2927_v42 = vmax.f32 %v2925_v38, %v2926_v40  ;;  %v2932_v21 = vrot.slane %v2931_v41, 2 }
 0x49b   : > { %v2928_v25 = vrot.slane %v2927_v42, 1  ;;  %v2933_v43 = vmax.f32 %v2931_v41, %v2932_v21 }
 0x49d   : > { %v2929_v26 = vmax.f32 %v2927_v42, %v2928_v25  ;;  %v2934_v27 = vrot.slane %v2933_v43, 1  ;;  %v3313_v25 = vld [vmem:[%s5353_s8] ss:$0 sm:$0xff] }
 0x49f   : > { %v2962_v44 = vpack.c.bf16 %v2929_v26, %v2929_v26  ;;  %v2935_v45 = vmax.f32 %v2933_v43, %v2934_v27 }
 0x4a1   : > { %v3001_v46 = vunpack.c.l.b16 %v2962_v44  ;;  %v2963_v47 = vpack.c.bf16 %v2935_v45, %v2935_v45 }
 0x4a3   : > { %v3010_v48 = vsel %vm3009_vm15, %v3001_v46, %v3008_v17  ;;  %v3002_v49 = vunpack.c.l.b16 %v2963_v47 }
 0x4a5   : > { %v3012_v50 = vsel %vm3011_vm0, %v3002_v49, %v3010_v48  ;;  %v3322_v48 = vld [vmem:[%s5355_s10] ss:$0 sm:$0xff] }
 0x4be   : > { %v2889_v51 = vpop.f32.mrb[40].mxu0 }
 0x4bf   : > { %v2890_v52 = vadd.f32 %v5279_v53, %v2889_v51  ;;  %v2891_v54 = vpop.f32.mrb[41].mxu0 }
 0x4c0   : > { %v2892_v57 = vpop.f32.mrb[42].mxu0 }
 0x4c1   : > { %v2908_v58 = vmax.f32 %v2890_v52, 0.0  ;;  %v2893_v56 = vadd.f32 %v5279_v53, %v2892_v57  ;;  %v2894_v59 = vpop.f32.mrb[43].mxu0 }
 0x4c3   : > { %v2936_v61 = vrot.slane %v2908_v58, 4  ;;  %v2909_v62 = vmax.f32 %v2893_v56, 0.0 }
 0x4c5   : > { %v2937_v63 = vmax.f32 %v2908_v58, %v2936_v61  ;;  %v2942_v2 = vrot.slane %v2909_v62, 4 }
 0x4c7   : > { %v2938_v55 = vrot.slane %v2937_v63, 2  ;;  %v2943_v3 = vmax.f32 %v2909_v62, %v2942_v2 }
 0x4c9   : > { %v2939_v60 = vmax.f32 %v2937_v63, %v2938_v55  ;;  %v2944_v4 = vrot.slane %v2943_v3, 2 }
 0x4cb   : > { %v2940_v5 = vrot.slane %v2939_v60, 1  ;;  %v2945_v6 = vmax.f32 %v2943_v3, %v2944_v4 }
 0x4cd   : > { %v2941_v7 = vmax.f32 %v2939_v60, %v2940_v5  ;;  %v2946_v8 = vrot.slane %v2945_v6, 1 }
 0x4cf   : > { %v2964_v9 = vpack.c.bf16 %v2941_v7, %v2941_v7  ;;  %v2947_v10 = vmax.f32 %v2945_v6, %v2946_v8 }
 0x4d1   : > { %v3003_v11 = vunpack.c.l.b16 %v2964_v9  ;;  %v2965_v12 = vpack.c.bf16 %v2947_v10, %v2947_v10 }
 0x4d3   : > { %v3014_v13 = vsel %vm3013_vm1, %v3003_v11, %v3012_v50  ;;  %v3004_v14 = vunpack.c.l.b16 %v2965_v12 }
 0x4d5   : > { %v3016_v15 = vsel %vm3015_vm2, %v3004_v14, %v3014_v13 }
 0x4ee   : > { %v2897_v16 = vpop.f32.mrb[44].mxu0 }
 0x4ef   : > { %v2898_v17 = vadd.f32 %v5279_v53, %v2897_v16  ;;  %v2899_v0 = vpop.f32.mrb[45].mxu0 }
 0x4f0   : > { %v2900_v1 = vpop.f32.mrb[46].mxu0 }
 0x4f1   : > { %v2910_v18 = vmax.f32 %v2898_v17, 0.0  ;;  %v2901_v20 = vadd.f32 %v5279_v53, %v2900_v1  ;;  %v2902_v19 = vpop.f32.mrb[47].mxu0 }
 0x4f3   : > { %v2948_v22 = vrot.slane %v2910_v18, 4  ;;  %v2911_v23 = vmax.f32 %v2901_v20, 0.0 }
 0x4f5   : > { %v2949_v24 = vmax.f32 %v2910_v18, %v2948_v22  ;;  %v2954_v28 = vrot.slane %v2911_v23, 4 }
 0x4f7   : > { %v2950_v29 = vrot.slane %v2949_v24, 2  ;;  %v2955_v30 = vmax.f32 %v2911_v23, %v2954_v28 }
 0x4f9   : > { %v2951_v31 = vmax.f32 %v2949_v24, %v2950_v29  ;;  %v2956_v32 = vrot.slane %v2955_v30, 2 }
 0x4fb   : > { %v2952_v33 = vrot.slane %v2951_v31, 1  ;;  %v2957_v34 = vmax.f32 %v2955_v30, %v2956_v32 }
 0x4fd   : > { %v2953_v35 = vmax.f32 %v2951_v31, %v2952_v33  ;;  %v2958_v36 = vrot.slane %v2957_v34, 1 }
 0x4ff   : > { %v2966_v37 = vpack.c.bf16 %v2953_v35, %v2953_v35  ;;  %v2959_v38 = vmax.f32 %v2957_v34, %v2958_v36 }
 0x501   : > { %v3005_v39 = vunpack.c.l.b16 %v2966_v37  ;;  %v2967_v40 = vpack.c.bf16 %v2959_v38, %v2959_v38 }
 0x503   : > { %v3018_v53 = vsel %vm3017_vm3, %v3005_v39, %v3016_v15  ;;  %v3006_v41 = vunpack.c.l.b16 %v2967_v40 }
 0x505   : > { %v3020_v42 = vsel %vm3019_vm4, %v3006_v41, %v3018_v53 }
 0x506   : > { %v3021_v21 = vpack.c.b16 %v3020_v42, %v3020_v42 }
 0x508   : > { %3415 = vmatmul.mubr.bf16.vlgmr.msra.gmra.mrb[48].mxu0 %v3021_v21 }
 0x5db   : > { %v3105_v43 = vpop.f32.mrb[48].mxu0 }
 0x5dc   : > { %v3106_v26 = vadd.f32 %v3313_v25, %v3105_v43  ;;  %v3416_v27 = vpop.f32.mrb[49].mxu0 }
 0x5dd   : > { %v3108_v44 = vpop.f32.mrb[50].mxu0 }
 0x5de   : > { %v3111_v45 = vmax.f32 %v3106_v26, 0.0  ;;  %v3417_v46 = vpop.f32.mrb[51].mxu0 }
 0x5e0   : > { %v3112_v47 = vpack.c.bf16 %v3111_v45, %v3111_v45 }
 0x5e2   : > { %3427 = vmatmul.mubr.msk.bf16.vlgmr.msra.gmra.mrb[32].mxu1 %vm2298_vm10, %v3112_v47 }
 0x6b5   : > { %v3189_v49 = vpop.f32.mrb[32].mxu1 }
 0x6b6   : > { %v3190_v50 = vadd.f32 %v3322_v48, %v3189_v49  ;;  %v3428_v51 = vpop.f32.mrb[33].mxu1 }
 0x6b7   : > { %v3192_v52 = vpop.f32.mrb[34].mxu1 }
 0x6b8   : > { %3196 = vst.msk [vmem:[%s389_s15] sm:$0xff] %vm3195_vm5, %v3190_v50  ;;  %v3429_v54 = vpop.f32.mrb[35].mxu1 }
 0x6b9 PF: > { %s21_s17 = sadd.s32 1, %s4114_s17  }
 0x6ba   : > { %p18_p5 = scmp.ge.s32.totalorder %s21_s17, 4  }
 0x6bc   :  { %20 = sbr.rel (!%p18_p5) target bundleno = 1 (0x1), region = 140 }

</bundles_post_ra>
